<compile_context>
chip_gen: v5e
topology: v5e:2x2
jax: 0.10.0
libtpu: 0.0.40
codegen_flags: <defaults>
</compile_context>

<pallas_src>
import functools

import numpy as np
import jax
import jax.numpy as jnp
from jax.experimental import pallas as pl
from jax.experimental.pallas import tpu as pltpu


# ----------------------------------------------------------------------------
# In-kernel helpers
# ----------------------------------------------------------------------------

def _ln(x, g, b, eps):
    """LayerNorm over the last axis.  x: (R, H) f32, g/b: (1, H) f32."""
    mu = jnp.mean(x, axis=-1, keepdims=True)
    var = jnp.mean(jnp.square(x - mu), axis=-1, keepdims=True)
    return (x - mu) * jax.lax.rsqrt(var + eps) * g + b


def _gelu(x):
    # tanh-approximate GELU (EUP-friendly).
    return 0.5 * x * (1.0 + jnp.tanh(0.7978845608028654 * (x + 0.044715 * x * x * x)))


# ----------------------------------------------------------------------------
# One fused kernel: embeddings -> L transformer layers -> CLS classifier,
# plus the FlashAttention module, all in a single invocation (no grid).
# ----------------------------------------------------------------------------

def _bert_fused_kernel(
    ids_flat_ref,   # (B*S, 1) int32   token ids, one per slab row
    pos_ids_ref,    # (B*S, 1) int32   position index per slab row (constant)
    ids_rows_ref,   # (B, S)   int32   raw input_ids (rows 0/1/2 feed flash q/k/v)
    mask_ref,       # (B, S)   int32   attention mask
    emb_tab_ref,    # (V+P, H) bf16    [word_emb ; pos_emb + type_emb[0]]
    eln_g_ref, eln_b_ref,               # (1, H) f32
    wqkv_ref, bqkv_ref,                 # (L, H, 3H) bf16 / (L, 1, 3H) f32
    wo_ref, bo_ref,                     # (L, H, H)  bf16 / (L, 1, H)  f32
    ln1g_ref, ln1b_ref,                 # (L, 1, H) f32
    w1_ref, b1_ref,                     # (L, H, I) bf16 / (L, 1, I) f32
    w2_ref, b2_ref,                     # (L, I, H) bf16 / (L, 1, H) f32
    ln2g_ref, ln2b_ref,                 # (L, 1, H) f32
    clsw_ref, clsb_ref,                 # (H, C) bf16 / (1, C) f32
    logits_ref,     # out: (B, C) bf16
    flash_ref,      # out: (SQ, FLASH_HEADS * S) bf16
    attn_scr,       # scratch: (B*S, H) f32
    *, B, S, H, nh, dh, L, V, eps, flash_heads, flash_seq, flash_scale):

    f32, bf16 = jnp.float32, jnp.bfloat16
    BS = B * S
    scale = 1.0 / (dh ** 0.5)

    # ---- fused embedding lookup: (token one-hot | position one-hot) matmul ----
    VP = emb_tab_ref.shape[0]
    col = jax.lax.broadcasted_iota(jnp.int32, (BS, VP), 1)
    hit = (col == ids_flat_ref[...]) | (col == (V + pos_ids_ref[...]))
    onehot = hit.astype(f32).astype(bf16)                       # (BS, V+P)
    x = jnp.dot(onehot, emb_tab_ref[...], preferred_element_type=f32)   # (BS, H)
    x = _ln(x, eln_g_ref[...], eln_b_ref[...], eps)

    # ---- transformer layers (Python-unrolled over stacked weights) ----
    for l in range(L):
        # fused QKV: one lane-dense matmul for the whole batch slab
        qkv = (jnp.dot(x.astype(bf16), wqkv_ref[l], preferred_element_type=f32)
               + bqkv_ref[l])                                    # (BS, 3H)

        for b in range(B):                                       # unrolled, B small
            r0 = b * S
            qkv_b = qkv[r0:r0 + S, :]                            # (S, 3H)
            q = jnp.stack([qkv_b[:, h * dh:(h + 1) * dh]
                           for h in range(nh)], 0).astype(bf16)          # (nh,S,dh)
            k = jnp.stack([qkv_b[:, H + h * dh:H + (h + 1) * dh]
                           for h in range(nh)], 0).astype(bf16)
            v = jnp.stack([qkv_b[:, 2 * H + h * dh:2 * H + (h + 1) * dh]
                           for h in range(nh)], 0).astype(bf16)

            s = jnp.einsum('hqd,hkd->hqk', q, k,
                           preferred_element_type=f32) * scale           # (nh,S,S)
            neg = (1.0 - mask_ref[b:b + 1, :].astype(f32)) * (-1e9)      # (1,S)
            s = s + neg[None, :, :]
            s = s - jnp.max(s, axis=-1, keepdims=True)
            p = jnp.exp(s)
            p = p * pl.reciprocal(jnp.sum(p, axis=-1, keepdims=True), approx=True)
            ctx = jnp.einsum('hqk,hkd->hqd', p.astype(bf16), v,
                             preferred_element_type=f32)                 # (nh,S,dh)
            # lane-concatenate heads -> (S, nh*dh == H) and park in the slab
            attn_scr[r0:r0 + S, :] = jnp.concatenate(
                [ctx[h] for h in range(nh)], axis=-1)

        # single output-projection matmul over the whole slab
        attn = (jnp.dot(attn_scr[...].astype(bf16), wo_ref[l],
                        preferred_element_type=f32) + bo_ref[l])         # (BS, H)
        x = _ln(x + attn, ln1g_ref[l], ln1b_ref[l], eps)

        # FFN
        hdn = _gelu(jnp.dot(x.astype(bf16), w1_ref[l],
                            preferred_element_type=f32) + b1_ref[l])     # (BS, I)
        x = _ln(x + jnp.dot(hdn.astype(bf16), w2_ref[l],
                            preferred_element_type=f32) + b2_ref[l],
                ln2g_ref[l], ln2b_ref[l], eps)

    # ---- fused CLS classifier (one (B,H)@(H,C) matmul) ----
    cls = jnp.concatenate([x[b * S:b * S + 1, :] for b in range(B)],
                          axis=0).astype(bf16)                           # (B, H)
    logits = jnp.dot(cls, clsw_ref[...], preferred_element_type=f32) + clsb_ref[...]
    logits_ref[...] = logits.astype(logits_ref.dtype)

    # ---- FlashAttention module: all heads identical -> compute one head ----
    rows = ids_rows_ref[...].astype(f32).astype(bf16)                    # (B, S)
    SQ, Df = flash_seq, S
    q1 = jnp.broadcast_to(rows[0:1, :], (SQ, Df))
    k1 = jnp.broadcast_to(rows[1:2, :], (SQ, Df))
    v1 = jnp.broadcast_to(rows[2:3, :], (SQ, Df))
    fs = jnp.einsum('qd,kd->qk', q1, k1,
                    preferred_element_type=f32) * flash_scale            # (SQ,SQ)
    qi = jax.lax.broadcasted_iota(jnp.int32, (SQ, SQ), 0)
    ki = jax.lax.broadcasted_iota(jnp.int32, (SQ, SQ), 1)
    fs = jnp.where(ki <= qi, fs, -1e9)                                   # causal
    fs = fs - jnp.max(fs, axis=-1, keepdims=True)
    fp = jnp.exp(fs)
    fp = fp * pl.reciprocal(jnp.sum(fp, axis=-1, keepdims=True), approx=True)
    o1 = jnp.einsum('qk,kd->qd', fp.astype(bf16), v1,
                    preferred_element_type=f32)                          # (SQ, Df)
    # replicate across heads along lanes -> one contiguous (SQ, heads*Df) store
    flash_ref[...] = jnp.concatenate(
        [o1.astype(flash_ref.dtype)] * flash_heads, axis=-1)


# ----------------------------------------------------------------------------
# Small deterministic BERT-style encoder (structure of bert-base, tiny config)
# ----------------------------------------------------------------------------

CFG = dict(vocab=128, hidden=64, heads=4, head_dim=16, inter=128,
           layers=2, max_pos=16, type_vocab=2, classes=2)


def init_params(key, cfg):
    """Kernel-ready params: per-layer weights stacked on a leading L dim,
    fused QKV as (H, 3H), matmul weights in bf16, combined embedding table."""
    H, I = cfg["hidden"], cfg["inter"]
    C, L = cfg["classes"], cfg["layers"]
    V, P = cfg["vocab"], cfg["max_pos"]

    def norm(k, shape):
        return 0.02 * jax.random.normal(k, shape, dtype=jnp.float32)

    keys = iter(jax.random.split(key, 4 + 6 * L))

    word_emb = norm(next(keys), (V, H))
    pos_emb = norm(next(keys), (P, H))
    type_emb = norm(next(keys), (cfg["type_vocab"], H))
    emb_table = jnp.concatenate([word_emb, pos_emb + type_emb[0:1]],
                                axis=0).astype(jnp.bfloat16)      # (V+P, H)

    wqkv, wo, w1, w2 = [], [], [], []
    for _ in range(L):
        wq_, wk_, wv_ = (norm(next(keys), (H, H)) for _ in range(3))
        wqkv.append(jnp.concatenate([wq_, wk_, wv_], axis=1))     # (H, 3H)
        wo.append(norm(next(keys), (H, H)))
        w1.append(norm(next(keys), (H, I)))
        w2.append(norm(next(keys), (I, H)))

    return {
        "emb_table": emb_table,
        "emb_ln_g": jnp.ones((1, H), jnp.float32),
        "emb_ln_b": jnp.zeros((1, H), jnp.float32),
        "wqkv": jnp.stack(wqkv).astype(jnp.bfloat16),             # (L, H, 3H)
        "bqkv": jnp.zeros((L, 1, 3 * H), jnp.float32),
        "wo": jnp.stack(wo).astype(jnp.bfloat16),                 # (L, H, H)
        "bo": jnp.zeros((L, 1, H), jnp.float32),
        "ln1_g": jnp.ones((L, 1, H), jnp.float32),
        "ln1_b": jnp.zeros((L, 1, H), jnp.float32),
        "w1": jnp.stack(w1).astype(jnp.bfloat16),                 # (L, H, I)
        "b1": jnp.zeros((L, 1, I), jnp.float32),
        "w2": jnp.stack(w2).astype(jnp.bfloat16),                 # (L, I, H)
        "b2": jnp.zeros((L, 1, H), jnp.float32),
        "ln2_g": jnp.ones((L, 1, H), jnp.float32),
        "ln2_b": jnp.zeros((L, 1, H), jnp.float32),
        "cls_w": norm(next(keys), (H, C)).astype(jnp.bfloat16),
        "cls_b": jnp.zeros((1, C), jnp.float32),
    }


# ----------------------------------------------------------------------------
# BertWithFlashAttention.forward  ->  one pallas_call
# ----------------------------------------------------------------------------

def model_forward(params, input_ids, attention_mask, cfg=CFG):
    B, S = input_ids.shape
    H, nh, dh = cfg["hidden"], cfg["heads"], cfg["head_dim"]
    L, V, C = cfg["layers"], cfg["vocab"], cfg["classes"]
    BS = B * S

    FLASH_HEADS, FLASH_SEQ = 16, 5            # hardcoded in the torch module
    Df = S                                    # head_dim == input_ids.shape[1]
    flash_scale = float(Df) ** -0.5

    ids_flat = input_ids.reshape(BS, 1).astype(jnp.int32)
    pos_ids = jnp.asarray(np.tile(np.arange(S, dtype=np.int32), B).reshape(BS, 1))
    mask = attention_mask.astype(jnp.int32)

    kernel = functools.partial(
        _bert_fused_kernel, B=B, S=S, H=H, nh=nh, dh=dh, L=L, V=V, eps=1e-12,
        flash_heads=FLASH_HEADS, flash_seq=FLASH_SEQ, flash_scale=flash_scale)

    vmem = pl.BlockSpec(memory_space=pltpu.MemorySpace.VMEM)

    logits, flash = pl.pallas_call(
        kernel,
        out_shape=(jax.ShapeDtypeStruct((B, C), jnp.bfloat16),
                   jax.ShapeDtypeStruct((FLASH_SEQ, FLASH_HEADS * Df), jnp.bfloat16)),
        in_specs=[vmem] * 21,
        out_specs=(vmem, vmem),
        scratch_shapes=[pltpu.VMEM((BS, H), jnp.float32)],
    )(ids_flat, pos_ids, input_ids.astype(jnp.int32), mask,
      params["emb_table"], params["emb_ln_g"], params["emb_ln_b"],
      params["wqkv"], params["bqkv"], params["wo"], params["bo"],
      params["ln1_g"], params["ln1_b"], params["w1"], params["b1"],
      params["w2"], params["b2"], params["ln2_g"], params["ln2_b"],
      params["cls_w"], params["cls_b"])

    # flash-attn layout: (batch=1, seqlen_q, num_heads, head_dim) — contiguous
    # reshape only, no transpose launch.
    flash_out = flash.reshape(1, FLASH_SEQ, FLASH_HEADS, Df)
    return logits, flash_out


if __name__ == "__main__":
    key = jax.random.PRNGKey(0)
    params = init_params(key, CFG)

    # HF BertModel dummy_inputs['input_ids'] values, shape (3, 5)
    input_ids = jnp.array([[7, 6, 0, 0, 1],
                           [1, 2, 3, 0, 0],
                           [0, 0, 0, 4, 5]], dtype=jnp.int32)
    attention_mask = jnp.ones((3, 5), dtype=jnp.int32)

    @jax.jit
    def run(p, ids, mask):
        return model_forward(p, ids, mask, CFG)

    logits, flash_out = run(params, input_ids, attention_mask)
    jax.block_until_ready((logits, flash_out))

    assert logits.shape == (3, 2) and logits.dtype == jnp.bfloat16
    assert flash_out.shape == (1, 5, 16, 5) and flash_out.dtype == jnp.bfloat16
    print("KERNEL_OK")
</pallas_src>

<mosaic_0001>
module attributes {stable_mosaic.version = 11 : i64} {
  func.func @_bert_fused_kernel(%arg0: memref<15x1xi32, #tpu.memory_space<vmem>>, %arg1: memref<15x1xi32, #tpu.memory_space<vmem>>, %arg2: memref<3x5xi32, #tpu.memory_space<vmem>>, %arg3: memref<3x5xi32, #tpu.memory_space<vmem>>, %arg4: memref<144x64xbf16, #tpu.memory_space<vmem>>, %arg5: memref<1x64xf32, #tpu.memory_space<vmem>>, %arg6: memref<1x64xf32, #tpu.memory_space<vmem>>, %arg7: memref<2x64x192xbf16, #tpu.memory_space<vmem>>, %arg8: memref<2x1x192xf32, #tpu.memory_space<vmem>>, %arg9: memref<2x64x64xbf16, #tpu.memory_space<vmem>>, %arg10: memref<2x1x64xf32, #tpu.memory_space<vmem>>, %arg11: memref<2x1x64xf32, #tpu.memory_space<vmem>>, %arg12: memref<2x1x64xf32, #tpu.memory_space<vmem>>, %arg13: memref<2x64x128xbf16, #tpu.memory_space<vmem>>, %arg14: memref<2x1x128xf32, #tpu.memory_space<vmem>>, %arg15: memref<2x128x64xbf16, #tpu.memory_space<vmem>>, %arg16: memref<2x1x64xf32, #tpu.memory_space<vmem>>, %arg17: memref<2x1x64xf32, #tpu.memory_space<vmem>>, %arg18: memref<2x1x64xf32, #tpu.memory_space<vmem>>, %arg19: memref<64x2xbf16, #tpu.memory_space<vmem>>, %arg20: memref<1x2xf32, #tpu.memory_space<vmem>>, %arg21: memref<3x2xbf16, #tpu.memory_space<vmem>>, %arg22: memref<5x80xbf16, #tpu.memory_space<vmem>>, %arg23: memref<15x64xf32, #tpu.memory_space<vmem>>) attributes {dimension_semantics = [], scalar_prefetch = 0 : i64, scratch_operands = 1 : i64, tpu.core_type = #tpu.core_type<tc>} {
    %0 = tpu.iota {dimensions = array<i32: 1>} : vector<15x144xi32>
    %c0 = arith.constant 0 : index
    %c0_0 = arith.constant 0 : index
    %1 = vector.load %arg0[%c0, %c0_0] : memref<15x1xi32, #tpu.memory_space<vmem>>, vector<15x1xi32>
    %2 = vector.broadcast %1 : vector<15x1xi32> to vector<15x144xi32>
    %3 = arith.cmpi eq, %0, %2 : vector<15x144xi32>
    %c0_1 = arith.constant 0 : index
    %c0_2 = arith.constant 0 : index
    %4 = vector.load %arg1[%c0_1, %c0_2] : memref<15x1xi32, #tpu.memory_space<vmem>>, vector<15x1xi32>
    %c128_i32 = arith.constant 128 : i32
    %5 = vector.broadcast %c128_i32 : i32 to vector<15x1xi32>
    %6 = arith.addi %5, %4 : vector<15x1xi32>
    %7 = vector.broadcast %6 : vector<15x1xi32> to vector<15x144xi32>
    %8 = arith.cmpi eq, %0, %7 : vector<15x144xi32>
    %9 = arith.ori %3, %8 : vector<15x144xi1>
    %10 = arith.extui %9 : vector<15x144xi1> to vector<15x144xi32>
    %11 = arith.sitofp %10 : vector<15x144xi32> to vector<15x144xf32>
    %12 = arith.truncf %11 : vector<15x144xf32> to vector<15x144xbf16>
    %c0_3 = arith.constant 0 : index
    %c0_4 = arith.constant 0 : index
    %13 = vector.load %arg4[%c0_3, %c0_4] : memref<144x64xbf16, #tpu.memory_space<vmem>>, vector<144x64xbf16>
    %cst = arith.constant dense<0.000000e+00> : vector<15x64xf32>
    %14 = tpu.matmul %12, %13, %cst {dimension_numbers = #tpu.dot_dimension_numbers<[1], [0], [0], [1], [0, 0, 1, 1], [], []>} : vector<15x144xbf16>, vector<144x64xbf16>, vector<15x64xf32> -> vector<15x64xf32>
    %c0_5 = arith.constant 0 : index
    %c0_6 = arith.constant 0 : index
    %15 = vector.load %arg5[%c0_5, %c0_6] : memref<1x64xf32, #tpu.memory_space<vmem>>, vector<1x64xf32>
    %c0_7 = arith.constant 0 : index
    %c0_8 = arith.constant 0 : index
    %16 = vector.load %arg6[%c0_7, %c0_8] : memref<1x64xf32, #tpu.memory_space<vmem>>, vector<1x64xf32>
    %cst_9 = arith.constant dense<0.000000e+00> : vector<15xf32>
    %17 = vector.multi_reduction <add>, %14, %cst_9 [1] : vector<15x64xf32> to vector<15xf32>
    %18 = vector.shape_cast %17 : vector<15xf32> to vector<15x1xf32>
    %cst_10 = arith.constant 6.400000e+01 : f32
    %19 = vector.broadcast %cst_10 : f32 to vector<15x1xf32>
    %20 = arith.divf %18, %19 : vector<15x1xf32>
    %21 = vector.broadcast %20 : vector<15x1xf32> to vector<15x64xf32>
    %22 = arith.subf %14, %21 : vector<15x64xf32>
    %23 = arith.mulf %22, %22 : vector<15x64xf32>
    %cst_11 = arith.constant dense<0.000000e+00> : vector<15xf32>
    %24 = vector.multi_reduction <add>, %23, %cst_11 [1] : vector<15x64xf32> to vector<15xf32>
    %25 = vector.shape_cast %24 : vector<15xf32> to vector<15x1xf32>
    %cst_12 = arith.constant 6.400000e+01 : f32
    %26 = vector.broadcast %cst_12 : f32 to vector<15x1xf32>
    %27 = arith.divf %25, %26 : vector<15x1xf32>
    %28 = vector.broadcast %20 : vector<15x1xf32> to vector<15x64xf32>
    %29 = arith.subf %14, %28 : vector<15x64xf32>
    %cst_13 = arith.constant 9.99999996E-13 : f32
    %30 = vector.broadcast %cst_13 : f32 to vector<15x1xf32>
    %31 = arith.addf %27, %30 : vector<15x1xf32>
    %32 = math.rsqrt %31 : vector<15x1xf32>
    %33 = vector.broadcast %32 : vector<15x1xf32> to vector<15x64xf32>
    %34 = arith.mulf %29, %33 : vector<15x64xf32>
    %35 = vector.broadcast %15 : vector<1x64xf32> to vector<15x64xf32>
    %36 = arith.mulf %34, %35 : vector<15x64xf32>
    %37 = vector.broadcast %16 : vector<1x64xf32> to vector<15x64xf32>
    %38 = arith.addf %36, %37 : vector<15x64xf32>
    %39 = arith.truncf %38 : vector<15x64xf32> to vector<15x64xbf16>
    %c0_14 = arith.constant 0 : index
    %c0_15 = arith.constant 0 : index
    %c0_16 = arith.constant 0 : index
    %40 = vector.load %arg7[%c0_14, %c0_15, %c0_16] : memref<2x64x192xbf16, #tpu.memory_space<vmem>>, vector<1x64x192xbf16>
    %41 = vector.shape_cast %40 : vector<1x64x192xbf16> to vector<64x192xbf16>
    %cst_17 = arith.constant dense<0.000000e+00> : vector<15x192xf32>
    %42 = tpu.matmul %39, %41, %cst_17 {dimension_numbers = #tpu.dot_dimension_numbers<[1], [0], [0], [1], [0, 0, 1, 1], [], []>} : vector<15x64xbf16>, vector<64x192xbf16>, vector<15x192xf32> -> vector<15x192xf32>
    %c0_18 = arith.constant 0 : index
    %c0_19 = arith.constant 0 : index
    %c0_20 = arith.constant 0 : index
    %43 = vector.load %arg8[%c0_18, %c0_19, %c0_20] : memref<2x1x192xf32, #tpu.memory_space<vmem>>, vector<1x1x192xf32>
    %44 = vector.shape_cast %43 : vector<1x1x192xf32> to vector<1x192xf32>
    %45 = vector.broadcast %44 : vector<1x192xf32> to vector<15x192xf32>
    %46 = arith.addf %42, %45 : vector<15x192xf32>
    %47 = vector.extract_strided_slice %46 {offsets = [0, 0], sizes = [5, 192], strides = [1, 1]} : vector<15x192xf32> to vector<5x192xf32>
    %48 = vector.extract_strided_slice %47 {offsets = [0, 0], sizes = [5, 16], strides = [1, 1]} : vector<5x192xf32> to vector<5x16xf32>
    %49 = vector.extract_strided_slice %47 {offsets = [0, 16], sizes = [5, 16], strides = [1, 1]} : vector<5x192xf32> to vector<5x16xf32>
    %50 = vector.extract_strided_slice %47 {offsets = [0, 32], sizes = [5, 16], strides = [1, 1]} : vector<5x192xf32> to vector<5x16xf32>
    %51 = vector.extract_strided_slice %47 {offsets = [0, 48], sizes = [5, 16], strides = [1, 1]} : vector<5x192xf32> to vector<5x16xf32>
    %52 = vector.shape_cast %48 : vector<5x16xf32> to vector<1x5x16xf32>
    %53 = vector.shape_cast %49 : vector<5x16xf32> to vector<1x5x16xf32>
    %54 = vector.shape_cast %50 : vector<5x16xf32> to vector<1x5x16xf32>
    %55 = vector.shape_cast %51 : vector<5x16xf32> to vector<1x5x16xf32>
    %56 = tpu.concatenate %52, %53, %54, %55 in 0 : vector<1x5x16xf32>, vector<1x5x16xf32>, vector<1x5x16xf32>, vector<1x5x16xf32> -> vector<4x5x16xf32>
    %57 = arith.truncf %56 : vector<4x5x16xf32> to vector<4x5x16xbf16>
    %58 = vector.extract_strided_slice %47 {offsets = [0, 64], sizes = [5, 16], strides = [1, 1]} : vector<5x192xf32> to vector<5x16xf32>
    %59 = vector.extract_strided_slice %47 {offsets = [0, 80], sizes = [5, 16], strides = [1, 1]} : vector<5x192xf32> to vector<5x16xf32>
    %60 = vector.extract_strided_slice %47 {offsets = [0, 96], sizes = [5, 16], strides = [1, 1]} : vector<5x192xf32> to vector<5x16xf32>
    %61 = vector.extract_strided_slice %47 {offsets = [0, 112], sizes = [5, 16], strides = [1, 1]} : vector<5x192xf32> to vector<5x16xf32>
    %62 = vector.shape_cast %58 : vector<5x16xf32> to vector<1x5x16xf32>
    %63 = vector.shape_cast %59 : vector<5x16xf32> to vector<1x5x16xf32>
    %64 = vector.shape_cast %60 : vector<5x16xf32> to vector<1x5x16xf32>
    %65 = vector.shape_cast %61 : vector<5x16xf32> to vector<1x5x16xf32>
    %66 = tpu.concatenate %62, %63, %64, %65 in 0 : vector<1x5x16xf32>, vector<1x5x16xf32>, vector<1x5x16xf32>, vector<1x5x16xf32> -> vector<4x5x16xf32>
    %67 = arith.truncf %66 : vector<4x5x16xf32> to vector<4x5x16xbf16>
    %68 = vector.extract_strided_slice %47 {offsets = [0, 128], sizes = [5, 16], strides = [1, 1]} : vector<5x192xf32> to vector<5x16xf32>
    %69 = vector.extract_strided_slice %47 {offsets = [0, 144], sizes = [5, 16], strides = [1, 1]} : vector<5x192xf32> to vector<5x16xf32>
    %70 = vector.extract_strided_slice %47 {offsets = [0, 160], sizes = [5, 16], strides = [1, 1]} : vector<5x192xf32> to vector<5x16xf32>
    %71 = vector.extract_strided_slice %47 {offsets = [0, 176], sizes = [5, 16], strides = [1, 1]} : vector<5x192xf32> to vector<5x16xf32>
    %72 = vector.shape_cast %68 : vector<5x16xf32> to vector<1x5x16xf32>
    %73 = vector.shape_cast %69 : vector<5x16xf32> to vector<1x5x16xf32>
    %74 = vector.shape_cast %70 : vector<5x16xf32> to vector<1x5x16xf32>
    %75 = vector.shape_cast %71 : vector<5x16xf32> to vector<1x5x16xf32>
    %76 = tpu.concatenate %72, %73, %74, %75 in 0 : vector<1x5x16xf32>, vector<1x5x16xf32>, vector<1x5x16xf32>, vector<1x5x16xf32> -> vector<4x5x16xf32>
    %77 = arith.truncf %76 : vector<4x5x16xf32> to vector<4x5x16xbf16>
    "tpu.trace_start"() <{level = 10 : i32, message = "hqd,hkd->hqk"}> : () -> ()
    %cst_21 = arith.constant dense<0.000000e+00> : vector<4x5x5xf32>
    %78 = tpu.matmul %57, %67, %cst_21 {dimension_numbers = #tpu.dot_dimension_numbers<[2], [2], [1], [1], [0, 0, 0, 1, 1, 1], [0], [0]>} : vector<4x5x16xbf16>, vector<4x5x16xbf16>, vector<4x5x5xf32> -> vector<4x5x5xf32>
    "tpu.trace_stop"() : () -> ()
    %cst_22 = arith.constant 2.500000e-01 : f32
    %79 = vector.broadcast %cst_22 : f32 to vector<4x5x5xf32>
    %80 = arith.mulf %78, %79 : vector<4x5x5xf32>
    %c0_23 = arith.constant 0 : index
    %c0_24 = arith.constant 0 : index
    %81 = vector.load %arg3[%c0_23, %c0_24] : memref<3x5xi32, #tpu.memory_space<vmem>>, vector<1x5xi32>
    %82 = arith.sitofp %81 : vector<1x5xi32> to vector<1x5xf32>
    %cst_25 = arith.constant 1.000000e+00 : f32
    %83 = vector.broadcast %cst_25 : f32 to vector<1x5xf32>
    %84 = arith.subf %83, %82 : vector<1x5xf32>
    %cst_26 = arith.constant -1.000000e+09 : f32
    %85 = vector.broadcast %cst_26 : f32 to vector<1x5xf32>
    %86 = arith.mulf %84, %85 : vector<1x5xf32>
    %87 = vector.shape_cast %86 : vector<1x5xf32> to vector<1x1x5xf32>
    %88 = vector.broadcast %87 : vector<1x1x5xf32> to vector<4x5x5xf32>
    %89 = arith.addf %80, %88 : vector<4x5x5xf32>
    %cst_27 = arith.constant dense<0xFF800000> : vector<4x5xf32>
    %90 = vector.multi_reduction <maximumf>, %89, %cst_27 [2] : vector<4x5x5xf32> to vector<4x5xf32>
    %91 = vector.shape_cast %90 : vector<4x5xf32> to vector<4x5x1xf32>
    %92 = vector.broadcast %91 : vector<4x5x1xf32> to vector<4x5x5xf32>
    %93 = arith.subf %89, %92 : vector<4x5x5xf32>
    %94 = math.exp %93 : vector<4x5x5xf32>
    %cst_28 = arith.constant dense<0.000000e+00> : vector<4x5xf32>
    %95 = vector.multi_reduction <add>, %94, %cst_28 [2] : vector<4x5x5xf32> to vector<4x5xf32>
    %96 = vector.shape_cast %95 : vector<4x5xf32> to vector<4x5x1xf32>
    %97 = tpu.reciprocal %96 {approx = true} : vector<4x5x1xf32> -> vector<4x5x1xf32>
    %98 = vector.broadcast %97 : vector<4x5x1xf32> to vector<4x5x5xf32>
    %99 = arith.mulf %94, %98 : vector<4x5x5xf32>
    %100 = arith.truncf %99 : vector<4x5x5xf32> to vector<4x5x5xbf16>
    "tpu.trace_start"() <{level = 10 : i32, message = "hqk,hkd->hqd"}> : () -> ()
    %cst_29 = arith.constant dense<0.000000e+00> : vector<4x5x16xf32>
    %101 = tpu.matmul %100, %77, %cst_29 {dimension_numbers = #tpu.dot_dimension_numbers<[2], [1], [1], [2], [0, 0, 0, 1, 1, 2], [0], [0]>} : vector<4x5x5xbf16>, vector<4x5x16xbf16>, vector<4x5x16xf32> -> vector<4x5x16xf32>
    "tpu.trace_stop"() : () -> ()
    %102 = vector.extract_strided_slice %101 {offsets = [0, 0, 0], sizes = [1, 5, 16], strides = [1, 1, 1]} : vector<4x5x16xf32> to vector<1x5x16xf32>
    %103 = vector.shape_cast %102 : vector<1x5x16xf32> to vector<5x16xf32>
    %104 = vector.extract_strided_slice %101 {offsets = [1, 0, 0], sizes = [1, 5, 16], strides = [1, 1, 1]} : vector<4x5x16xf32> to vector<1x5x16xf32>
    %105 = vector.shape_cast %104 : vector<1x5x16xf32> to vector<5x16xf32>
    %106 = vector.extract_strided_slice %101 {offsets = [2, 0, 0], sizes = [1, 5, 16], strides = [1, 1, 1]} : vector<4x5x16xf32> to vector<1x5x16xf32>
    %107 = vector.shape_cast %106 : vector<1x5x16xf32> to vector<5x16xf32>
    %108 = vector.extract_strided_slice %101 {offsets = [3, 0, 0], sizes = [1, 5, 16], strides = [1, 1, 1]} : vector<4x5x16xf32> to vector<1x5x16xf32>
    %109 = vector.shape_cast %108 : vector<1x5x16xf32> to vector<5x16xf32>
    %110 = tpu.concatenate %103, %105, %107, %109 in 1 : vector<5x16xf32>, vector<5x16xf32>, vector<5x16xf32>, vector<5x16xf32> -> vector<5x64xf32>
    %c0_30 = arith.constant 0 : index
    %c0_31 = arith.constant 0 : index
    %111 = vector.load %arg23[%c0_30, %c0_31] : memref<15x64xf32, #tpu.memory_space<vmem>>, vector<5x64xf32>
    tpu.vector_store %arg23[%c0_30, %c0_31], %110 {strides = array<i32>} : memref<15x64xf32, #tpu.memory_space<vmem>>, vector<5x64xf32>,
    %112 = vector.extract_strided_slice %46 {offsets = [5, 0], sizes = [5, 192], strides = [1, 1]} : vector<15x192xf32> to vector<5x192xf32>
    %113 = vector.extract_strided_slice %112 {offsets = [0, 0], sizes = [5, 16], strides = [1, 1]} : vector<5x192xf32> to vector<5x16xf32>
    %114 = vector.extract_strided_slice %112 {offsets = [0, 16], sizes = [5, 16], strides = [1, 1]} : vector<5x192xf32> to vector<5x16xf32>
    %115 = vector.extract_strided_slice %112 {offsets = [0, 32], sizes = [5, 16], strides = [1, 1]} : vector<5x192xf32> to vector<5x16xf32>
    %116 = vector.extract_strided_slice %112 {offsets = [0, 48], sizes = [5, 16], strides = [1, 1]} : vector<5x192xf32> to vector<5x16xf32>
    %117 = vector.shape_cast %113 : vector<5x16xf32> to vector<1x5x16xf32>
    %118 = vector.shape_cast %114 : vector<5x16xf32> to vector<1x5x16xf32>
    %119 = vector.shape_cast %115 : vector<5x16xf32> to vector<1x5x16xf32>
    %120 = vector.shape_cast %116 : vector<5x16xf32> to vector<1x5x16xf32>
    %121 = tpu.concatenate %117, %118, %119, %120 in 0 : vector<1x5x16xf32>, vector<1x5x16xf32>, vector<1x5x16xf32>, vector<1x5x16xf32> -> vector<4x5x16xf32>
    %122 = arith.truncf %121 : vector<4x5x16xf32> to vector<4x5x16xbf16>
    %123 = vector.extract_strided_slice %112 {offsets = [0, 64], sizes = [5, 16], strides = [1, 1]} : vector<5x192xf32> to vector<5x16xf32>
    %124 = vector.extract_strided_slice %112 {offsets = [0, 80], sizes = [5, 16], strides = [1, 1]} : vector<5x192xf32> to vector<5x16xf32>
    %125 = vector.extract_strided_slice %112 {offsets = [0, 96], sizes = [5, 16], strides = [1, 1]} : vector<5x192xf32> to vector<5x16xf32>
    %126 = vector.extract_strided_slice %112 {offsets = [0, 112], sizes = [5, 16], strides = [1, 1]} : vector<5x192xf32> to vector<5x16xf32>
    %127 = vector.shape_cast %123 : vector<5x16xf32> to vector<1x5x16xf32>
    %128 = vector.shape_cast %124 : vector<5x16xf32> to vector<1x5x16xf32>
    %129 = vector.shape_cast %125 : vector<5x16xf32> to vector<1x5x16xf32>
    %130 = vector.shape_cast %126 : vector<5x16xf32> to vector<1x5x16xf32>
    %131 = tpu.concatenate %127, %128, %129, %130 in 0 : vector<1x5x16xf32>, vector<1x5x16xf32>, vector<1x5x16xf32>, vector<1x5x16xf32> -> vector<4x5x16xf32>
    %132 = arith.truncf %131 : vector<4x5x16xf32> to vector<4x5x16xbf16>
    %133 = vector.extract_strided_slice %112 {offsets = [0, 128], sizes = [5, 16], strides = [1, 1]} : vector<5x192xf32> to vector<5x16xf32>
    %134 = vector.extract_strided_slice %112 {offsets = [0, 144], sizes = [5, 16], strides = [1, 1]} : vector<5x192xf32> to vector<5x16xf32>
    %135 = vector.extract_strided_slice %112 {offsets = [0, 160], sizes = [5, 16], strides = [1, 1]} : vector<5x192xf32> to vector<5x16xf32>
    %136 = vector.extract_strided_slice %112 {offsets = [0, 176], sizes = [5, 16], strides = [1, 1]} : vector<5x192xf32> to vector<5x16xf32>
    %137 = vector.shape_cast %133 : vector<5x16xf32> to vector<1x5x16xf32>
    %138 = vector.shape_cast %134 : vector<5x16xf32> to vector<1x5x16xf32>
    %139 = vector.shape_cast %135 : vector<5x16xf32> to vector<1x5x16xf32>
    %140 = vector.shape_cast %136 : vector<5x16xf32> to vector<1x5x16xf32>
    %141 = tpu.concatenate %137, %138, %139, %140 in 0 : vector<1x5x16xf32>, vector<1x5x16xf32>, vector<1x5x16xf32>, vector<1x5x16xf32> -> vector<4x5x16xf32>
    %142 = arith.truncf %141 : vector<4x5x16xf32> to vector<4x5x16xbf16>
    "tpu.trace_start"() <{level = 10 : i32, message = "hqd,hkd->hqk"}> : () -> ()
    %cst_32 = arith.constant dense<0.000000e+00> : vector<4x5x5xf32>
    %143 = tpu.matmul %122, %132, %cst_32 {dimension_numbers = #tpu.dot_dimension_numbers<[2], [2], [1], [1], [0, 0, 0, 1, 1, 1], [0], [0]>} : vector<4x5x16xbf16>, vector<4x5x16xbf16>, vector<4x5x5xf32> -> vector<4x5x5xf32>
    "tpu.trace_stop"() : () -> ()
    %cst_33 = arith.constant 2.500000e-01 : f32
    %144 = vector.broadcast %cst_33 : f32 to vector<4x5x5xf32>
    %145 = arith.mulf %143, %144 : vector<4x5x5xf32>
    %c1 = arith.constant 1 : index
    %c0_34 = arith.constant 0 : index
    %146 = vector.load %arg3[%c1, %c0_34] : memref<3x5xi32, #tpu.memory_space<vmem>>, vector<1x5xi32>
    %147 = arith.sitofp %146 : vector<1x5xi32> to vector<1x5xf32>
    %cst_35 = arith.constant 1.000000e+00 : f32
    %148 = vector.broadcast %cst_35 : f32 to vector<1x5xf32>
    %149 = arith.subf %148, %147 : vector<1x5xf32>
    %cst_36 = arith.constant -1.000000e+09 : f32
    %150 = vector.broadcast %cst_36 : f32 to vector<1x5xf32>
    %151 = arith.mulf %149, %150 : vector<1x5xf32>
    %152 = vector.shape_cast %151 : vector<1x5xf32> to vector<1x1x5xf32>
    %153 = vector.broadcast %152 : vector<1x1x5xf32> to vector<4x5x5xf32>
    %154 = arith.addf %145, %153 : vector<4x5x5xf32>
    %cst_37 = arith.constant dense<0xFF800000> : vector<4x5xf32>
    %155 = vector.multi_reduction <maximumf>, %154, %cst_37 [2] : vector<4x5x5xf32> to vector<4x5xf32>
    %156 = vector.shape_cast %155 : vector<4x5xf32> to vector<4x5x1xf32>
    %157 = vector.broadcast %156 : vector<4x5x1xf32> to vector<4x5x5xf32>
    %158 = arith.subf %154, %157 : vector<4x5x5xf32>
    %159 = math.exp %158 : vector<4x5x5xf32>
    %cst_38 = arith.constant dense<0.000000e+00> : vector<4x5xf32>
    %160 = vector.multi_reduction <add>, %159, %cst_38 [2] : vector<4x5x5xf32> to vector<4x5xf32>
    %161 = vector.shape_cast %160 : vector<4x5xf32> to vector<4x5x1xf32>
    %162 = tpu.reciprocal %161 {approx = true} : vector<4x5x1xf32> -> vector<4x5x1xf32>
    %163 = vector.broadcast %162 : vector<4x5x1xf32> to vector<4x5x5xf32>
    %164 = arith.mulf %159, %163 : vector<4x5x5xf32>
    %165 = arith.truncf %164 : vector<4x5x5xf32> to vector<4x5x5xbf16>
    "tpu.trace_start"() <{level = 10 : i32, message = "hqk,hkd->hqd"}> : () -> ()
    %cst_39 = arith.constant dense<0.000000e+00> : vector<4x5x16xf32>
    %166 = tpu.matmul %165, %142, %cst_39 {dimension_numbers = #tpu.dot_dimension_numbers<[2], [1], [1], [2], [0, 0, 0, 1, 1, 2], [0], [0]>} : vector<4x5x5xbf16>, vector<4x5x16xbf16>, vector<4x5x16xf32> -> vector<4x5x16xf32>
    "tpu.trace_stop"() : () -> ()
    %167 = vector.extract_strided_slice %166 {offsets = [0, 0, 0], sizes = [1, 5, 16], strides = [1, 1, 1]} : vector<4x5x16xf32> to vector<1x5x16xf32>
    %168 = vector.shape_cast %167 : vector<1x5x16xf32> to vector<5x16xf32>
    %169 = vector.extract_strided_slice %166 {offsets = [1, 0, 0], sizes = [1, 5, 16], strides = [1, 1, 1]} : vector<4x5x16xf32> to vector<1x5x16xf32>
    %170 = vector.shape_cast %169 : vector<1x5x16xf32> to vector<5x16xf32>
    %171 = vector.extract_strided_slice %166 {offsets = [2, 0, 0], sizes = [1, 5, 16], strides = [1, 1, 1]} : vector<4x5x16xf32> to vector<1x5x16xf32>
    %172 = vector.shape_cast %171 : vector<1x5x16xf32> to vector<5x16xf32>
    %173 = vector.extract_strided_slice %166 {offsets = [3, 0, 0], sizes = [1, 5, 16], strides = [1, 1, 1]} : vector<4x5x16xf32> to vector<1x5x16xf32>
    %174 = vector.shape_cast %173 : vector<1x5x16xf32> to vector<5x16xf32>
    %175 = tpu.concatenate %168, %170, %172, %174 in 1 : vector<5x16xf32>, vector<5x16xf32>, vector<5x16xf32>, vector<5x16xf32> -> vector<5x64xf32>
    %c5 = arith.constant 5 : index
    %c0_40 = arith.constant 0 : index
    %176 = vector.load %arg23[%c5, %c0_40] : memref<15x64xf32, #tpu.memory_space<vmem>>, vector<5x64xf32>
    tpu.vector_store %arg23[%c5, %c0_40], %175 {strides = array<i32>} : memref<15x64xf32, #tpu.memory_space<vmem>>, vector<5x64xf32>,
    %177 = vector.extract_strided_slice %46 {offsets = [10, 0], sizes = [5, 192], strides = [1, 1]} : vector<15x192xf32> to vector<5x192xf32>
    %178 = vector.extract_strided_slice %177 {offsets = [0, 0], sizes = [5, 16], strides = [1, 1]} : vector<5x192xf32> to vector<5x16xf32>
    %179 = vector.extract_strided_slice %177 {offsets = [0, 16], sizes = [5, 16], strides = [1, 1]} : vector<5x192xf32> to vector<5x16xf32>
    %180 = vector.extract_strided_slice %177 {offsets = [0, 32], sizes = [5, 16], strides = [1, 1]} : vector<5x192xf32> to vector<5x16xf32>
    %181 = vector.extract_strided_slice %177 {offsets = [0, 48], sizes = [5, 16], strides = [1, 1]} : vector<5x192xf32> to vector<5x16xf32>
    %182 = vector.shape_cast %178 : vector<5x16xf32> to vector<1x5x16xf32>
    %183 = vector.shape_cast %179 : vector<5x16xf32> to vector<1x5x16xf32>
    %184 = vector.shape_cast %180 : vector<5x16xf32> to vector<1x5x16xf32>
    %185 = vector.shape_cast %181 : vector<5x16xf32> to vector<1x5x16xf32>
    %186 = tpu.concatenate %182, %183, %184, %185 in 0 : vector<1x5x16xf32>, vector<1x5x16xf32>, vector<1x5x16xf32>, vector<1x5x16xf32> -> vector<4x5x16xf32>
    %187 = arith.truncf %186 : vector<4x5x16xf32> to vector<4x5x16xbf16>
    %188 = vector.extract_strided_slice %177 {offsets = [0, 64], sizes = [5, 16], strides = [1, 1]} : vector<5x192xf32> to vector<5x16xf32>
    %189 = vector.extract_strided_slice %177 {offsets = [0, 80], sizes = [5, 16], strides = [1, 1]} : vector<5x192xf32> to vector<5x16xf32>
    %190 = vector.extract_strided_slice %177 {offsets = [0, 96], sizes = [5, 16], strides = [1, 1]} : vector<5x192xf32> to vector<5x16xf32>
    %191 = vector.extract_strided_slice %177 {offsets = [0, 112], sizes = [5, 16], strides = [1, 1]} : vector<5x192xf32> to vector<5x16xf32>
    %192 = vector.shape_cast %188 : vector<5x16xf32> to vector<1x5x16xf32>
    %193 = vector.shape_cast %189 : vector<5x16xf32> to vector<1x5x16xf32>
    %194 = vector.shape_cast %190 : vector<5x16xf32> to vector<1x5x16xf32>
    %195 = vector.shape_cast %191 : vector<5x16xf32> to vector<1x5x16xf32>
    %196 = tpu.concatenate %192, %193, %194, %195 in 0 : vector<1x5x16xf32>, vector<1x5x16xf32>, vector<1x5x16xf32>, vector<1x5x16xf32> -> vector<4x5x16xf32>
    %197 = arith.truncf %196 : vector<4x5x16xf32> to vector<4x5x16xbf16>
    %198 = vector.extract_strided_slice %177 {offsets = [0, 128], sizes = [5, 16], strides = [1, 1]} : vector<5x192xf32> to vector<5x16xf32>
    %199 = vector.extract_strided_slice %177 {offsets = [0, 144], sizes = [5, 16], strides = [1, 1]} : vector<5x192xf32> to vector<5x16xf32>
    %200 = vector.extract_strided_slice %177 {offsets = [0, 160], sizes = [5, 16], strides = [1, 1]} : vector<5x192xf32> to vector<5x16xf32>
    %201 = vector.extract_strided_slice %177 {offsets = [0, 176], sizes = [5, 16], strides = [1, 1]} : vector<5x192xf32> to vector<5x16xf32>
    %202 = vector.shape_cast %198 : vector<5x16xf32> to vector<1x5x16xf32>
    %203 = vector.shape_cast %199 : vector<5x16xf32> to vector<1x5x16xf32>
    %204 = vector.shape_cast %200 : vector<5x16xf32> to vector<1x5x16xf32>
    %205 = vector.shape_cast %201 : vector<5x16xf32> to vector<1x5x16xf32>
    %206 = tpu.concatenate %202, %203, %204, %205 in 0 : vector<1x5x16xf32>, vector<1x5x16xf32>, vector<1x5x16xf32>, vector<1x5x16xf32> -> vector<4x5x16xf32>
    %207 = arith.truncf %206 : vector<4x5x16xf32> to vector<4x5x16xbf16>
    "tpu.trace_start"() <{level = 10 : i32, message = "hqd,hkd->hqk"}> : () -> ()
    %cst_41 = arith.constant dense<0.000000e+00> : vector<4x5x5xf32>
    %208 = tpu.matmul %187, %197, %cst_41 {dimension_numbers = #tpu.dot_dimension_numbers<[2], [2], [1], [1], [0, 0, 0, 1, 1, 1], [0], [0]>} : vector<4x5x16xbf16>, vector<4x5x16xbf16>, vector<4x5x5xf32> -> vector<4x5x5xf32>
    "tpu.trace_stop"() : () -> ()
    %cst_42 = arith.constant 2.500000e-01 : f32
    %209 = vector.broadcast %cst_42 : f32 to vector<4x5x5xf32>
    %210 = arith.mulf %208, %209 : vector<4x5x5xf32>
    %c2 = arith.constant 2 : index
    %c0_43 = arith.constant 0 : index
    %211 = vector.load %arg3[%c2, %c0_43] : memref<3x5xi32, #tpu.memory_space<vmem>>, vector<1x5xi32>
    %212 = arith.sitofp %211 : vector<1x5xi32> to vector<1x5xf32>
    %cst_44 = arith.constant 1.000000e+00 : f32
    %213 = vector.broadcast %cst_44 : f32 to vector<1x5xf32>
    %214 = arith.subf %213, %212 : vector<1x5xf32>
    %cst_45 = arith.constant -1.000000e+09 : f32
    %215 = vector.broadcast %cst_45 : f32 to vector<1x5xf32>
    %216 = arith.mulf %214, %215 : vector<1x5xf32>
    %217 = vector.shape_cast %216 : vector<1x5xf32> to vector<1x1x5xf32>
    %218 = vector.broadcast %217 : vector<1x1x5xf32> to vector<4x5x5xf32>
    %219 = arith.addf %210, %218 : vector<4x5x5xf32>
    %cst_46 = arith.constant dense<0xFF800000> : vector<4x5xf32>
    %220 = vector.multi_reduction <maximumf>, %219, %cst_46 [2] : vector<4x5x5xf32> to vector<4x5xf32>
    %221 = vector.shape_cast %220 : vector<4x5xf32> to vector<4x5x1xf32>
    %222 = vector.broadcast %221 : vector<4x5x1xf32> to vector<4x5x5xf32>
    %223 = arith.subf %219, %222 : vector<4x5x5xf32>
    %224 = math.exp %223 : vector<4x5x5xf32>
    %cst_47 = arith.constant dense<0.000000e+00> : vector<4x5xf32>
    %225 = vector.multi_reduction <add>, %224, %cst_47 [2] : vector<4x5x5xf32> to vector<4x5xf32>
    %226 = vector.shape_cast %225 : vector<4x5xf32> to vector<4x5x1xf32>
    %227 = tpu.reciprocal %226 {approx = true} : vector<4x5x1xf32> -> vector<4x5x1xf32>
    %228 = vector.broadcast %227 : vector<4x5x1xf32> to vector<4x5x5xf32>
    %229 = arith.mulf %224, %228 : vector<4x5x5xf32>
    %230 = arith.truncf %229 : vector<4x5x5xf32> to vector<4x5x5xbf16>
    "tpu.trace_start"() <{level = 10 : i32, message = "hqk,hkd->hqd"}> : () -> ()
    %cst_48 = arith.constant dense<0.000000e+00> : vector<4x5x16xf32>
    %231 = tpu.matmul %230, %207, %cst_48 {dimension_numbers = #tpu.dot_dimension_numbers<[2], [1], [1], [2], [0, 0, 0, 1, 1, 2], [0], [0]>} : vector<4x5x5xbf16>, vector<4x5x16xbf16>, vector<4x5x16xf32> -> vector<4x5x16xf32>
    "tpu.trace_stop"() : () -> ()
    %232 = vector.extract_strided_slice %231 {offsets = [0, 0, 0], sizes = [1, 5, 16], strides = [1, 1, 1]} : vector<4x5x16xf32> to vector<1x5x16xf32>
    %233 = vector.shape_cast %232 : vector<1x5x16xf32> to vector<5x16xf32>
    %234 = vector.extract_strided_slice %231 {offsets = [1, 0, 0], sizes = [1, 5, 16], strides = [1, 1, 1]} : vector<4x5x16xf32> to vector<1x5x16xf32>
    %235 = vector.shape_cast %234 : vector<1x5x16xf32> to vector<5x16xf32>
    %236 = vector.extract_strided_slice %231 {offsets = [2, 0, 0], sizes = [1, 5, 16], strides = [1, 1, 1]} : vector<4x5x16xf32> to vector<1x5x16xf32>
    %237 = vector.shape_cast %236 : vector<1x5x16xf32> to vector<5x16xf32>
    %238 = vector.extract_strided_slice %231 {offsets = [3, 0, 0], sizes = [1, 5, 16], strides = [1, 1, 1]} : vector<4x5x16xf32> to vector<1x5x16xf32>
    %239 = vector.shape_cast %238 : vector<1x5x16xf32> to vector<5x16xf32>
    %240 = tpu.concatenate %233, %235, %237, %239 in 1 : vector<5x16xf32>, vector<5x16xf32>, vector<5x16xf32>, vector<5x16xf32> -> vector<5x64xf32>
    %c10 = arith.constant 10 : index
    %c0_49 = arith.constant 0 : index
    %241 = vector.load %arg23[%c10, %c0_49] : memref<15x64xf32, #tpu.memory_space<vmem>>, vector<5x64xf32>
    tpu.vector_store %arg23[%c10, %c0_49], %240 {strides = array<i32>} : memref<15x64xf32, #tpu.memory_space<vmem>>, vector<5x64xf32>,
    %c0_50 = arith.constant 0 : index
    %c0_51 = arith.constant 0 : index
    %242 = vector.load %arg23[%c0_50, %c0_51] : memref<15x64xf32, #tpu.memory_space<vmem>>, vector<15x64xf32>
    %243 = arith.truncf %242 : vector<15x64xf32> to vector<15x64xbf16>
    %c0_52 = arith.constant 0 : index
    %c0_53 = arith.constant 0 : index
    %c0_54 = arith.constant 0 : index
    %244 = vector.load %arg9[%c0_52, %c0_53, %c0_54] : memref<2x64x64xbf16, #tpu.memory_space<vmem>>, vector<1x64x64xbf16>
    %245 = vector.shape_cast %244 : vector<1x64x64xbf16> to vector<64x64xbf16>
    %cst_55 = arith.constant dense<0.000000e+00> : vector<15x64xf32>
    %246 = tpu.matmul %243, %245, %cst_55 {dimension_numbers = #tpu.dot_dimension_numbers<[1], [0], [0], [1], [0, 0, 1, 1], [], []>} : vector<15x64xbf16>, vector<64x64xbf16>, vector<15x64xf32> -> vector<15x64xf32>
    %c0_56 = arith.constant 0 : index
    %c0_57 = arith.constant 0 : index
    %c0_58 = arith.constant 0 : index
    %247 = vector.load %arg10[%c0_56, %c0_57, %c0_58] : memref<2x1x64xf32, #tpu.memory_space<vmem>>, vector<1x1x64xf32>
    %248 = vector.shape_cast %247 : vector<1x1x64xf32> to vector<1x64xf32>
    %249 = vector.broadcast %248 : vector<1x64xf32> to vector<15x64xf32>
    %250 = arith.addf %246, %249 : vector<15x64xf32>
    %251 = arith.addf %38, %250 : vector<15x64xf32>
    %c0_59 = arith.constant 0 : index
    %c0_60 = arith.constant 0 : index
    %c0_61 = arith.constant 0 : index
    %252 = vector.load %arg11[%c0_59, %c0_60, %c0_61] : memref<2x1x64xf32, #tpu.memory_space<vmem>>, vector<1x1x64xf32>
    %253 = vector.shape_cast %252 : vector<1x1x64xf32> to vector<1x64xf32>
    %c0_62 = arith.constant 0 : index
    %c0_63 = arith.constant 0 : index
    %c0_64 = arith.constant 0 : index
    %254 = vector.load %arg12[%c0_62, %c0_63, %c0_64] : memref<2x1x64xf32, #tpu.memory_space<vmem>>, vector<1x1x64xf32>
    %255 = vector.shape_cast %254 : vector<1x1x64xf32> to vector<1x64xf32>
    %cst_65 = arith.constant dense<0.000000e+00> : vector<15xf32>
    %256 = vector.multi_reduction <add>, %251, %cst_65 [1] : vector<15x64xf32> to vector<15xf32>
    %257 = vector.shape_cast %256 : vector<15xf32> to vector<15x1xf32>
    %cst_66 = arith.constant 6.400000e+01 : f32
    %258 = vector.broadcast %cst_66 : f32 to vector<15x1xf32>
    %259 = arith.divf %257, %258 : vector<15x1xf32>
    %260 = vector.broadcast %259 : vector<15x1xf32> to vector<15x64xf32>
    %261 = arith.subf %251, %260 : vector<15x64xf32>
    %262 = arith.mulf %261, %261 : vector<15x64xf32>
    %cst_67 = arith.constant dense<0.000000e+00> : vector<15xf32>
    %263 = vector.multi_reduction <add>, %262, %cst_67 [1] : vector<15x64xf32> to vector<15xf32>
    %264 = vector.shape_cast %263 : vector<15xf32> to vector<15x1xf32>
    %cst_68 = arith.constant 6.400000e+01 : f32
    %265 = vector.broadcast %cst_68 : f32 to vector<15x1xf32>
    %266 = arith.divf %264, %265 : vector<15x1xf32>
    %267 = vector.broadcast %259 : vector<15x1xf32> to vector<15x64xf32>
    %268 = arith.subf %251, %267 : vector<15x64xf32>
    %cst_69 = arith.constant 9.99999996E-13 : f32
    %269 = vector.broadcast %cst_69 : f32 to vector<15x1xf32>
    %270 = arith.addf %266, %269 : vector<15x1xf32>
    %271 = math.rsqrt %270 : vector<15x1xf32>
    %272 = vector.broadcast %271 : vector<15x1xf32> to vector<15x64xf32>
    %273 = arith.mulf %268, %272 : vector<15x64xf32>
    %274 = vector.broadcast %253 : vector<1x64xf32> to vector<15x64xf32>
    %275 = arith.mulf %273, %274 : vector<15x64xf32>
    %276 = vector.broadcast %255 : vector<1x64xf32> to vector<15x64xf32>
    %277 = arith.addf %275, %276 : vector<15x64xf32>
    %278 = arith.truncf %277 : vector<15x64xf32> to vector<15x64xbf16>
    %c0_70 = arith.constant 0 : index
    %c0_71 = arith.constant 0 : index
    %c0_72 = arith.constant 0 : index
    %279 = vector.load %arg13[%c0_70, %c0_71, %c0_72] : memref<2x64x128xbf16, #tpu.memory_space<vmem>>, vector<1x64x128xbf16>
    %280 = vector.shape_cast %279 : vector<1x64x128xbf16> to vector<64x128xbf16>
    %cst_73 = arith.constant dense<0.000000e+00> : vector<15x128xf32>
    %281 = tpu.matmul %278, %280, %cst_73 {dimension_numbers = #tpu.dot_dimension_numbers<[1], [0], [0], [1], [0, 0, 1, 1], [], []>} : vector<15x64xbf16>, vector<64x128xbf16>, vector<15x128xf32> -> vector<15x128xf32>
    %c0_74 = arith.constant 0 : index
    %c0_75 = arith.constant 0 : index
    %c0_76 = arith.constant 0 : index
    %282 = vector.load %arg14[%c0_74, %c0_75, %c0_76] : memref<2x1x128xf32, #tpu.memory_space<vmem>>, vector<1x1x128xf32>
    %283 = vector.shape_cast %282 : vector<1x1x128xf32> to vector<1x128xf32>
    %284 = vector.broadcast %283 : vector<1x128xf32> to vector<15x128xf32>
    %285 = arith.addf %281, %284 : vector<15x128xf32>
    %cst_77 = arith.constant 5.000000e-01 : f32
    %286 = vector.broadcast %cst_77 : f32 to vector<15x128xf32>
    %287 = arith.mulf %286, %285 : vector<15x128xf32>
    %cst_78 = arith.constant 4.471500e-02 : f32
    %288 = vector.broadcast %cst_78 : f32 to vector<15x128xf32>
    %289 = arith.mulf %288, %285 : vector<15x128xf32>
    %290 = arith.mulf %289, %285 : vector<15x128xf32>
    %291 = arith.mulf %290, %285 : vector<15x128xf32>
    %292 = arith.addf %285, %291 : vector<15x128xf32>
    %cst_79 = arith.constant 0.797884583 : f32
    %293 = vector.broadcast %cst_79 : f32 to vector<15x128xf32>
    %294 = arith.mulf %293, %292 : vector<15x128xf32>
    %295 = math.tanh %294 : vector<15x128xf32>
    %cst_80 = arith.constant 1.000000e+00 : f32
    %296 = vector.broadcast %cst_80 : f32 to vector<15x128xf32>
    %297 = arith.addf %296, %295 : vector<15x128xf32>
    %298 = arith.mulf %287, %297 : vector<15x128xf32>
    %299 = arith.truncf %298 : vector<15x128xf32> to vector<15x128xbf16>
    %c0_81 = arith.constant 0 : index
    %c0_82 = arith.constant 0 : index
    %c0_83 = arith.constant 0 : index
    %300 = vector.load %arg15[%c0_81, %c0_82, %c0_83] : memref<2x128x64xbf16, #tpu.memory_space<vmem>>, vector<1x128x64xbf16>
    %301 = vector.shape_cast %300 : vector<1x128x64xbf16> to vector<128x64xbf16>
    %cst_84 = arith.constant dense<0.000000e+00> : vector<15x64xf32>
    %302 = tpu.matmul %299, %301, %cst_84 {dimension_numbers = #tpu.dot_dimension_numbers<[1], [0], [0], [1], [0, 0, 1, 1], [], []>} : vector<15x128xbf16>, vector<128x64xbf16>, vector<15x64xf32> -> vector<15x64xf32>
    %303 = arith.addf %277, %302 : vector<15x64xf32>
    %c0_85 = arith.constant 0 : index
    %c0_86 = arith.constant 0 : index
    %c0_87 = arith.constant 0 : index
    %304 = vector.load %arg16[%c0_85, %c0_86, %c0_87] : memref<2x1x64xf32, #tpu.memory_space<vmem>>, vector<1x1x64xf32>
    %305 = vector.shape_cast %304 : vector<1x1x64xf32> to vector<1x64xf32>
    %306 = vector.broadcast %305 : vector<1x64xf32> to vector<15x64xf32>
    %307 = arith.addf %303, %306 : vector<15x64xf32>
    %c0_88 = arith.constant 0 : index
    %c0_89 = arith.constant 0 : index
    %c0_90 = arith.constant 0 : index
    %308 = vector.load %arg17[%c0_88, %c0_89, %c0_90] : memref<2x1x64xf32, #tpu.memory_space<vmem>>, vector<1x1x64xf32>
    %309 = vector.shape_cast %308 : vector<1x1x64xf32> to vector<1x64xf32>
    %c0_91 = arith.constant 0 : index
    %c0_92 = arith.constant 0 : index
    %c0_93 = arith.constant 0 : index
    %310 = vector.load %arg18[%c0_91, %c0_92, %c0_93] : memref<2x1x64xf32, #tpu.memory_space<vmem>>, vector<1x1x64xf32>
    %311 = vector.shape_cast %310 : vector<1x1x64xf32> to vector<1x64xf32>
    %cst_94 = arith.constant dense<0.000000e+00> : vector<15xf32>
    %312 = vector.multi_reduction <add>, %307, %cst_94 [1] : vector<15x64xf32> to vector<15xf32>
    %313 = vector.shape_cast %312 : vector<15xf32> to vector<15x1xf32>
    %cst_95 = arith.constant 6.400000e+01 : f32
    %314 = vector.broadcast %cst_95 : f32 to vector<15x1xf32>
    %315 = arith.divf %313, %314 : vector<15x1xf32>
    %316 = vector.broadcast %315 : vector<15x1xf32> to vector<15x64xf32>
    %317 = arith.subf %307, %316 : vector<15x64xf32>
    %318 = arith.mulf %317, %317 : vector<15x64xf32>
    %cst_96 = arith.constant dense<0.000000e+00> : vector<15xf32>
    %319 = vector.multi_reduction <add>, %318, %cst_96 [1] : vector<15x64xf32> to vector<15xf32>
    %320 = vector.shape_cast %319 : vector<15xf32> to vector<15x1xf32>
    %cst_97 = arith.constant 6.400000e+01 : f32
    %321 = vector.broadcast %cst_97 : f32 to vector<15x1xf32>
    %322 = arith.divf %320, %321 : vector<15x1xf32>
    %323 = vector.broadcast %315 : vector<15x1xf32> to vector<15x64xf32>
    %324 = arith.subf %307, %323 : vector<15x64xf32>
    %cst_98 = arith.constant 9.99999996E-13 : f32
    %325 = vector.broadcast %cst_98 : f32 to vector<15x1xf32>
    %326 = arith.addf %322, %325 : vector<15x1xf32>
    %327 = math.rsqrt %326 : vector<15x1xf32>
    %328 = vector.broadcast %327 : vector<15x1xf32> to vector<15x64xf32>
    %329 = arith.mulf %324, %328 : vector<15x64xf32>
    %330 = vector.broadcast %309 : vector<1x64xf32> to vector<15x64xf32>
    %331 = arith.mulf %329, %330 : vector<15x64xf32>
    %332 = vector.broadcast %311 : vector<1x64xf32> to vector<15x64xf32>
    %333 = arith.addf %331, %332 : vector<15x64xf32>
    %334 = arith.truncf %333 : vector<15x64xf32> to vector<15x64xbf16>
    %c1_99 = arith.constant 1 : index
    %c0_100 = arith.constant 0 : index
    %c0_101 = arith.constant 0 : index
    %335 = vector.load %arg7[%c1_99, %c0_100, %c0_101] : memref<2x64x192xbf16, #tpu.memory_space<vmem>>, vector<1x64x192xbf16>
    %336 = vector.shape_cast %335 : vector<1x64x192xbf16> to vector<64x192xbf16>
    %cst_102 = arith.constant dense<0.000000e+00> : vector<15x192xf32>
    %337 = tpu.matmul %334, %336, %cst_102 {dimension_numbers = #tpu.dot_dimension_numbers<[1], [0], [0], [1], [0, 0, 1, 1], [], []>} : vector<15x64xbf16>, vector<64x192xbf16>, vector<15x192xf32> -> vector<15x192xf32>
    %c1_103 = arith.constant 1 : index
    %c0_104 = arith.constant 0 : index
    %c0_105 = arith.constant 0 : index
    %338 = vector.load %arg8[%c1_103, %c0_104, %c0_105] : memref<2x1x192xf32, #tpu.memory_space<vmem>>, vector<1x1x192xf32>
    %339 = vector.shape_cast %338 : vector<1x1x192xf32> to vector<1x192xf32>
    %340 = vector.broadcast %339 : vector<1x192xf32> to vector<15x192xf32>
    %341 = arith.addf %337, %340 : vector<15x192xf32>
    %342 = vector.extract_strided_slice %341 {offsets = [0, 0], sizes = [5, 192], strides = [1, 1]} : vector<15x192xf32> to vector<5x192xf32>
    %343 = vector.extract_strided_slice %342 {offsets = [0, 0], sizes = [5, 16], strides = [1, 1]} : vector<5x192xf32> to vector<5x16xf32>
    %344 = vector.extract_strided_slice %342 {offsets = [0, 16], sizes = [5, 16], strides = [1, 1]} : vector<5x192xf32> to vector<5x16xf32>
    %345 = vector.extract_strided_slice %342 {offsets = [0, 32], sizes = [5, 16], strides = [1, 1]} : vector<5x192xf32> to vector<5x16xf32>
    %346 = vector.extract_strided_slice %342 {offsets = [0, 48], sizes = [5, 16], strides = [1, 1]} : vector<5x192xf32> to vector<5x16xf32>
    %347 = vector.shape_cast %343 : vector<5x16xf32> to vector<1x5x16xf32>
    %348 = vector.shape_cast %344 : vector<5x16xf32> to vector<1x5x16xf32>
    %349 = vector.shape_cast %345 : vector<5x16xf32> to vector<1x5x16xf32>
    %350 = vector.shape_cast %346 : vector<5x16xf32> to vector<1x5x16xf32>
    %351 = tpu.concatenate %347, %348, %349, %350 in 0 : vector<1x5x16xf32>, vector<1x5x16xf32>, vector<1x5x16xf32>, vector<1x5x16xf32> -> vector<4x5x16xf32>
    %352 = arith.truncf %351 : vector<4x5x16xf32> to vector<4x5x16xbf16>
    %353 = vector.extract_strided_slice %342 {offsets = [0, 64], sizes = [5, 16], strides = [1, 1]} : vector<5x192xf32> to vector<5x16xf32>
    %354 = vector.extract_strided_slice %342 {offsets = [0, 80], sizes = [5, 16], strides = [1, 1]} : vector<5x192xf32> to vector<5x16xf32>
    %355 = vector.extract_strided_slice %342 {offsets = [0, 96], sizes = [5, 16], strides = [1, 1]} : vector<5x192xf32> to vector<5x16xf32>
    %356 = vector.extract_strided_slice %342 {offsets = [0, 112], sizes = [5, 16], strides = [1, 1]} : vector<5x192xf32> to vector<5x16xf32>
    %357 = vector.shape_cast %353 : vector<5x16xf32> to vector<1x5x16xf32>
    %358 = vector.shape_cast %354 : vector<5x16xf32> to vector<1x5x16xf32>
    %359 = vector.shape_cast %355 : vector<5x16xf32> to vector<1x5x16xf32>
    %360 = vector.shape_cast %356 : vector<5x16xf32> to vector<1x5x16xf32>
    %361 = tpu.concatenate %357, %358, %359, %360 in 0 : vector<1x5x16xf32>, vector<1x5x16xf32>, vector<1x5x16xf32>, vector<1x5x16xf32> -> vector<4x5x16xf32>
    %362 = arith.truncf %361 : vector<4x5x16xf32> to vector<4x5x16xbf16>
    %363 = vector.extract_strided_slice %342 {offsets = [0, 128], sizes = [5, 16], strides = [1, 1]} : vector<5x192xf32> to vector<5x16xf32>
    %364 = vector.extract_strided_slice %342 {offsets = [0, 144], sizes = [5, 16], strides = [1, 1]} : vector<5x192xf32> to vector<5x16xf32>
    %365 = vector.extract_strided_slice %342 {offsets = [0, 160], sizes = [5, 16], strides = [1, 1]} : vector<5x192xf32> to vector<5x16xf32>
    %366 = vector.extract_strided_slice %342 {offsets = [0, 176], sizes = [5, 16], strides = [1, 1]} : vector<5x192xf32> to vector<5x16xf32>
    %367 = vector.shape_cast %363 : vector<5x16xf32> to vector<1x5x16xf32>
    %368 = vector.shape_cast %364 : vector<5x16xf32> to vector<1x5x16xf32>
    %369 = vector.shape_cast %365 : vector<5x16xf32> to vector<1x5x16xf32>
    %370 = vector.shape_cast %366 : vector<5x16xf32> to vector<1x5x16xf32>
    %371 = tpu.concatenate %367, %368, %369, %370 in 0 : vector<1x5x16xf32>, vector<1x5x16xf32>, vector<1x5x16xf32>, vector<1x5x16xf32> -> vector<4x5x16xf32>
    %372 = arith.truncf %371 : vector<4x5x16xf32> to vector<4x5x16xbf16>
    "tpu.trace_start"() <{level = 10 : i32, message = "hqd,hkd->hqk"}> : () -> ()
    %cst_106 = arith.constant dense<0.000000e+00> : vector<4x5x5xf32>
    %373 = tpu.matmul %352, %362, %cst_106 {dimension_numbers = #tpu.dot_dimension_numbers<[2], [2], [1], [1], [0, 0, 0, 1, 1, 1], [0], [0]>} : vector<4x5x16xbf16>, vector<4x5x16xbf16>, vector<4x5x5xf32> -> vector<4x5x5xf32>
    "tpu.trace_stop"() : () -> ()
    %cst_107 = arith.constant 2.500000e-01 : f32
    %374 = vector.broadcast %cst_107 : f32 to vector<4x5x5xf32>
    %375 = arith.mulf %373, %374 : vector<4x5x5xf32>
    %c0_108 = arith.constant 0 : index
    %c0_109 = arith.constant 0 : index
    %376 = vector.load %arg3[%c0_108, %c0_109] : memref<3x5xi32, #tpu.memory_space<vmem>>, vector<1x5xi32>
    %377 = arith.sitofp %376 : vector<1x5xi32> to vector<1x5xf32>
    %cst_110 = arith.constant 1.000000e+00 : f32
    %378 = vector.broadcast %cst_110 : f32 to vector<1x5xf32>
    %379 = arith.subf %378, %377 : vector<1x5xf32>
    %cst_111 = arith.constant -1.000000e+09 : f32
    %380 = vector.broadcast %cst_111 : f32 to vector<1x5xf32>
    %381 = arith.mulf %379, %380 : vector<1x5xf32>
    %382 = vector.shape_cast %381 : vector<1x5xf32> to vector<1x1x5xf32>
    %383 = vector.broadcast %382 : vector<1x1x5xf32> to vector<4x5x5xf32>
    %384 = arith.addf %375, %383 : vector<4x5x5xf32>
    %cst_112 = arith.constant dense<0xFF800000> : vector<4x5xf32>
    %385 = vector.multi_reduction <maximumf>, %384, %cst_112 [2] : vector<4x5x5xf32> to vector<4x5xf32>
    %386 = vector.shape_cast %385 : vector<4x5xf32> to vector<4x5x1xf32>
    %387 = vector.broadcast %386 : vector<4x5x1xf32> to vector<4x5x5xf32>
    %388 = arith.subf %384, %387 : vector<4x5x5xf32>
    %389 = math.exp %388 : vector<4x5x5xf32>
    %cst_113 = arith.constant dense<0.000000e+00> : vector<4x5xf32>
    %390 = vector.multi_reduction <add>, %389, %cst_113 [2] : vector<4x5x5xf32> to vector<4x5xf32>
    %391 = vector.shape_cast %390 : vector<4x5xf32> to vector<4x5x1xf32>
    %392 = tpu.reciprocal %391 {approx = true} : vector<4x5x1xf32> -> vector<4x5x1xf32>
    %393 = vector.broadcast %392 : vector<4x5x1xf32> to vector<4x5x5xf32>
    %394 = arith.mulf %389, %393 : vector<4x5x5xf32>
    %395 = arith.truncf %394 : vector<4x5x5xf32> to vector<4x5x5xbf16>
    "tpu.trace_start"() <{level = 10 : i32, message = "hqk,hkd->hqd"}> : () -> ()
    %cst_114 = arith.constant dense<0.000000e+00> : vector<4x5x16xf32>
    %396 = tpu.matmul %395, %372, %cst_114 {dimension_numbers = #tpu.dot_dimension_numbers<[2], [1], [1], [2], [0, 0, 0, 1, 1, 2], [0], [0]>} : vector<4x5x5xbf16>, vector<4x5x16xbf16>, vector<4x5x16xf32> -> vector<4x5x16xf32>
    "tpu.trace_stop"() : () -> ()
    %397 = vector.extract_strided_slice %396 {offsets = [0, 0, 0], sizes = [1, 5, 16], strides = [1, 1, 1]} : vector<4x5x16xf32> to vector<1x5x16xf32>
    %398 = vector.shape_cast %397 : vector<1x5x16xf32> to vector<5x16xf32>
    %399 = vector.extract_strided_slice %396 {offsets = [1, 0, 0], sizes = [1, 5, 16], strides = [1, 1, 1]} : vector<4x5x16xf32> to vector<1x5x16xf32>
    %400 = vector.shape_cast %399 : vector<1x5x16xf32> to vector<5x16xf32>
    %401 = vector.extract_strided_slice %396 {offsets = [2, 0, 0], sizes = [1, 5, 16], strides = [1, 1, 1]} : vector<4x5x16xf32> to vector<1x5x16xf32>
    %402 = vector.shape_cast %401 : vector<1x5x16xf32> to vector<5x16xf32>
    %403 = vector.extract_strided_slice %396 {offsets = [3, 0, 0], sizes = [1, 5, 16], strides = [1, 1, 1]} : vector<4x5x16xf32> to vector<1x5x16xf32>
    %404 = vector.shape_cast %403 : vector<1x5x16xf32> to vector<5x16xf32>
    %405 = tpu.concatenate %398, %400, %402, %404 in 1 : vector<5x16xf32>, vector<5x16xf32>, vector<5x16xf32>, vector<5x16xf32> -> vector<5x64xf32>
    %c0_115 = arith.constant 0 : index
    %c0_116 = arith.constant 0 : index
    %406 = vector.load %arg23[%c0_115, %c0_116] : memref<15x64xf32, #tpu.memory_space<vmem>>, vector<5x64xf32>
    tpu.vector_store %arg23[%c0_115, %c0_116], %405 {strides = array<i32>} : memref<15x64xf32, #tpu.memory_space<vmem>>, vector<5x64xf32>,
    %407 = vector.extract_strided_slice %341 {offsets = [5, 0], sizes = [5, 192], strides = [1, 1]} : vector<15x192xf32> to vector<5x192xf32>
    %408 = vector.extract_strided_slice %407 {offsets = [0, 0], sizes = [5, 16], strides = [1, 1]} : vector<5x192xf32> to vector<5x16xf32>
    %409 = vector.extract_strided_slice %407 {offsets = [0, 16], sizes = [5, 16], strides = [1, 1]} : vector<5x192xf32> to vector<5x16xf32>
    %410 = vector.extract_strided_slice %407 {offsets = [0, 32], sizes = [5, 16], strides = [1, 1]} : vector<5x192xf32> to vector<5x16xf32>
    %411 = vector.extract_strided_slice %407 {offsets = [0, 48], sizes = [5, 16], strides = [1, 1]} : vector<5x192xf32> to vector<5x16xf32>
    %412 = vector.shape_cast %408 : vector<5x16xf32> to vector<1x5x16xf32>
    %413 = vector.shape_cast %409 : vector<5x16xf32> to vector<1x5x16xf32>
    %414 = vector.shape_cast %410 : vector<5x16xf32> to vector<1x5x16xf32>
    %415 = vector.shape_cast %411 : vector<5x16xf32> to vector<1x5x16xf32>
    %416 = tpu.concatenate %412, %413, %414, %415 in 0 : vector<1x5x16xf32>, vector<1x5x16xf32>, vector<1x5x16xf32>, vector<1x5x16xf32> -> vector<4x5x16xf32>
    %417 = arith.truncf %416 : vector<4x5x16xf32> to vector<4x5x16xbf16>
    %418 = vector.extract_strided_slice %407 {offsets = [0, 64], sizes = [5, 16], strides = [1, 1]} : vector<5x192xf32> to vector<5x16xf32>
    %419 = vector.extract_strided_slice %407 {offsets = [0, 80], sizes = [5, 16], strides = [1, 1]} : vector<5x192xf32> to vector<5x16xf32>
    %420 = vector.extract_strided_slice %407 {offsets = [0, 96], sizes = [5, 16], strides = [1, 1]} : vector<5x192xf32> to vector<5x16xf32>
    %421 = vector.extract_strided_slice %407 {offsets = [0, 112], sizes = [5, 16], strides = [1, 1]} : vector<5x192xf32> to vector<5x16xf32>
    %422 = vector.shape_cast %418 : vector<5x16xf32> to vector<1x5x16xf32>
    %423 = vector.shape_cast %419 : vector<5x16xf32> to vector<1x5x16xf32>
    %424 = vector.shape_cast %420 : vector<5x16xf32> to vector<1x5x16xf32>
    %425 = vector.shape_cast %421 : vector<5x16xf32> to vector<1x5x16xf32>
    %426 = tpu.concatenate %422, %423, %424, %425 in 0 : vector<1x5x16xf32>, vector<1x5x16xf32>, vector<1x5x16xf32>, vector<1x5x16xf32> -> vector<4x5x16xf32>
    %427 = arith.truncf %426 : vector<4x5x16xf32> to vector<4x5x16xbf16>
    %428 = vector.extract_strided_slice %407 {offsets = [0, 128], sizes = [5, 16], strides = [1, 1]} : vector<5x192xf32> to vector<5x16xf32>
    %429 = vector.extract_strided_slice %407 {offsets = [0, 144], sizes = [5, 16], strides = [1, 1]} : vector<5x192xf32> to vector<5x16xf32>
    %430 = vector.extract_strided_slice %407 {offsets = [0, 160], sizes = [5, 16], strides = [1, 1]} : vector<5x192xf32> to vector<5x16xf32>
    %431 = vector.extract_strided_slice %407 {offsets = [0, 176], sizes = [5, 16], strides = [1, 1]} : vector<5x192xf32> to vector<5x16xf32>
    %432 = vector.shape_cast %428 : vector<5x16xf32> to vector<1x5x16xf32>
    %433 = vector.shape_cast %429 : vector<5x16xf32> to vector<1x5x16xf32>
    %434 = vector.shape_cast %430 : vector<5x16xf32> to vector<1x5x16xf32>
    %435 = vector.shape_cast %431 : vector<5x16xf32> to vector<1x5x16xf32>
    %436 = tpu.concatenate %432, %433, %434, %435 in 0 : vector<1x5x16xf32>, vector<1x5x16xf32>, vector<1x5x16xf32>, vector<1x5x16xf32> -> vector<4x5x16xf32>
    %437 = arith.truncf %436 : vector<4x5x16xf32> to vector<4x5x16xbf16>
    "tpu.trace_start"() <{level = 10 : i32, message = "hqd,hkd->hqk"}> : () -> ()
    %cst_117 = arith.constant dense<0.000000e+00> : vector<4x5x5xf32>
    %438 = tpu.matmul %417, %427, %cst_117 {dimension_numbers = #tpu.dot_dimension_numbers<[2], [2], [1], [1], [0, 0, 0, 1, 1, 1], [0], [0]>} : vector<4x5x16xbf16>, vector<4x5x16xbf16>, vector<4x5x5xf32> -> vector<4x5x5xf32>
    "tpu.trace_stop"() : () -> ()
    %cst_118 = arith.constant 2.500000e-01 : f32
    %439 = vector.broadcast %cst_118 : f32 to vector<4x5x5xf32>
    %440 = arith.mulf %438, %439 : vector<4x5x5xf32>
    %c1_119 = arith.constant 1 : index
    %c0_120 = arith.constant 0 : index
    %441 = vector.load %arg3[%c1_119, %c0_120] : memref<3x5xi32, #tpu.memory_space<vmem>>, vector<1x5xi32>
    %442 = arith.sitofp %441 : vector<1x5xi32> to vector<1x5xf32>
    %cst_121 = arith.constant 1.000000e+00 : f32
    %443 = vector.broadcast %cst_121 : f32 to vector<1x5xf32>
    %444 = arith.subf %443, %442 : vector<1x5xf32>
    %cst_122 = arith.constant -1.000000e+09 : f32
    %445 = vector.broadcast %cst_122 : f32 to vector<1x5xf32>
    %446 = arith.mulf %444, %445 : vector<1x5xf32>
    %447 = vector.shape_cast %446 : vector<1x5xf32> to vector<1x1x5xf32>
    %448 = vector.broadcast %447 : vector<1x1x5xf32> to vector<4x5x5xf32>
    %449 = arith.addf %440, %448 : vector<4x5x5xf32>
    %cst_123 = arith.constant dense<0xFF800000> : vector<4x5xf32>
    %450 = vector.multi_reduction <maximumf>, %449, %cst_123 [2] : vector<4x5x5xf32> to vector<4x5xf32>
    %451 = vector.shape_cast %450 : vector<4x5xf32> to vector<4x5x1xf32>
    %452 = vector.broadcast %451 : vector<4x5x1xf32> to vector<4x5x5xf32>
    %453 = arith.subf %449, %452 : vector<4x5x5xf32>
    %454 = math.exp %453 : vector<4x5x5xf32>
    %cst_124 = arith.constant dense<0.000000e+00> : vector<4x5xf32>
    %455 = vector.multi_reduction <add>, %454, %cst_124 [2] : vector<4x5x5xf32> to vector<4x5xf32>
    %456 = vector.shape_cast %455 : vector<4x5xf32> to vector<4x5x1xf32>
    %457 = tpu.reciprocal %456 {approx = true} : vector<4x5x1xf32> -> vector<4x5x1xf32>
    %458 = vector.broadcast %457 : vector<4x5x1xf32> to vector<4x5x5xf32>
    %459 = arith.mulf %454, %458 : vector<4x5x5xf32>
    %460 = arith.truncf %459 : vector<4x5x5xf32> to vector<4x5x5xbf16>
    "tpu.trace_start"() <{level = 10 : i32, message = "hqk,hkd->hqd"}> : () -> ()
    %cst_125 = arith.constant dense<0.000000e+00> : vector<4x5x16xf32>
    %461 = tpu.matmul %460, %437, %cst_125 {dimension_numbers = #tpu.dot_dimension_numbers<[2], [1], [1], [2], [0, 0, 0, 1, 1, 2], [0], [0]>} : vector<4x5x5xbf16>, vector<4x5x16xbf16>, vector<4x5x16xf32> -> vector<4x5x16xf32>
    "tpu.trace_stop"() : () -> ()
    %462 = vector.extract_strided_slice %461 {offsets = [0, 0, 0], sizes = [1, 5, 16], strides = [1, 1, 1]} : vector<4x5x16xf32> to vector<1x5x16xf32>
    %463 = vector.shape_cast %462 : vector<1x5x16xf32> to vector<5x16xf32>
    %464 = vector.extract_strided_slice %461 {offsets = [1, 0, 0], sizes = [1, 5, 16], strides = [1, 1, 1]} : vector<4x5x16xf32> to vector<1x5x16xf32>
    %465 = vector.shape_cast %464 : vector<1x5x16xf32> to vector<5x16xf32>
    %466 = vector.extract_strided_slice %461 {offsets = [2, 0, 0], sizes = [1, 5, 16], strides = [1, 1, 1]} : vector<4x5x16xf32> to vector<1x5x16xf32>
    %467 = vector.shape_cast %466 : vector<1x5x16xf32> to vector<5x16xf32>
    %468 = vector.extract_strided_slice %461 {offsets = [3, 0, 0], sizes = [1, 5, 16], strides = [1, 1, 1]} : vector<4x5x16xf32> to vector<1x5x16xf32>
    %469 = vector.shape_cast %468 : vector<1x5x16xf32> to vector<5x16xf32>
    %470 = tpu.concatenate %463, %465, %467, %469 in 1 : vector<5x16xf32>, vector<5x16xf32>, vector<5x16xf32>, vector<5x16xf32> -> vector<5x64xf32>
    %c5_126 = arith.constant 5 : index
    %c0_127 = arith.constant 0 : index
    %471 = vector.load %arg23[%c5_126, %c0_127] : memref<15x64xf32, #tpu.memory_space<vmem>>, vector<5x64xf32>
    tpu.vector_store %arg23[%c5_126, %c0_127], %470 {strides = array<i32>} : memref<15x64xf32, #tpu.memory_space<vmem>>, vector<5x64xf32>,
    %472 = vector.extract_strided_slice %341 {offsets = [10, 0], sizes = [5, 192], strides = [1, 1]} : vector<15x192xf32> to vector<5x192xf32>
    %473 = vector.extract_strided_slice %472 {offsets = [0, 0], sizes = [5, 16], strides = [1, 1]} : vector<5x192xf32> to vector<5x16xf32>
    %474 = vector.extract_strided_slice %472 {offsets = [0, 16], sizes = [5, 16], strides = [1, 1]} : vector<5x192xf32> to vector<5x16xf32>
    %475 = vector.extract_strided_slice %472 {offsets = [0, 32], sizes = [5, 16], strides = [1, 1]} : vector<5x192xf32> to vector<5x16xf32>
    %476 = vector.extract_strided_slice %472 {offsets = [0, 48], sizes = [5, 16], strides = [1, 1]} : vector<5x192xf32> to vector<5x16xf32>
    %477 = vector.shape_cast %473 : vector<5x16xf32> to vector<1x5x16xf32>
    %478 = vector.shape_cast %474 : vector<5x16xf32> to vector<1x5x16xf32>
    %479 = vector.shape_cast %475 : vector<5x16xf32> to vector<1x5x16xf32>
    %480 = vector.shape_cast %476 : vector<5x16xf32> to vector<1x5x16xf32>
    %481 = tpu.concatenate %477, %478, %479, %480 in 0 : vector<1x5x16xf32>, vector<1x5x16xf32>, vector<1x5x16xf32>, vector<1x5x16xf32> -> vector<4x5x16xf32>
    %482 = arith.truncf %481 : vector<4x5x16xf32> to vector<4x5x16xbf16>
    %483 = vector.extract_strided_slice %472 {offsets = [0, 64], sizes = [5, 16], strides = [1, 1]} : vector<5x192xf32> to vector<5x16xf32>
    %484 = vector.extract_strided_slice %472 {offsets = [0, 80], sizes = [5, 16], strides = [1, 1]} : vector<5x192xf32> to vector<5x16xf32>
    %485 = vector.extract_strided_slice %472 {offsets = [0, 96], sizes = [5, 16], strides = [1, 1]} : vector<5x192xf32> to vector<5x16xf32>
    %486 = vector.extract_strided_slice %472 {offsets = [0, 112], sizes = [5, 16], strides = [1, 1]} : vector<5x192xf32> to vector<5x16xf32>
    %487 = vector.shape_cast %483 : vector<5x16xf32> to vector<1x5x16xf32>
    %488 = vector.shape_cast %484 : vector<5x16xf32> to vector<1x5x16xf32>
    %489 = vector.shape_cast %485 : vector<5x16xf32> to vector<1x5x16xf32>
    %490 = vector.shape_cast %486 : vector<5x16xf32> to vector<1x5x16xf32>
    %491 = tpu.concatenate %487, %488, %489, %490 in 0 : vector<1x5x16xf32>, vector<1x5x16xf32>, vector<1x5x16xf32>, vector<1x5x16xf32> -> vector<4x5x16xf32>
    %492 = arith.truncf %491 : vector<4x5x16xf32> to vector<4x5x16xbf16>
    %493 = vector.extract_strided_slice %472 {offsets = [0, 128], sizes = [5, 16], strides = [1, 1]} : vector<5x192xf32> to vector<5x16xf32>
    %494 = vector.extract_strided_slice %472 {offsets = [0, 144], sizes = [5, 16], strides = [1, 1]} : vector<5x192xf32> to vector<5x16xf32>
    %495 = vector.extract_strided_slice %472 {offsets = [0, 160], sizes = [5, 16], strides = [1, 1]} : vector<5x192xf32> to vector<5x16xf32>
    %496 = vector.extract_strided_slice %472 {offsets = [0, 176], sizes = [5, 16], strides = [1, 1]} : vector<5x192xf32> to vector<5x16xf32>
    %497 = vector.shape_cast %493 : vector<5x16xf32> to vector<1x5x16xf32>
    %498 = vector.shape_cast %494 : vector<5x16xf32> to vector<1x5x16xf32>
    %499 = vector.shape_cast %495 : vector<5x16xf32> to vector<1x5x16xf32>
    %500 = vector.shape_cast %496 : vector<5x16xf32> to vector<1x5x16xf32>
    %501 = tpu.concatenate %497, %498, %499, %500 in 0 : vector<1x5x16xf32>, vector<1x5x16xf32>, vector<1x5x16xf32>, vector<1x5x16xf32> -> vector<4x5x16xf32>
    %502 = arith.truncf %501 : vector<4x5x16xf32> to vector<4x5x16xbf16>
    "tpu.trace_start"() <{level = 10 : i32, message = "hqd,hkd->hqk"}> : () -> ()
    %cst_128 = arith.constant dense<0.000000e+00> : vector<4x5x5xf32>
    %503 = tpu.matmul %482, %492, %cst_128 {dimension_numbers = #tpu.dot_dimension_numbers<[2], [2], [1], [1], [0, 0, 0, 1, 1, 1], [0], [0]>} : vector<4x5x16xbf16>, vector<4x5x16xbf16>, vector<4x5x5xf32> -> vector<4x5x5xf32>
    "tpu.trace_stop"() : () -> ()
    %cst_129 = arith.constant 2.500000e-01 : f32
    %504 = vector.broadcast %cst_129 : f32 to vector<4x5x5xf32>
    %505 = arith.mulf %503, %504 : vector<4x5x5xf32>
    %c2_130 = arith.constant 2 : index
    %c0_131 = arith.constant 0 : index
    %506 = vector.load %arg3[%c2_130, %c0_131] : memref<3x5xi32, #tpu.memory_space<vmem>>, vector<1x5xi32>
    %507 = arith.sitofp %506 : vector<1x5xi32> to vector<1x5xf32>
    %cst_132 = arith.constant 1.000000e+00 : f32
    %508 = vector.broadcast %cst_132 : f32 to vector<1x5xf32>
    %509 = arith.subf %508, %507 : vector<1x5xf32>
    %cst_133 = arith.constant -1.000000e+09 : f32
    %510 = vector.broadcast %cst_133 : f32 to vector<1x5xf32>
    %511 = arith.mulf %509, %510 : vector<1x5xf32>
    %512 = vector.shape_cast %511 : vector<1x5xf32> to vector<1x1x5xf32>
    %513 = vector.broadcast %512 : vector<1x1x5xf32> to vector<4x5x5xf32>
    %514 = arith.addf %505, %513 : vector<4x5x5xf32>
    %cst_134 = arith.constant dense<0xFF800000> : vector<4x5xf32>
    %515 = vector.multi_reduction <maximumf>, %514, %cst_134 [2] : vector<4x5x5xf32> to vector<4x5xf32>
    %516 = vector.shape_cast %515 : vector<4x5xf32> to vector<4x5x1xf32>
    %517 = vector.broadcast %516 : vector<4x5x1xf32> to vector<4x5x5xf32>
    %518 = arith.subf %514, %517 : vector<4x5x5xf32>
    %519 = math.exp %518 : vector<4x5x5xf32>
    %cst_135 = arith.constant dense<0.000000e+00> : vector<4x5xf32>
    %520 = vector.multi_reduction <add>, %519, %cst_135 [2] : vector<4x5x5xf32> to vector<4x5xf32>
    %521 = vector.shape_cast %520 : vector<4x5xf32> to vector<4x5x1xf32>
    %522 = tpu.reciprocal %521 {approx = true} : vector<4x5x1xf32> -> vector<4x5x1xf32>
    %523 = vector.broadcast %522 : vector<4x5x1xf32> to vector<4x5x5xf32>
    %524 = arith.mulf %519, %523 : vector<4x5x5xf32>
    %525 = arith.truncf %524 : vector<4x5x5xf32> to vector<4x5x5xbf16>
    "tpu.trace_start"() <{level = 10 : i32, message = "hqk,hkd->hqd"}> : () -> ()
    %cst_136 = arith.constant dense<0.000000e+00> : vector<4x5x16xf32>
    %526 = tpu.matmul %525, %502, %cst_136 {dimension_numbers = #tpu.dot_dimension_numbers<[2], [1], [1], [2], [0, 0, 0, 1, 1, 2], [0], [0]>} : vector<4x5x5xbf16>, vector<4x5x16xbf16>, vector<4x5x16xf32> -> vector<4x5x16xf32>
    "tpu.trace_stop"() : () -> ()
    %527 = vector.extract_strided_slice %526 {offsets = [0, 0, 0], sizes = [1, 5, 16], strides = [1, 1, 1]} : vector<4x5x16xf32> to vector<1x5x16xf32>
    %528 = vector.shape_cast %527 : vector<1x5x16xf32> to vector<5x16xf32>
    %529 = vector.extract_strided_slice %526 {offsets = [1, 0, 0], sizes = [1, 5, 16], strides = [1, 1, 1]} : vector<4x5x16xf32> to vector<1x5x16xf32>
    %530 = vector.shape_cast %529 : vector<1x5x16xf32> to vector<5x16xf32>
    %531 = vector.extract_strided_slice %526 {offsets = [2, 0, 0], sizes = [1, 5, 16], strides = [1, 1, 1]} : vector<4x5x16xf32> to vector<1x5x16xf32>
    %532 = vector.shape_cast %531 : vector<1x5x16xf32> to vector<5x16xf32>
    %533 = vector.extract_strided_slice %526 {offsets = [3, 0, 0], sizes = [1, 5, 16], strides = [1, 1, 1]} : vector<4x5x16xf32> to vector<1x5x16xf32>
    %534 = vector.shape_cast %533 : vector<1x5x16xf32> to vector<5x16xf32>
    %535 = tpu.concatenate %528, %530, %532, %534 in 1 : vector<5x16xf32>, vector<5x16xf32>, vector<5x16xf32>, vector<5x16xf32> -> vector<5x64xf32>
    %c10_137 = arith.constant 10 : index
    %c0_138 = arith.constant 0 : index
    %536 = vector.load %arg23[%c10_137, %c0_138] : memref<15x64xf32, #tpu.memory_space<vmem>>, vector<5x64xf32>
    tpu.vector_store %arg23[%c10_137, %c0_138], %535 {strides = array<i32>} : memref<15x64xf32, #tpu.memory_space<vmem>>, vector<5x64xf32>,
    %c0_139 = arith.constant 0 : index
    %c0_140 = arith.constant 0 : index
    %537 = vector.load %arg23[%c0_139, %c0_140] : memref<15x64xf32, #tpu.memory_space<vmem>>, vector<15x64xf32>
    %538 = arith.truncf %537 : vector<15x64xf32> to vector<15x64xbf16>
    %c1_141 = arith.constant 1 : index
    %c0_142 = arith.constant 0 : index
    %c0_143 = arith.constant 0 : index
    %539 = vector.load %arg9[%c1_141, %c0_142, %c0_143] : memref<2x64x64xbf16, #tpu.memory_space<vmem>>, vector<1x64x64xbf16>
    %540 = vector.shape_cast %539 : vector<1x64x64xbf16> to vector<64x64xbf16>
    %cst_144 = arith.constant dense<0.000000e+00> : vector<15x64xf32>
    %541 = tpu.matmul %538, %540, %cst_144 {dimension_numbers = #tpu.dot_dimension_numbers<[1], [0], [0], [1], [0, 0, 1, 1], [], []>} : vector<15x64xbf16>, vector<64x64xbf16>, vector<15x64xf32> -> vector<15x64xf32>
    %c1_145 = arith.constant 1 : index
    %c0_146 = arith.constant 0 : index
    %c0_147 = arith.constant 0 : index
    %542 = vector.load %arg10[%c1_145, %c0_146, %c0_147] : memref<2x1x64xf32, #tpu.memory_space<vmem>>, vector<1x1x64xf32>
    %543 = vector.shape_cast %542 : vector<1x1x64xf32> to vector<1x64xf32>
    %544 = vector.broadcast %543 : vector<1x64xf32> to vector<15x64xf32>
    %545 = arith.addf %541, %544 : vector<15x64xf32>
    %546 = arith.addf %333, %545 : vector<15x64xf32>
    %c1_148 = arith.constant 1 : index
    %c0_149 = arith.constant 0 : index
    %c0_150 = arith.constant 0 : index
    %547 = vector.load %arg11[%c1_148, %c0_149, %c0_150] : memref<2x1x64xf32, #tpu.memory_space<vmem>>, vector<1x1x64xf32>
    %548 = vector.shape_cast %547 : vector<1x1x64xf32> to vector<1x64xf32>
    %c1_151 = arith.constant 1 : index
    %c0_152 = arith.constant 0 : index
    %c0_153 = arith.constant 0 : index
    %549 = vector.load %arg12[%c1_151, %c0_152, %c0_153] : memref<2x1x64xf32, #tpu.memory_space<vmem>>, vector<1x1x64xf32>
    %550 = vector.shape_cast %549 : vector<1x1x64xf32> to vector<1x64xf32>
    %cst_154 = arith.constant dense<0.000000e+00> : vector<15xf32>
    %551 = vector.multi_reduction <add>, %546, %cst_154 [1] : vector<15x64xf32> to vector<15xf32>
    %552 = vector.shape_cast %551 : vector<15xf32> to vector<15x1xf32>
    %cst_155 = arith.constant 6.400000e+01 : f32
    %553 = vector.broadcast %cst_155 : f32 to vector<15x1xf32>
    %554 = arith.divf %552, %553 : vector<15x1xf32>
    %555 = vector.broadcast %554 : vector<15x1xf32> to vector<15x64xf32>
    %556 = arith.subf %546, %555 : vector<15x64xf32>
    %557 = arith.mulf %556, %556 : vector<15x64xf32>
    %cst_156 = arith.constant dense<0.000000e+00> : vector<15xf32>
    %558 = vector.multi_reduction <add>, %557, %cst_156 [1] : vector<15x64xf32> to vector<15xf32>
    %559 = vector.shape_cast %558 : vector<15xf32> to vector<15x1xf32>
    %cst_157 = arith.constant 6.400000e+01 : f32
    %560 = vector.broadcast %cst_157 : f32 to vector<15x1xf32>
    %561 = arith.divf %559, %560 : vector<15x1xf32>
    %562 = vector.broadcast %554 : vector<15x1xf32> to vector<15x64xf32>
    %563 = arith.subf %546, %562 : vector<15x64xf32>
    %cst_158 = arith.constant 9.99999996E-13 : f32
    %564 = vector.broadcast %cst_158 : f32 to vector<15x1xf32>
    %565 = arith.addf %561, %564 : vector<15x1xf32>
    %566 = math.rsqrt %565 : vector<15x1xf32>
    %567 = vector.broadcast %566 : vector<15x1xf32> to vector<15x64xf32>
    %568 = arith.mulf %563, %567 : vector<15x64xf32>
    %569 = vector.broadcast %548 : vector<1x64xf32> to vector<15x64xf32>
    %570 = arith.mulf %568, %569 : vector<15x64xf32>
    %571 = vector.broadcast %550 : vector<1x64xf32> to vector<15x64xf32>
    %572 = arith.addf %570, %571 : vector<15x64xf32>
    %573 = arith.truncf %572 : vector<15x64xf32> to vector<15x64xbf16>
    %c1_159 = arith.constant 1 : index
    %c0_160 = arith.constant 0 : index
    %c0_161 = arith.constant 0 : index
    %574 = vector.load %arg13[%c1_159, %c0_160, %c0_161] : memref<2x64x128xbf16, #tpu.memory_space<vmem>>, vector<1x64x128xbf16>
    %575 = vector.shape_cast %574 : vector<1x64x128xbf16> to vector<64x128xbf16>
    %cst_162 = arith.constant dense<0.000000e+00> : vector<15x128xf32>
    %576 = tpu.matmul %573, %575, %cst_162 {dimension_numbers = #tpu.dot_dimension_numbers<[1], [0], [0], [1], [0, 0, 1, 1], [], []>} : vector<15x64xbf16>, vector<64x128xbf16>, vector<15x128xf32> -> vector<15x128xf32>
    %c1_163 = arith.constant 1 : index
    %c0_164 = arith.constant 0 : index
    %c0_165 = arith.constant 0 : index
    %577 = vector.load %arg14[%c1_163, %c0_164, %c0_165] : memref<2x1x128xf32, #tpu.memory_space<vmem>>, vector<1x1x128xf32>
    %578 = vector.shape_cast %577 : vector<1x1x128xf32> to vector<1x128xf32>
    %579 = vector.broadcast %578 : vector<1x128xf32> to vector<15x128xf32>
    %580 = arith.addf %576, %579 : vector<15x128xf32>
    %cst_166 = arith.constant 5.000000e-01 : f32
    %581 = vector.broadcast %cst_166 : f32 to vector<15x128xf32>
    %582 = arith.mulf %581, %580 : vector<15x128xf32>
    %cst_167 = arith.constant 4.471500e-02 : f32
    %583 = vector.broadcast %cst_167 : f32 to vector<15x128xf32>
    %584 = arith.mulf %583, %580 : vector<15x128xf32>
    %585 = arith.mulf %584, %580 : vector<15x128xf32>
    %586 = arith.mulf %585, %580 : vector<15x128xf32>
    %587 = arith.addf %580, %586 : vector<15x128xf32>
    %cst_168 = arith.constant 0.797884583 : f32
    %588 = vector.broadcast %cst_168 : f32 to vector<15x128xf32>
    %589 = arith.mulf %588, %587 : vector<15x128xf32>
    %590 = math.tanh %589 : vector<15x128xf32>
    %cst_169 = arith.constant 1.000000e+00 : f32
    %591 = vector.broadcast %cst_169 : f32 to vector<15x128xf32>
    %592 = arith.addf %591, %590 : vector<15x128xf32>
    %593 = arith.mulf %582, %592 : vector<15x128xf32>
    %594 = arith.truncf %593 : vector<15x128xf32> to vector<15x128xbf16>
    %c1_170 = arith.constant 1 : index
    %c0_171 = arith.constant 0 : index
    %c0_172 = arith.constant 0 : index
    %595 = vector.load %arg15[%c1_170, %c0_171, %c0_172] : memref<2x128x64xbf16, #tpu.memory_space<vmem>>, vector<1x128x64xbf16>
    %596 = vector.shape_cast %595 : vector<1x128x64xbf16> to vector<128x64xbf16>
    %cst_173 = arith.constant dense<0.000000e+00> : vector<15x64xf32>
    %597 = tpu.matmul %594, %596, %cst_173 {dimension_numbers = #tpu.dot_dimension_numbers<[1], [0], [0], [1], [0, 0, 1, 1], [], []>} : vector<15x128xbf16>, vector<128x64xbf16>, vector<15x64xf32> -> vector<15x64xf32>
    %598 = arith.addf %572, %597 : vector<15x64xf32>
    %c1_174 = arith.constant 1 : index
    %c0_175 = arith.constant 0 : index
    %c0_176 = arith.constant 0 : index
    %599 = vector.load %arg16[%c1_174, %c0_175, %c0_176] : memref<2x1x64xf32, #tpu.memory_space<vmem>>, vector<1x1x64xf32>
    %600 = vector.shape_cast %599 : vector<1x1x64xf32> to vector<1x64xf32>
    %601 = vector.broadcast %600 : vector<1x64xf32> to vector<15x64xf32>
    %602 = arith.addf %598, %601 : vector<15x64xf32>
    %c1_177 = arith.constant 1 : index
    %c0_178 = arith.constant 0 : index
    %c0_179 = arith.constant 0 : index
    %603 = vector.load %arg17[%c1_177, %c0_178, %c0_179] : memref<2x1x64xf32, #tpu.memory_space<vmem>>, vector<1x1x64xf32>
    %604 = vector.shape_cast %603 : vector<1x1x64xf32> to vector<1x64xf32>
    %c1_180 = arith.constant 1 : index
    %c0_181 = arith.constant 0 : index
    %c0_182 = arith.constant 0 : index
    %605 = vector.load %arg18[%c1_180, %c0_181, %c0_182] : memref<2x1x64xf32, #tpu.memory_space<vmem>>, vector<1x1x64xf32>
    %606 = vector.shape_cast %605 : vector<1x1x64xf32> to vector<1x64xf32>
    %cst_183 = arith.constant dense<0.000000e+00> : vector<15xf32>
    %607 = vector.multi_reduction <add>, %602, %cst_183 [1] : vector<15x64xf32> to vector<15xf32>
    %608 = vector.shape_cast %607 : vector<15xf32> to vector<15x1xf32>
    %cst_184 = arith.constant 6.400000e+01 : f32
    %609 = vector.broadcast %cst_184 : f32 to vector<15x1xf32>
    %610 = arith.divf %608, %609 : vector<15x1xf32>
    %611 = vector.broadcast %610 : vector<15x1xf32> to vector<15x64xf32>
    %612 = arith.subf %602, %611 : vector<15x64xf32>
    %613 = arith.mulf %612, %612 : vector<15x64xf32>
    %cst_185 = arith.constant dense<0.000000e+00> : vector<15xf32>
    %614 = vector.multi_reduction <add>, %613, %cst_185 [1] : vector<15x64xf32> to vector<15xf32>
    %615 = vector.shape_cast %614 : vector<15xf32> to vector<15x1xf32>
    %cst_186 = arith.constant 6.400000e+01 : f32
    %616 = vector.broadcast %cst_186 : f32 to vector<15x1xf32>
    %617 = arith.divf %615, %616 : vector<15x1xf32>
    %618 = vector.broadcast %610 : vector<15x1xf32> to vector<15x64xf32>
    %619 = arith.subf %602, %618 : vector<15x64xf32>
    %cst_187 = arith.constant 9.99999996E-13 : f32
    %620 = vector.broadcast %cst_187 : f32 to vector<15x1xf32>
    %621 = arith.addf %617, %620 : vector<15x1xf32>
    %622 = math.rsqrt %621 : vector<15x1xf32>
    %623 = vector.broadcast %622 : vector<15x1xf32> to vector<15x64xf32>
    %624 = arith.mulf %619, %623 : vector<15x64xf32>
    %625 = vector.broadcast %604 : vector<1x64xf32> to vector<15x64xf32>
    %626 = arith.mulf %624, %625 : vector<15x64xf32>
    %627 = vector.broadcast %606 : vector<1x64xf32> to vector<15x64xf32>
    %628 = arith.addf %626, %627 : vector<15x64xf32>
    %629 = vector.extract_strided_slice %628 {offsets = [0, 0], sizes = [1, 64], strides = [1, 1]} : vector<15x64xf32> to vector<1x64xf32>
    %630 = vector.extract_strided_slice %628 {offsets = [5, 0], sizes = [1, 64], strides = [1, 1]} : vector<15x64xf32> to vector<1x64xf32>
    %631 = vector.extract_strided_slice %628 {offsets = [10, 0], sizes = [1, 64], strides = [1, 1]} : vector<15x64xf32> to vector<1x64xf32>
    %632 = tpu.concatenate %629, %630, %631 in 0 : vector<1x64xf32>, vector<1x64xf32>, vector<1x64xf32> -> vector<3x64xf32>
    %633 = arith.truncf %632 : vector<3x64xf32> to vector<3x64xbf16>
    %c0_188 = arith.constant 0 : index
    %c0_189 = arith.constant 0 : index
    %634 = vector.load %arg19[%c0_188, %c0_189] : memref<64x2xbf16, #tpu.memory_space<vmem>>, vector<64x2xbf16>
    %cst_190 = arith.constant dense<0.000000e+00> : vector<3x2xf32>
    %635 = tpu.matmul %633, %634, %cst_190 {dimension_numbers = #tpu.dot_dimension_numbers<[1], [0], [0], [1], [0, 0, 1, 1], [], []>} : vector<3x64xbf16>, vector<64x2xbf16>, vector<3x2xf32> -> vector<3x2xf32>
    %c0_191 = arith.constant 0 : index
    %c0_192 = arith.constant 0 : index
    %636 = vector.load %arg20[%c0_191, %c0_192] : memref<1x2xf32, #tpu.memory_space<vmem>>, vector<1x2xf32>
    %637 = vector.broadcast %636 : vector<1x2xf32> to vector<3x2xf32>
    %638 = arith.addf %635, %637 : vector<3x2xf32>
    %639 = arith.truncf %638 : vector<3x2xf32> to vector<3x2xbf16>
    %c0_193 = arith.constant 0 : index
    %c0_194 = arith.constant 0 : index
    %640 = vector.load %arg21[%c0_193, %c0_194] : memref<3x2xbf16, #tpu.memory_space<vmem>>, vector<3x2xbf16>
    tpu.vector_store %arg21[%c0_193, %c0_194], %639 {strides = array<i32>} : memref<3x2xbf16, #tpu.memory_space<vmem>>, vector<3x2xbf16>,
    %c0_195 = arith.constant 0 : index
    %c0_196 = arith.constant 0 : index
    %641 = vector.load %arg2[%c0_195, %c0_196] : memref<3x5xi32, #tpu.memory_space<vmem>>, vector<3x5xi32>
    %642 = arith.sitofp %641 : vector<3x5xi32> to vector<3x5xf32>
    %643 = arith.truncf %642 : vector<3x5xf32> to vector<3x5xbf16>
    %644 = vector.extract_strided_slice %643 {offsets = [0, 0], sizes = [1, 5], strides = [1, 1]} : vector<3x5xbf16> to vector<1x5xbf16>
    %645 = vector.shape_cast %644 : vector<1x5xbf16> to vector<1x5xbf16>
    %646 = vector.broadcast %645 : vector<1x5xbf16> to vector<5x5xbf16>
    %647 = vector.extract_strided_slice %643 {offsets = [1, 0], sizes = [1, 5], strides = [1, 1]} : vector<3x5xbf16> to vector<1x5xbf16>
    %648 = vector.shape_cast %647 : vector<1x5xbf16> to vector<1x5xbf16>
    %649 = vector.broadcast %648 : vector<1x5xbf16> to vector<5x5xbf16>
    %650 = vector.extract_strided_slice %643 {offsets = [2, 0], sizes = [1, 5], strides = [1, 1]} : vector<3x5xbf16> to vector<1x5xbf16>
    %651 = vector.shape_cast %650 : vector<1x5xbf16> to vector<1x5xbf16>
    %652 = vector.broadcast %651 : vector<1x5xbf16> to vector<5x5xbf16>
    "tpu.trace_start"() <{level = 10 : i32, message = "qd,kd->qk"}> : () -> ()
    %cst_197 = arith.constant dense<0.000000e+00> : vector<5x5xf32>
    %653 = tpu.matmul %646, %649, %cst_197 {dimension_numbers = #tpu.dot_dimension_numbers<[1], [1], [0], [0], [0, 0, 1, 0], [], []>} : vector<5x5xbf16>, vector<5x5xbf16>, vector<5x5xf32> -> vector<5x5xf32>
    "tpu.trace_stop"() : () -> ()
    %cst_198 = arith.constant 0.44721359 : f32
    %654 = vector.broadcast %cst_198 : f32 to vector<5x5xf32>
    %655 = arith.mulf %653, %654 : vector<5x5xf32>
    %656 = tpu.iota {dimensions = array<i32: 0>} : vector<5x5xi32>
    %657 = tpu.iota {dimensions = array<i32: 1>} : vector<5x5xi32>
    %658 = arith.cmpi sle, %657, %656 : vector<5x5xi32>
    %cst_199 = arith.constant -1.000000e+09 : f32
    %659 = vector.broadcast %cst_199 : f32 to vector<5x5xf32>
    %660 = arith.select %658, %655, %659 : vector<5x5xi1>, vector<5x5xf32>
    %cst_200 = arith.constant dense<0xFF800000> : vector<5xf32>
    %661 = vector.multi_reduction <maximumf>, %660, %cst_200 [1] : vector<5x5xf32> to vector<5xf32>
    %662 = vector.shape_cast %661 : vector<5xf32> to vector<5x1xf32>
    %663 = vector.broadcast %662 : vector<5x1xf32> to vector<5x5xf32>
    %664 = arith.subf %660, %663 : vector<5x5xf32>
    %665 = math.exp %664 : vector<5x5xf32>
    %cst_201 = arith.constant dense<0.000000e+00> : vector<5xf32>
    %666 = vector.multi_reduction <add>, %665, %cst_201 [1] : vector<5x5xf32> to vector<5xf32>
    %667 = vector.shape_cast %666 : vector<5xf32> to vector<5x1xf32>
    %668 = tpu.reciprocal %667 {approx = true} : vector<5x1xf32> -> vector<5x1xf32>
    %669 = vector.broadcast %668 : vector<5x1xf32> to vector<5x5xf32>
    %670 = arith.mulf %665, %669 : vector<5x5xf32>
    %671 = arith.truncf %670 : vector<5x5xf32> to vector<5x5xbf16>
    "tpu.trace_start"() <{level = 10 : i32, message = "qk,kd->qd"}> : () -> ()
    %cst_202 = arith.constant dense<0.000000e+00> : vector<5x5xf32>
    %672 = tpu.matmul %671, %652, %cst_202 {dimension_numbers = #tpu.dot_dimension_numbers<[1], [0], [0], [1], [0, 0, 1, 1], [], []>} : vector<5x5xbf16>, vector<5x5xbf16>, vector<5x5xf32> -> vector<5x5xf32>
    "tpu.trace_stop"() : () -> ()
    %673 = arith.truncf %672 : vector<5x5xf32> to vector<5x5xbf16>
    %674 = tpu.concatenate %673, %673, %673, %673, %673, %673, %673, %673, %673, %673, %673, %673, %673, %673, %673, %673 in 1 : vector<5x5xbf16>, vector<5x5xbf16>, vector<5x5xbf16>, vector<5x5xbf16>, vector<5x5xbf16>, vector<5x5xbf16>, vector<5x5xbf16>, vector<5x5xbf16>, vector<5x5xbf16>, vector<5x5xbf16>, vector<5x5xbf16>, vector<5x5xbf16>, vector<5x5xbf16>, vector<5x5xbf16>, vector<5x5xbf16>, vector<5x5xbf16> -> vector<5x80xbf16>
    %c0_203 = arith.constant 0 : index
    %c0_204 = arith.constant 0 : index
    %675 = vector.load %arg22[%c0_203, %c0_204] : memref<5x80xbf16, #tpu.memory_space<vmem>>, vector<5x80xbf16>
    tpu.vector_store %arg22[%c0_203, %c0_204], %674 {strides = array<i32>} : memref<5x80xbf16, #tpu.memory_space<vmem>>, vector<5x80xbf16>,
    return
  }
}

</mosaic_0001>

<bundles_post_ra>
// kernel: run.1
= control target key start
LH: loop header
LB: loop body
LE: loop exit
PB: predicated region body
PF: predicated region fallthrough
CT: control target
= control target key end

     0   :  { %v3738_v0 = vmov 0   ;;  %v71_v16 = vlaneseq  ;;  %v3739_v23 = vmov 0.0   ;;  %vm186_vm12 = vcmask 130048   ;;  %s3743_s27 = smov 112   ;;  %s3746_s30 = smov 80   ;;  %s4916_s0 = inlined_call_operand.vmem [shape: s32[15,1], index: 0, kind: input, shape index: {}]   ;;  %s4917_s1 = inlined_call_operand.vmem [shape: s32[15,1], index: 1, kind: input, shape index: {}]   ;;  %s4918_s4 = inlined_call_operand.vmem [shape: bf16[144,64], index: 4, kind: input, shape index: {}]   ;;  %s4919_s5 = inlined_call_operand.vmem [shape: f32[1,64], index: 5, kind: input, shape index: {}]   ;;  %s4920_s6 = inlined_call_operand.vmem [shape: f32[1,64], index: 6, kind: input, shape index: {}]   ;;  %s4921_s7 = inlined_call_operand.vmem [shape: bf16[2,64,192], index: 7, kind: input, shape index: {}]   ;;  %s4922_s8 = inlined_call_operand.vmem [shape: f32[2,1,192], index: 8, kind: input, shape index: {}]   ;;  %s4923_s3 = inlined_call_operand.vmem [shape: s32[3,5], index: 3, kind: input, shape index: {}]   ;;  %s4924_s10 = inlined_call_operand.vmem [shape: f32[2,1,64], index: 10, kind: input, shape index: {}]   ;;  %s4925_s9 = inlined_call_operand.vmem [shape: bf16[2,64,64], index: 9, kind: input, shape index: {}]   ;;  %s4926_s11 = inlined_call_operand.vmem [shape: f32[2,1,64], index: 11, kind: input, shape index: {}]   ;;  %s4927_s12 = inlined_call_operand.vmem [shape: f32[2,1,64], index: 12, kind: input, shape index: {}]   ;;  %s4928_s14 = inlined_call_operand.vmem [shape: f32[2,1,128], index: 14, kind: input, shape index: {}]   ;;  %s4929_s13 = inlined_call_operand.vmem [shape: bf16[2,64,128], index: 13, kind: input, shape index: {}]   ;;  %s4930_s15 = inlined_call_operand.vmem [shape: bf16[2,128,64], index: 15, kind: input, shape index: {}]   ;;  %s4931_s16 = inlined_call_operand.vmem [shape: f32[2,1,64], index: 16, kind: input, shape index: {}]   ;;  %s4932_s17 = inlined_call_operand.vmem [shape: f32[2,1,64], index: 17, kind: input, shape index: {}]   ;;  %s4933_s18 = inlined_call_operand.vmem [shape: f32[2,1,64], index: 18, kind: input, shape index: {}]   ;;  %s4934_s2 = inlined_call_operand.vmem [shape: s32[3,5], index: 2, kind: input, shape index: {}]   ;;  %s4935_s20 = inlined_call_operand.vmem [shape: f32[1,2], index: 20, kind: input, shape index: {}]   ;;  %s4936_s19 = inlined_call_operand.vmem [shape: bf16[64,2], index: 19, kind: input, shape index: {}]   ;;  %s4937_s22 = inlined_call_operand.vmem [shape: bf16[5,80], index: 22, kind: output, shape index: {1}]   ;;  %s4938_s21 = inlined_call_operand.vmem [shape: bf16[3,2], index: 21, kind: output, shape index: {0}]  }
   0x1   :  { %4952 = sst [smem:[#allocation3_spill]] %s4916_s0  ;;  %3589 = vset.pattern.permute.xlu0 %v3738_v0  ;;  %3590 = vset.pattern.permute.xlu1 %v3738_v0  ;;  %v3740_v27 = vmov 1.0|1.0   ;;  %vm220_vm14 = vcmask 523264   ;;  %vm224_vm15 = vcmask 522240   ;;  %v3741_v36 = vmov 64.0  }
   0x2   :  { %4953 = sst [smem:[#allocation4_spill]] %s4917_s1  ;;  %v3920_v17 = vand.u32 127, %v71_v16  ;;  %3608 = vrcp.f32 %v3741_v36  ;;  %s4944_s25 = smov 32  }
   0x3   :  { %4954 = sst [smem:[#allocation5_spill]] %s4918_s4  ;;  %s4946_s26 = smov 48  }
   0x4   :  { %4955 = sst [smem:[#allocation6_spill]] %s4919_s5  ;;  %v73_v20 = vadd.s32 128, %v3920_v17  ;;  %s3745_s5 = smov 96  }
   0x5   :  { %4956 = sst [smem:[#allocation7_spill]] %s4920_s6  ;;  %s4968_s1 = smov 32  }
   0x6   :  { %4957 = sst [smem:[#allocation8_spill]] %s4921_s7  ;;  %s4969_s24 = smov 48  }
   0x7   :  { %4958 = sst [smem:[#allocation9_spill]] %s4922_s8  ;;  %s3757_s23 = smov 30  }
   0x8   :  { %s4959_s29 = sld [smem:[#allocation3_spill]]  ;;  %v3609_v37 = vpop.eup %3608 }
   0x9   :  { %s4960_s0 = sld [smem:[#allocation4_spill]]  ;;  %v229_v38 = vmul.f32 64.0, %v3609_v37 }
   0xa   :  { %s4961_s7 = sld [smem:[#allocation5_spill]] }
   0xb   :  { %v230_v39 = vsub.f32 1.0, %v229_v38  ;;  %s4962_s28 = sld [smem:[#allocation8_spill]] }
   0xc   :  { %s4964_s8 = sld [smem:[#allocation7_spill]] }
   0xd   :  { %v231_v40 = vmul.f32 %v3609_v37, %v230_v39  ;;  %s4965_s4 = sld [smem:[#allocation9_spill]] }
   0xe   :  { %v74_v1 = vld [vmem:[%s4959_s29] sm:$0xff]  ;;  %v75_v7 = vld [vmem:[%s4959_s29 + $0x8] sm:$0x7f]  ;;  %s4963_s29 = sld [smem:[#allocation6_spill]] }
   0xf   :  { %v86_v2 = vld [vmem:[%s4960_s0] sm:$0xff]  ;;  %77 = vperm.xlu0 %3589, %v74_v1   ;;  %v87_v6 = vld [vmem:[%s4960_s0 + $0x8] sm:$0x7f]  ;;  %v232_v41 = vadd.f32 %v3609_v37, %v231_v40  ;;  %s3758_s0 = smov 20  }
  0x10   :  { %v88_v3 = vadd.s32 128, %v86_v2  ;;  %v3508_v4 = vld [vmem:[%s4961_s7 + $0x38] sm:$0xff]  ;;  %v3507_v5 = vld [vmem:[%s4961_s7 + $0x30] sm:$0xff]  ;;  %v89_v8 = vadd.s32 128, %v87_v6  ;;  %v3506_v9 = vld [vmem:[%s4961_s7 + $0x28] sm:$0xff] }
  0x11   :  { %190 = vmatpush.bf16.msra.mxu0 %v3508_v4  ;;  %v3505_v10 = vld [vmem:[%s4961_s7 + $0x20] sm:$0xff]  ;;  %v3504_v11 = vld [vmem:[%s4961_s7 + $0x18] sm:$0xff]  ;;  %v3503_v12 = vld [vmem:[%s4961_s7 + $0x10] sm:$0xff] }
  0x12   :  { %91 = vperm.xlu1 %3590, %v88_v3   ;;  %v3502_v13 = vld [vmem:[%s4961_s7 + $0x8] sm:$0xff]  ;;  %v3501_v14 = vld [vmem:[%s4961_s7] sm:$0xff]  ;;  %v3212_v53 = vld [vmem:[%s4962_s28 + $0x30] sm:$0xf] }
  0x13   :  { %v3509_v15 = vld [vmem:[%s4961_s7 + $0x40] sm:$0xff]  ;;  %v3517_v54 = vld [vmem:[%s4962_s28 + $0x34] sm:$0xf0]  ;;  %v3516_v55 = vld [vmem:[%s4962_s28 + $0x34] sm:$0xf]  ;;  %s4950_s7 = smov 64  }
  0x14   :  { %211 = vmatpush.bf16.msra.mxu1 %v3509_v15  ;;  %v3213_v56 = vor.u32 %v3517_v54, %v3212_v53  ;;  %v3214_v57 = vld [vmem:[%s4962_s28 + $0x38] sm:$0xf0]  ;;  %v3204_v59 = vld [vmem:[%s4962_s28 + $0x20] sm:$0xf]  ;;  %v3515_v60 = vld [vmem:[%s4962_s28 + $0x24] sm:$0xf0] }
  0x15   :  { %191 = vmatpush.bf16.msra.mxu0 %v3507_v5  ;;  %v3217_v58 = vor.u32 %v3516_v55, %v3214_v57  ;;  %v3514_v61 = vld [vmem:[%s4962_s28 + $0x24] sm:$0xf]  ;;  %v3205_v62 = vor.u32 %v3515_v60, %v3204_v59  ;;  %v3206_v63 = vld [vmem:[%s4962_s28 + $0x28] sm:$0xf0]  ;;  %v3196_v1 = vld [vmem:[%s4962_s28 + $0x10] sm:$0xf] }
  0x16   :  { %345 = vmatpush.bf16.msra.mxu2 %v3213_v56  ;;  %v3209_v0 = vor.u32 %v3514_v61, %v3206_v63  ;;  %v3513_v2 = vld [vmem:[%s4962_s28 + $0x14] sm:$0xf0]  ;;  %v3512_v3 = vld [vmem:[%s4962_s28 + $0x14] sm:$0xf]  ;;  %v3198_v5 = vld [vmem:[%s4962_s28 + $0x18] sm:$0xf0] }
  0x17   :  { %80 = vperm.xlu0 %3589, %v75_v7   ;;  %359 = vmatpush.bf16.msra.mxu3 %v3217_v58  ;;  %v3197_v4 = vor.u32 %v3513_v2, %v3196_v1  ;;  %v3188_v6 = vld [vmem:[%s4962_s28] sm:$0xf]  ;;  %v3511_v7 = vld [vmem:[%s4962_s28 + $0x4] sm:$0xf0] }
  0x18   :  { %v3592_v39 = vld [vmem:[%s4964_s8] ss:$0 sm:$0xff]  ;;  %s4948_s8 = smov 16  }
  0x19   :  { %192 = vmatpush.bf16.msra.mxu0 %v3506_v9  ;;  %v3201_v9 = vor.u32 %v3512_v3, %v3198_v5 }
  0x1a   :  { %94 = vperm.xlu1 %3590, %v89_v8   ;;  %346 = vmatpush.bf16.msra.mxu2 %v3205_v62 }
  0x1b   :  { %360 = vmatpush.bf16.msra.mxu3 %v3209_v0 }
  0x1d   :  { %193 = vmatpush.bf16.msra.mxu0 %v3505_v10  ;;  %v3510_v10 = vld [vmem:[%s4962_s28 + $0x4] sm:$0xf] }
  0x1e   :  { %347 = vmatpush.bf16.msra.mxu2 %v3197_v4 }
  0x1f   :  { %361 = vmatpush.bf16.msra.mxu3 %v3201_v9 }
  0x21   :  { %194 = vmatpush.bf16.msra.mxu0 %v3504_v11  ;;  %v3190_v11 = vld [vmem:[%s4962_s28 + $0x8] sm:$0xf0] }
  0x25   :  { %195 = vmatpush.bf16.msra.mxu0 %v3503_v12 }
  0x29   :  { %196 = vmatpush.bf16.msra.mxu0 %v3502_v13  ;;  %v3189_v13 = vor.u32 %v3511_v7, %v3188_v6 }
  0x2b   :  { %348 = vmatpush.bf16.msra.mxu2 %v3189_v13 }
  0x2d   :  { %197 = vmatpush.bf16.msra.mxu0 %v3501_v14  ;;  %v3193_v14 = vor.u32 %v3510_v10, %v3190_v11 }
  0x2f   :  { %362 = vmatpush.bf16.msra.mxu3 %v3193_v14 }
  0x81   :  { %v78_v18 = vpop.permute.xlu0 %77 }
  0x82   :  { %vm83_vm0 = vcmp.eq.s32.totalorder %v73_v20, %v78_v18  ;;  %vm82_vm2 = vcmp.eq.s32.totalorder %v3920_v17, %v78_v18 }
  0x84   :  { %v92_v19 = vpop.permute.xlu1 %91 }
  0x85   :  { %vm97_vm1 = vcmp.eq.s32.totalorder %v73_v20, %v92_v19  ;;  %vm96_vm3 = vcmp.eq.s32.totalorder %v3920_v17, %v92_v19 }
  0x86   :  { %vm101_vm4 = vmor %vm83_vm0, %vm97_vm1  ;;  %vm233_vm0 = vweird.f32 %v3609_v37 }
  0x87   :  { %vm100_vm8 = vmor %vm82_vm2, %vm96_vm3  ;;  %v3144_v24 = vsel %vm101_vm4, 1.0, %v3739_v23  ;;  %v3930_v42 = vsel %vm233_vm0, %v3609_v37, %v232_v41  ;;  %vm653_vm0 = vcmask 520192  }
  0x89   :  { %v81_v21 = vpop.permute.xlu0 %80 }
  0x8a   :  { %vm85_vm5 = vcmp.eq.s32.totalorder %v73_v20, %v81_v21  ;;  %vm84_vm9 = vcmp.eq.s32.totalorder %v3920_v17, %v81_v21 }
  0x8c   :  { %v95_v22 = vpop.permute.xlu1 %94 }
  0x8d   :  { %vm98_vm6 = vcmp.eq.s32.totalorder %v3920_v17, %v95_v22  ;;  %vm99_vm7 = vcmp.eq.s32.totalorder %v73_v20, %v95_v22 }
  0x8e   :  { %vm103_vm10 = vmor %vm85_vm5, %vm99_vm7  ;;  %vm559_vm7 = vcmask 1041408  }
  0x8f   :  { %v3146_v25 = vsel %vm103_vm10, 1.0, %v3739_v23  ;;  %vm102_vm11 = vmor %vm84_vm9, %vm98_vm6  ;;  %vm506_vm9 = vcmask 36864   ;;  %vm555_vm10 = vcmask 39936  }
  0x90   :  { %vm3183_vm13 = vmpackc.low %vm102_vm11, %vm100_vm8  ;;  %v113_v26 = vpack.c.bf16 %v3146_v25, %v3144_v24  ;;  %vm560_vm8 = vcmask 1042432   ;;  %vm649_vm11 = vcmask 261120  }
  0x91   :  { %3184 = vmatmul.msk.bf16.vlgmr.msra.gmra.mxu0 %vm3183_vm13, %v3740_v27  ;;  %vm651_vm13 = vcmask 392192  }
  0x92   :  { %3185 = vmatmul.msk.bf16.vlgmr.msra.gmra.mxu1 %vm186_vm12, %v113_v26 }
 0x10e   :  { %v199_v28 = vpop.f32.mrf.mxu0 }
 0x10f   :  { %v213_v29 = vpop.f32.mrf.mxu1 }
 0x110   :  { %v214_v30 = vadd.f32 %v213_v29, %v199_v28 }
 0x112   :  { %v221_v31 = vsel %vm220_vm14, %v214_v30, 0.0 }
 0x113   :  { %222 = vadd.xlane.f32.xlu2 %v221_v31 }
 0x116   :  { %v201_v32 = vpop.f32.mrf.mxu0 }
 0x117   :  { %v215_v33 = vpop.f32.mrf.mxu1 }
 0x118   :  { %v216_v34 = vadd.f32 %v215_v33, %v201_v32 }
 0x11a   :  { %v225_v35 = vsel %vm224_vm15, %v216_v34, 0.0 }
 0x11b   :  { %226 = vadd.xlane.f32.xlu2 %v225_v35 }
 0x186   :  { %v223_v43 = vpop.xlane.xlu2 %222 }
 0x187   :  { %v235_v44 = vmul.f32 %v3930_v42, %v223_v43 }
 0x189   :  { %v3933_v45 = vsub.f32 %v214_v30, %v235_v44 }
 0x18b   :  { %v239_v46 = vmul.f32 %v3933_v45, %v3933_v45 }
 0x18d   :  { %v241_v47 = vsel %vm220_vm14, %v239_v46, 0.0 }
 0x18e   :  { %242 = vadd.xlane.f32.xlu0 %v241_v47  ;;  %v227_v48 = vpop.xlane.xlu2 %226 }
 0x18f   :  { %v236_v49 = vmul.f32 %v3930_v42, %v227_v48  ;;  %v3742_v48 = vmov 65535  }
 0x191   :  { %v3939_v50 = vsub.f32 %v216_v34, %v236_v49  ;;  %v3591_v34 = vld [vmem:[%s4963_s29] ss:$0 sm:$0xff]  ;;  %v561_v49 = vsel %vm559_vm7, 4294967295, %v3742_v48  ;;  %s3760_s29 = smov 35  }
 0x192   :  { %v4022_v54 = vsel %vm560_vm8, %v561_v49, 0 }
 0x193   :  { %v240_v51 = vmul.f32 %v3939_v50, %v3939_v50 }
 0x195   :  { %v244_v52 = vsel %vm224_vm15, %v240_v51, 0.0 }
 0x196   :  { %245 = vadd.xlane.f32.xlu1 %v244_v52 }
 0x201   :  { %v243_v8 = vpop.xlane.xlu0 %242 }
 0x202   :  { %v247_v12 = vmul.f32 %v243_v8, %v3930_v42 }
 0x204   :  { %v249_v15 = vadd.f32 1e-12, %v247_v12 }
 0x206   :  { %3610 = vrsqrt.f32 %v249_v15  ;;  %vm257_vm2 = vweird.f32 %v249_v15 }
 0x209   :  { %v246_v18 = vpop.xlane.xlu1 %245 }
 0x20a   :  { %v248_v19 = vmul.f32 %v246_v18, %v3930_v42 }
 0x20c   :  { %v3611_v20 = vpop.eup %3610  ;;  %v250_v21 = vadd.f32 1e-12, %v248_v19 }
 0x20d   :  { %v252_v22 = vmul.f32 %v3611_v20, %v249_v15  ;;  %vm258_vm1 = vweird.f32 %v3611_v20 }
 0x20e   :  { %3612 = vrsqrt.f32 %v250_v21  ;;  %vm259_vm3 = vmor %vm257_vm2, %vm258_vm1  ;;  %vm267_vm5 = vweird.f32 %v250_v21 }
 0x20f   :  { %v253_v23 = vmul.f32 %v3611_v20, %v252_v22  ;;  %v497_v22 = vld [vmem:[%s4923_s3] sm:$0x1] }
 0x211   :  { %v254_v24 = vmul.f32 0.5, %v253_v23  ;;  %v498_v23 = vcvt.s32.f32 %v497_v22 }
 0x213   :  { %v255_v25 = vsub.f32 1.5, %v254_v24  ;;  %v499_v24 = vsub.f32 1.0, %v498_v23 }
 0x214   :  { %v3613_v26 = vpop.eup %3612 }
 0x215   :  { %v256_v27 = vmul.f32 %v3611_v20, %v255_v25  ;;  %v262_v28 = vmul.f32 %v3613_v26, %v250_v21  ;;  %vm268_vm4 = vweird.f32 %v3613_v26  ;;  %v500_v25 = vmul.f32 -1e+09, %v499_v24 }
 0x216   :  { %vm269_vm6 = vmor %vm267_vm5, %vm268_vm4 }
 0x217   :  { %v263_v29 = vmul.f32 %v3613_v26, %v262_v28  ;;  %v260_v30 = vsel %vm259_vm3, %v3611_v20, %v256_v27  ;;  %v501_v28 = vperm.slane %v500_v25, 0 }
 0x218   :  { %v271_v33 = vmul.f32 %v260_v30, %v3933_v45  ;;  %v4013_v45 = vld [vmem:[%s4965_s4] sm:$0x3] }
 0x219   :  { %v264_v31 = vmul.f32 0.5, %v263_v29  ;;  %v294_v46 = vperm.slane %v4013_v45, 0  ;;  %v295_v47 = vperm.slane %v4013_v45, 1 }
 0x21a   :  { %v276_v38 = vmul.f32 %v3591_v34, %v271_v33 }
 0x21b   :  { %v265_v32 = vsub.f32 1.5, %v264_v31 }
 0x21c   :  { %v4002_v41 = vadd.f32 %v3592_v39, %v276_v38 }
 0x21d   :  { %v266_v35 = vmul.f32 %v3613_v26, %v265_v32 }
 0x21f   :  { %v270_v36 = vsel %vm269_vm6, %v3613_v26, %v266_v35 }
 0x220   :  { %v272_v37 = vmul.f32 %v270_v36, %v3939_v50 }
 0x222   :  { %v277_v40 = vmul.f32 %v3591_v34, %v272_v37 }
 0x224   :  { %v4004_v43 = vadd.f32 %v3592_v39, %v277_v40 }
 0x226   :  { %v283_v44 = vpack.c.bf16 %v4004_v43, %v4002_v41 }
 0x228   :  { %3218 = vmatmul.msk.bf16.vlgmr.msra.gmra.mxu2 %vm220_vm14, %v283_v44  ;;  %3219 = vmatmul.msk.bf16.vlgmr.msra.gmra.mxu3 %vm220_vm14, %v283_v44 }
 0x2ab   :  { %v350_v50 = vpop.f32.mrf.mxu2  ;;  %v364_v51 = vpop.f32.mrf.mxu3 }
 0x2ac   :  { %v351_v52 = vadd.f32 %v350_v50, %v294_v46  ;;  %v4020_v53 = vadd.f32 %v364_v51, %v295_v47 }
 0x2ae   :  { %370 = vrot.lane.b32.xlu2 %v351_v52, %s3743_s27  ;;  %v4027_v55 = vpack.c.bf16 %v4020_v53, %v4020_v53  ;;  %v379_v56 = vpack.c.bf16 %v351_v52, %v351_v52 }
 0x2b0   :  { %v564_v57 = vand.u32 %v4022_v54, %v4027_v55  ;;  %v4031_v58 = vunpack.c.l.b16 %v379_v56 }
 0x2b2   :  { %573 = vmatpush.bf16.msrb.mxu0 %v564_v57  ;;  %v399_v59 = vpack.c.b16 %v4031_v58, %v4031_v58 }
 0x2b3   :  { %v352_v60 = vpop.f32.mrf.mxu2  ;;  %v4074_v37 = vpop.f32.mrf.mxu3 }
 0x2b4   :  { %400 = vrot.lane.b32.xlu1 %v399_v59, %s4950_s7  ;;  %v4037_v61 = vadd.f32 %v352_v60, %v294_v46 }
 0x2b6   :  { %373 = vrot.lane.b32.xlu2 %v351_v52, %s3745_s5 }
 0x2bc   :  { %662 = vrot.lane.b32.xlu1 %v4037_v61, %s3746_s30 }
 0x2be   :  { %376 = vrot.lane.b32.xlu2 %v351_v52, %s3746_s30 }
 0x308   :  { %v371_v62 = vpop.permute.xlu2 %370 }
 0x309   :  { %v380_v63 = vpack.c.bf16 %v371_v62, %v371_v62 }
 0x30b   :  { %v4042_v0 = vunpack.c.l.b16 %v380_v63 }
 0x30d   :  { %v423_v1 = vpack.c.b16 %v4042_v0, %v4042_v0 }
 0x30f   :  { %424 = vrot.lane.b32.xlu2 %v423_v1, %s4950_s7 }
 0x310   :  { %v374_v2 = vpop.permute.xlu2 %373 }
 0x311   :  { %v381_v3 = vpack.c.bf16 %v374_v2, %v374_v2 }
 0x313   :  { %v4047_v4 = vunpack.c.l.b16 %v381_v3 }
 0x315   :  { %v447_v5 = vpack.c.b16 %v4047_v4, %v4047_v4 }
 0x317   :  { %448 = vrot.lane.b32.xlu0 %v447_v5, %s4950_s7 }
 0x318   :  { %v377_v6 = vpop.permute.xlu2 %376 }
 0x319   :  { %v382_v7 = vpack.c.bf16 %v377_v6, %v377_v6 }
 0x31b   :  { %v4052_v8 = vunpack.c.l.b16 %v382_v7 }
 0x31d   :  { %v471_v9 = vpack.c.b16 %v4052_v8, %v4052_v8 }
 0x31f   :  { %659 = vrot.lane.b32.xlu0 %v4037_v61, %s3745_s5  ;;  %472 = vrot.lane.b32.xlu2 %v471_v9, %s4950_s7 }
 0x326   :  { %v401_v10 = vpop.permute.xlu1 %400 }
 0x327   :  { %656 = vrot.lane.b32.xlu2 %v4037_v61, %s3743_s27  ;;  %v406_v11 = vsel %vm186_vm12, %v401_v10, 0 }
 0x328   :  { %415 = vmatpush.bf16.xpose.msrb.mxu1 %v406_v11 }
 0x32f   :  { %3220 = vmatmul.msk.bf16.vlgmr.msrb.gmra.mxu1 %vm186_vm12, %v379_v56 }
 0x369   :  { %v425_v12 = vpop.permute.xlu2 %424 }
 0x36a   :  { %v430_v13 = vsel %vm186_vm12, %v425_v12, 0 }
 0x36b   :  { %439 = vmatpush.bf16.xpose.msrb.mxu2 %v430_v13 }
 0x372   :  { %3221 = vmatmul.msk.bf16.vlgmr.msrb.gmra.mxu2 %vm186_vm12, %v380_v63 }
 0x379   :  { %v473_v14 = vpop.permute.xlu2 %472 }
 0x37a   :  { %v478_v15 = vsel %vm186_vm12, %v473_v14, 0  ;;  %v663_v14 = vpop.permute.xlu1 %662 }
 0x37b   :  { %487 = vmatpush.bf16.xpose.msra.mxu1 %v478_v15 }
 0x381   :  { %v657_v39 = vpop.permute.xlu2 %656 }
 0x382   :  { %3223 = vmatmul.msk.bf16.vlgmr.msra.gmra.mxu1 %vm186_vm12, %v382_v7  ;;  %v666_v46 = vpack.c.bf16 %v657_v39, %v657_v39 }
 0x384   :  { %v4079_v49 = vunpack.c.l.b16 %v666_v46 }
 0x386   :  { %v717_v51 = vpack.c.b16 %v4079_v49, %v4042_v0 }
 0x388   :  { %v719_v52 = vshrl.u32 %v717_v51, 16  ;;  %v722_v56 = vshll.u32 %v717_v51, 16 }
 0x389   :  { %v449_v18 = vpop.permute.xlu0 %448 }
 0x38a   :  { %v454_v19 = vsel %vm186_vm12, %v449_v18, 0  ;;  %v721_v57 = vrot.slane %v719_v52, 2  ;;  %v724_v59 = vrot.slane %v722_v56, 3 }
 0x38b   :  { %463 = vmatpush.bf16.xpose.msrb.mxu3 %v454_v19 }
 0x38c   :  { %v4085_v60 = vor.u32 %v724_v59, %v721_v57 }
 0x391   :  { %v660_v2 = vpop.permute.xlu0 %659 }
 0x392   :  { %3222 = vmatmul.msk.bf16.vlgmr.msrb.gmra.mxu3 %vm186_vm12, %v381_v3  ;;  %v667_v3 = vpack.c.bf16 %v660_v2, %v660_v2 }
 0x394   :  { %v4093_v5 = vunpack.c.l.b16 %v667_v3 }
 0x396   :  { %v749_v0 = vpack.c.b16 %v4093_v5, %v4047_v4 }
 0x398   :  { %v751_v6 = vshrl.u32 %v749_v0, 16  ;;  %v754_v7 = vshll.u32 %v749_v0, 16 }
 0x39a   :  { %v753_v9 = vrot.slane %v751_v6, 2  ;;  %v756_v10 = vrot.slane %v754_v7, 3 }
 0x39c   :  { %v4097_v11 = vor.u32 %v756_v10, %v753_v9 }
 0x3ac   :  { %v417_v20 = vpop.f32.mrf.mxu1 }
 0x3ad   :  { %v493_v62 = vmul.f32 0.25, %v417_v20 }
 0x3af   :  { %v4089_v63 = vadd.f32 %v501_v28, %v493_v62 }
 0x3b1   :  { %v507_v1 = vsel %vm506_vm9, %v4089_v63, -inf }
 0x3b4   :  { %v419_v21 = vpop.f32.mrf.mxu1 }
 0x3f5   :  { %v441_v26 = vpop.f32.mrf.mxu2 }
 0x3f6   :  { %v494_v27 = vmul.f32 0.25, %v441_v26 }
 0x3f8   :  { %v503_v29 = vadd.f32 %v501_v28, %v494_v27 }
 0x3fa   :  { %v510_v30 = vsel %vm506_vm9, %v503_v29, -inf }
 0x3fb   :  { %511 = vmax.xlane.f32.xlu2 %v510_v30 }
 0x3fd   :  { %v443_v31 = vpop.f32.mrf.mxu2 }
 0x3ff   :  { %v489_v32 = vpop.f32.mrf.mxu1 }
 0x400   :  { %v496_v33 = vmul.f32 0.25, %v489_v32 }
 0x402   :  { %v505_v34 = vadd.f32 %v501_v28, %v496_v33 }
 0x404   :  { %v516_v35 = vsel %vm506_vm9, %v505_v34, -inf }
 0x405   :  { %517 = vmax.xlane.f32.xlu1 %v516_v35 }
 0x407   :  { %v491_v36 = vpop.f32.mrf.mxu1 }
 0x413   :  { %387 = vrot.lane.b32.xlu2 %v4020_v53, %s3745_s5 }
 0x415   :  { %v465_v38 = vpop.f32.mrf.mxu3 }
 0x416   :  { %v495_v40 = vmul.f32 0.25, %v465_v38  ;;  %v665_v38 = vpack.c.bf16 %v4037_v61, %v4037_v61 }
 0x418   :  { %v504_v44 = vadd.f32 %v501_v28, %v495_v40  ;;  %v4121_v46 = vunpack.c.l.b16 %v665_v38 }
 0x41a   :  { %v513_v48 = vsel %vm506_vm9, %v504_v44, -inf }
 0x41b   :  { %514 = vmax.xlane.f32.xlu0 %v513_v48 }
 0x41d   :  { %v467_v50 = vpop.f32.mrf.mxu3 }
 0x41e   :  { %384 = vrot.lane.b32.xlu1 %v4020_v53, %s3743_s27  ;;  %v685_v50 = vpack.c.b16 %v4121_v46, %v4031_v58 }
 0x420   :  { %v687_v57 = vshrl.u32 %v685_v50, 16  ;;  %v690_v59 = vshll.u32 %v685_v50, 16 }
 0x422   :  { %v689_v61 = vrot.slane %v687_v57, 2 }
 0x42f   :  { %726 = vrot.lane.b32.xlu0 %v4085_v60, %s4950_s7 }
 0x448   :  { %508 = vmax.xlane.f32.xlu1 %v507_v1 }
 0x461   :  { %758 = vrot.lane.b32.xlu1 %v4097_v11, %s4950_s7 }
 0x46e   :  { %v512_v12 = vpop.xlane.xlu2 %511 }
 0x46f   :  { %v520_v13 = vsub.f32 %v503_v29, %v512_v12 }
 0x471   :  { %v525_v15 = vmul.f32 1.442695, %v520_v13 }
 0x473   :  { %3614 = vpow2.f32 %v525_v15 }
 0x476   :  { %v388_v18 = vpop.permute.xlu2 %387 }
 0x477   :  { %v4101_v19 = vpack.c.bf16 %v388_v18, %v388_v18 }
 0x478   :  { %v518_v20 = vpop.xlane.xlu1 %517 }
 0x479   :  { %v3615_v21 = vpop.eup %3614  ;;  %v602_v4 = vand.u32 %v4022_v54, %v4101_v19  ;;  %v522_v22 = vsub.f32 %v505_v34, %v518_v20  ;;  %v668_v34 = vpack.c.bf16 %v663_v14, %v663_v14 }
 0x47a   :  { %v534_v23 = vsel %vm506_vm9, %v3615_v21, 0.0 }
 0x47b   :  { %v529_v24 = vmul.f32 1.442695, %v522_v22  ;;  %535 = vadd.xlane.f32.xlu2 %v534_v23  ;;  %611 = vmatpush.bf16.msra.mxu3 %v602_v4  ;;  %v4114_v36 = vunpack.c.l.b16 %v668_v34 }
 0x47d   :  { %3616 = vpow2.f32 %v529_v24  ;;  %v781_v39 = vpack.c.b16 %v4114_v36, %v4052_v8  ;;  %v692_v8 = vrot.slane %v690_v59, 3 }
 0x47f   :  { %v786_v48 = vshll.u32 %v781_v39, 16  ;;  %v693_v62 = vor.u32 %v692_v8, %v689_v61 }
 0x481   :  { %v788_v52 = vrot.slane %v786_v48, 3  ;;  %v815_v48 = vld [vmem:[%s4923_s3 + $0x1] sm:$0x1] }
 0x482   :  { %v816_v50 = vcvt.s32.f32 %v815_v48 }
 0x483   :  { %v3617_v25 = vpop.eup %3616 }
 0x484   :  { %v540_v26 = vsel %vm506_vm9, %v3617_v25, 0.0 }
 0x485   :  { %541 = vadd.xlane.f32.xlu0 %v540_v26 }
 0x48e   :  { %v515_v27 = vpop.xlane.xlu0 %514 }
 0x48f   :  { %v521_v28 = vsub.f32 %v504_v44, %v515_v27 }
 0x490   :  { %v385_v29 = vpop.permute.xlu1 %384 }
 0x491   :  { %v527_v30 = vmul.f32 1.442695, %v521_v28  ;;  %v4107_v31 = vpack.c.bf16 %v385_v29, %v385_v29 }
 0x493   :  { %3618 = vpow2.f32 %v527_v30  ;;  %v583_v32 = vand.u32 %v4022_v54, %v4107_v31  ;;  %390 = vrot.lane.b32.xlu2 %v4020_v53, %s3746_s30  ;;  %v783_v53 = vshrl.u32 %v781_v39, 16 }
 0x495   :  { %592 = vmatpush.bf16.msra.mxu2 %v583_v32  ;;  %v785_v51 = vrot.slane %v783_v53, 2 }
 0x497   :  { %v789_v56 = vor.u32 %v788_v52, %v785_v51  ;;  %v817_v52 = vsub.f32 1.0, %v816_v50 }
 0x499   :  { %v3619_v33 = vpop.eup %3618  ;;  %v818_v57 = vmul.f32 -1e+09, %v817_v52 }
 0x49a   :  { %v537_v35 = vsel %vm506_vm9, %v3619_v33, 0.0 }
 0x49b   :  { %538 = vadd.xlane.f32.xlu0 %v537_v35  ;;  %v819_v61 = vperm.slane %v818_v57, 0 }
 0x4a1   :  { %v727_v40 = vpop.permute.xlu0 %726 }
 0x4a2   :  { %v732_v44 = vsel %vm186_vm12, %v727_v40, 0 }
 0x4a3   :  { %741 = vmatpush.bf16.xpose.msrb.mxu2 %v732_v44 }
 0x4af   :  { %790 = vrot.lane.b32.xlu0 %v789_v56, %s4950_s7 }
 0x4b7   :  { %694 = vrot.lane.b32.xlu0 %v693_v62, %s4950_s7 }
 0x4bb   :  { %v509_v1 = vpop.xlane.xlu1 %508 }
 0x4bc   :  { %v519_v2 = vsub.f32 %v4089_v63, %v509_v1 }
 0x4be   :  { %v523_v3 = vmul.f32 1.442695, %v519_v2 }
 0x4c0   :  { %3620 = vpow2.f32 %v523_v3 }
 0x4c6   :  { %v3621_v0 = vpop.eup %3620 }
 0x4c7   :  { %v531_v58 = vsel %vm506_vm9, %v3621_v0, 0.0 }
 0x4c8   :  { %532 = vadd.xlane.f32.xlu2 %v531_v58 }
 0x4d3   :  { %v759_v6 = vpop.permute.xlu1 %758 }
 0x4d4   :  { %v764_v7 = vsel %vm186_vm12, %v759_v6, 0 }
 0x4d5   :  { %773 = vmatpush.bf16.xpose.msrb.mxu3 %v764_v7 }
 0x4ee   :  { %v536_v9 = vpop.xlane.xlu2 %535 }
 0x4ef   :  { %3622 = vrcp.f32 %v536_v9 }
 0x4f5   :  { %v3623_v10 = vpop.eup %3622 }
 0x4f6   :  { %v548_v12 = vmul.f32 %v3623_v10, %v3615_v21  ;;  %v391_v13 = vpop.permute.xlu2 %390 }
 0x4f7   :  { %v4130_v14 = vpack.c.bf16 %v391_v13, %v391_v13 }
 0x4f8   :  { %v552_v15 = vpack.c.bf16 %v548_v12, %v548_v12  ;;  %v542_v63 = vpop.xlane.xlu0 %541 }
 0x4f9   :  { %v621_v18 = vand.u32 %v4022_v54, %v4130_v14  ;;  %3624 = vrcp.f32 %v542_v63 }
 0x4fa   :  { %3225 = vmatmul.msk.bf16.vlgmr.msra.gmra.mxu2 %vm555_vm10, %v552_v15 }
 0x4fb   :  { %630 = vmatpush.bf16.msrb.mxu1 %v621_v18 }
 0x4ff   :  { %v3625_v20 = vpop.eup %3624 }
 0x500   :  { %v550_v4 = vmul.f32 %v3625_v20, %v3617_v25  ;;  %v4143_v25 = vadd.f32 %v4074_v37, %v295_v47 }
 0x502   :  { %v554_v22 = vpack.c.bf16 %v550_v4, %v550_v4 }
 0x504   :  { %3227 = vmatmul.msk.bf16.vlgmr.msrb.gmra.mxu1 %vm555_vm10, %v554_v22 }
 0x50a   :  { %3229 = vmatmul.msk.bf16.vlgmr.msrb.gmra.mxu2 %vm186_vm12, %v4085_v60  ;;  %v679_v60 = vpack.c.bf16 %v4143_v25, %v4143_v25 }
 0x50c   :  { %v4151_v32 = vunpack.c.l.b16 %v679_v60 }
 0x50e   :  { %v539_v21 = vpop.xlane.xlu0 %538 }
 0x50f   :  { %3626 = vrcp.f32 %v539_v21 }
 0x515   :  { %v3627_v23 = vpop.eup %3626 }
 0x516   :  { %v549_v24 = vmul.f32 %v3627_v23, %v3619_v33  ;;  %v874_v33 = vunpack.c.l.b16 %v4027_v55 }
 0x518   :  { %v553_v26 = vpack.c.bf16 %v549_v24, %v549_v24  ;;  %v876_v45 = vpack.c.b16 %v4151_v32, %v874_v33 }
 0x51a   :  { %3226 = vmatmul.msk.bf16.vlgmr.msra.gmra.mxu3 %vm555_vm10, %v553_v26  ;;  %v878_v34 = vshrl.u32 %v876_v45, 16  ;;  %v881_v47 = vshll.u32 %v876_v45, 16 }
 0x51c   :  { %v880_v35 = vrot.slane %v878_v34, 2  ;;  %v883_v38 = vrot.slane %v881_v47, 3 }
 0x521   :  { %v791_v27 = vpop.permute.xlu0 %790 }
 0x522   :  { %v796_v28 = vsel %vm186_vm12, %v791_v27, 0 }
 0x523   :  { %805 = vmatpush.bf16.xpose.msra.mxu1 %v796_v28 }
 0x529   :  { %v695_v29 = vpop.permute.xlu0 %694 }
 0x52a   :  { %v700_v30 = vsel %vm186_vm12, %v695_v29, 0  ;;  %3230 = vmatmul.msk.bf16.vlgmr.msrb.gmra.mxu3 %vm186_vm12, %v4097_v11  ;;  %3231 = vmatmul.msk.bf16.vlgmr.msra.gmra.mxu1 %vm186_vm12, %v789_v56  ;;  %v884_v11 = vor.u32 %v883_v38, %v880_v35 }
 0x52b   :  { %709 = vmatpush.bf16.xpose.msra.mxu0 %v700_v30 }
 0x52c   :  { %v889_v53 = vand.u32 %v884_v11, %v4022_v54 }
 0x53b   :  { %v533_v37 = vpop.xlane.xlu2 %532 }
 0x53c   :  { %3628 = vrcp.f32 %v533_v37  ;;  %v938_v37 = vunpack.c.l.b16 %v4101_v19  ;;  %v1039_v19 = vpack.c.b16 %v4079_v49, %v4079_v49 }
 0x542   :  { %v3629_v39 = vpop.eup %3628 }
 0x543   :  { %v547_v40 = vmul.f32 %v3629_v39, %v3621_v0 }
 0x545   :  { %v551_v44 = vpack.c.bf16 %v547_v40, %v547_v40 }
 0x547   :  { %3224 = vmatmul.msk.bf16.vlgmr.msrb.gmra.mxu0 %vm555_vm10, %v551_v44 }
 0x548   :  { %898 = vmatpush.bf16.msrb.mxu0 %v889_v53 }
 0x557   :  { %3228 = vmatmul.msk.bf16.vlgmr.msra.gmra.mxu0 %vm186_vm12, %v693_v62 }
 0x57d   :  { %v4158_v55 = vpop.f32.mrf.mxu2 }
 0x581   :  { %v4163_v51 = vpop.f32.mrf.mxu1 }
 0x585   :  { %v596_v56 = vpop.f32.mrf.mxu2 }
 0x589   :  { %v634_v59 = vpop.f32.mrf.mxu1 }
 0x58d   :  { %v743_v8 = vpop.f32.mrf.mxu2 }
 0x58e   :  { %v812_v1 = vmul.f32 0.25, %v743_v8 }
 0x590   :  { %v821_v2 = vadd.f32 %v819_v61, %v812_v1  ;;  %v906_v1 = vunpack.c.l.b16 %v4107_v31  ;;  %v1062_v31 = vpack.c.b16 %v4093_v5, %v4093_v5  ;;  %v1016_v5 = vpack.c.b16 %v4121_v46, %v4121_v46 }
 0x592   :  { %v827_v3 = vsel %vm506_vm9, %v821_v2, -inf }
 0x593   :  { %828 = vmax.xlane.f32.xlu1 %v827_v3 }
 0x595   :  { %v745_v62 = vpop.f32.mrf.mxu2 }
 0x59d   :  { %v4166_v0 = vpop.f32.mrf.mxu3 }
 0x5a5   :  { %v615_v58 = vpop.f32.mrf.mxu3 }
 0x5a6   :  { %v4198_v58 = vrot.slane %v1039_v19, 1 }
 0x5a7   :  { %v807_v6 = vpop.f32.mrf.mxu1 }
 0x5a8   :  { %v814_v7 = vmul.f32 0.25, %v807_v6 }
 0x5aa   :  { %v823_v9 = vadd.f32 %v819_v61, %v814_v7 }
 0x5ac   :  { %673 = vrot.lane.b32.xlu1 %v4143_v25, %s3745_s5  ;;  %v833_v10 = vsel %vm506_vm9, %v823_v9, -inf }
 0x5ad   :  { %834 = vmax.xlane.f32.xlu2 %v833_v10  ;;  %v775_v12 = vpop.f32.mrf.mxu3 }
 0x5ae   :  { %v813_v13 = vmul.f32 0.25, %v775_v12 }
 0x5af   :  { %v809_v15 = vpop.f32.mrf.mxu1 }
 0x5b0   :  { %v822_v63 = vadd.f32 %v819_v61, %v813_v13  ;;  %v4208_v15 = vrot.slane %v1062_v31, 1 }
 0x5b2   :  { %v830_v18 = vsel %vm506_vm9, %v822_v63, -inf }
 0x5b3   :  { %831 = vmax.xlane.f32.xlu0 %v830_v18  ;;  %v1085_v18 = vpack.c.b16 %v4114_v36, %v4114_v36 }
 0x5b5   :  { %v777_v20 = vpop.f32.mrf.mxu3 }
 0x5b6   :  { %v4215_v20 = vrot.slane %v1085_v18, 1 }
 0x5c4   :  { %v4172_v4 = vpop.f32.mrf.mxu0 }
 0x5c5   :  { %670 = vrot.lane.b32.xlu2 %v4143_v25, %s3743_s27 }
 0x5cc   :  { %v577_v22 = vpop.f32.mrf.mxu0 }
 0x5cd   :  { %v4221_v22 = vrot.slane %v1016_v5, 1 }
 0x5d4   :  { %v711_v21 = vpop.f32.mrf.mxu0 }
 0x5d5   :  { %v811_v23 = vmul.f32 0.25, %v711_v21 }
 0x5d7   :  { %v4176_v24 = vadd.f32 %v819_v61, %v811_v23 }
 0x5d9   :  { %v824_v26 = vsel %vm506_vm9, %v4176_v24, -inf }
 0x5da   :  { %825 = vmax.xlane.f32.xlu0 %v824_v26 }
 0x5dc   :  { %v713_v27 = vpop.f32.mrf.mxu0 }
 0x606   :  { %v829_v28 = vpop.xlane.xlu1 %828 }
 0x607   :  { %v837_v29 = vsub.f32 %v821_v2, %v829_v28 }
 0x609   :  { %v842_v30 = vmul.f32 1.442695, %v837_v29 }
 0x60b   :  { %3630 = vpow2.f32 %v842_v30 }
 0x611   :  { %v4180_v60 = vpop.eup %3630 }
 0x612   :  { %v851_v33 = vsel %vm506_vm9, %v4180_v60, 0.0 }
 0x613   :  { %852 = vadd.xlane.f32.xlu0 %v851_v33 }
 0x61e   :  { %v674_v45 = vpop.permute.xlu1 %673 }
 0x61f   :  { %v681_v34 = vpack.c.bf16 %v674_v45, %v674_v45 }
 0x620   :  { %v835_v47 = vpop.xlane.xlu2 %834 }
 0x621   :  { %v4185_v35 = vunpack.c.l.b16 %v681_v34  ;;  %v839_v38 = vsub.f32 %v823_v9, %v835_v47 }
 0x623   :  { %v940_v39 = vpack.c.b16 %v4185_v35, %v938_v37  ;;  %v846_v11 = vmul.f32 1.442695, %v839_v38 }
 0x625   :  { %v942_v40 = vshrl.u32 %v940_v39, 16  ;;  %v945_v44 = vshll.u32 %v940_v39, 16  ;;  %3632 = vpow2.f32 %v846_v11 }
 0x626   :  { %v832_v53 = vpop.xlane.xlu0 %831 }
 0x627   :  { %v944_v48 = vrot.slane %v942_v40, 2  ;;  %v947_v50 = vrot.slane %v945_v44, 3  ;;  %v838_v52 = vsub.f32 %v822_v63, %v832_v53  ;;  %676 = vrot.lane.b32.xlu0 %v4143_v25, %s3746_s30 }
 0x628   :  { %v671_v56 = vpop.permute.xlu2 %670 }
 0x629   :  { %v948_v57 = vor.u32 %v947_v50, %v944_v48  ;;  %v844_v59 = vmul.f32 1.442695, %v838_v52  ;;  %v680_v61 = vpack.c.bf16 %v671_v56, %v671_v56 }
 0x62b   :  { %v4192_v8 = vpop.eup %3632  ;;  %3634 = vpow2.f32 %v844_v59  ;;  %v907_v2 = vunpack.c.l.b16 %v680_v61  ;;  %v953_v3 = vand.u32 %v948_v57, %v4022_v54  ;;  %v1211_v59 = vpack.c.b16 %v4185_v35, %v4185_v35 }
 0x62c   :  { %v857_v62 = vsel %vm506_vm9, %v4192_v8, 0.0 }
 0x62d   :  { %v908_v25 = vpack.c.b16 %v907_v2, %v906_v1  ;;  %858 = vadd.xlane.f32.xlu1 %v857_v62  ;;  %962 = vmatpush.bf16.msra.mxu3 %v953_v3  ;;  %v1190_v45 = vpack.c.b16 %v907_v2, %v907_v2 }
 0x62f   :  { %v910_v49 = vshrl.u32 %v908_v25, 16  ;;  %v913_v6 = vshll.u32 %v908_v25, 16  ;;  %1041 = vrot.lane.b32.xlu0 %v4198_v58, %s4950_s7  ;;  %v1191_v37 = vrot.slane %v1190_v45, 1  ;;  %v1212_v25 = vrot.slane %v1211_v59, 1 }
 0x631   :  { %v4202_v7 = vpop.eup %3634  ;;  %v912_v9 = vrot.slane %v910_v49, 2  ;;  %v915_v10 = vrot.slane %v913_v6, 3  ;;  %v1196_v53 = vand.u32 %v1191_v37, %v4022_v54  ;;  %v1217_v31 = vand.u32 %v1212_v25, %v4022_v54 }
 0x632   :  { %v854_v12 = vsel %vm506_vm9, %v4202_v7, 0.0 }
 0x633   :  { %v916_v13 = vor.u32 %v915_v10, %v912_v9  ;;  %855 = vadd.xlane.f32.xlu2 %v854_v12 }
 0x635   :  { %v921_v63 = vand.u32 %v916_v13, %v4022_v54  ;;  %v1169_v13 = vpack.c.b16 %v4151_v32, %v4151_v32  ;;  %v1112_v32 = vld [vmem:[%s4923_s3 + $0x2] sm:$0x1] }
 0x637   :  { %930 = vmatpush.bf16.msra.mxu2 %v921_v63  ;;  %1064 = vrot.lane.b32.xlu0 %v4208_v15, %s4950_s7  ;;  %v1170_v18 = vrot.slane %v1169_v13, 1 }
 0x63f   :  { %1087 = vrot.lane.b32.xlu0 %v4215_v20, %s4950_s7 }
 0x647   :  { %1018 = vrot.lane.b32.xlu0 %v4221_v22, %s4950_s7  ;;  %s3761_s7 = smov 60  }
 0x64d   :  { %v826_v21 = vpop.xlane.xlu0 %825 }
 0x64e   :  { %v836_v23 = vsub.f32 %v4176_v24, %v826_v21  ;;  %v970_v24 = vunpack.c.l.b16 %v4130_v14 }
 0x650   :  { %v840_v26 = vmul.f32 1.442695, %v836_v23  ;;  %v1175_v23 = vand.u32 %v1170_v18, %v4022_v54 }
 0x652   :  { %3636 = vpow2.f32 %v840_v26  ;;  %v1113_v26 = vcvt.s32.f32 %v1112_v32 }
 0x658   :  { %v4226_v27 = vpop.eup %3636 }
 0x659   :  { %v848_v36 = vsel %vm506_vm9, %v4226_v27, 0.0 }
 0x65a   :  { %849 = vadd.xlane.f32.xlu2 %v848_v36  ;;  %v1114_v36 = vsub.f32 1.0, %v1113_v26 }
 0x686   :  { %v853_v28 = vpop.xlane.xlu0 %852 }
 0x687   :  { %3638 = vrcp.f32 %v853_v28  ;;  %v1115_v28 = vmul.f32 -1e+09, %v1114_v36 }
 0x68d   :  { %v3639_v29 = vpop.eup %3638 }
 0x68e   :  { %v865_v46 = vmul.f32 %v3639_v29, %v4180_v60  ;;  %v1116_v29 = vperm.slane %v1115_v28, 0 }
 0x690   :  { %v869_v30 = vpack.c.bf16 %v865_v46, %v865_v46 }
 0x692   :  { %3233 = vmatmul.msk.bf16.vlgmr.msra.gmra.mxu2 %vm555_vm10, %v869_v30 }
 0x699   :  { %v677_v33 = vpop.permute.xlu0 %676 }
 0x69a   :  { %v682_v34 = vpack.c.bf16 %v677_v33, %v677_v33 }
 0x69c   :  { %v971_v47 = vunpack.c.l.b16 %v682_v34 }
 0x69e   :  { %v972_v38 = vpack.c.b16 %v971_v47, %v970_v24  ;;  %v1232_v1 = vpack.c.b16 %v971_v47, %v971_v47 }
 0x6a0   :  { %v974_v39 = vshrl.u32 %v972_v38, 16  ;;  %v977_v11 = vshll.u32 %v972_v38, 16  ;;  %v859_v40 = vpop.xlane.xlu1 %858  ;;  %v1233_v49 = vrot.slane %v1232_v1, 1 }
 0x6a1   :  { %3640 = vrcp.f32 %v859_v40  ;;  %v1042_v44 = vpop.permute.xlu0 %1041 }
 0x6a2   :  { %v976_v48 = vrot.slane %v974_v39, 2  ;;  %v979_v60 = vrot.slane %v977_v11, 3  ;;  %v1047_v50 = vsel %vm186_vm12, %v1042_v44, 0  ;;  %v1238_v9 = vand.u32 %v1233_v49, %v4022_v54 }
 0x6a3   :  { %1056 = vmatpush.bf16.xpose.msrb.mxu2 %v1047_v50 }
 0x6a4   :  { %v980_v52 = vor.u32 %v979_v60, %v976_v48 }
 0x6a6   :  { %v856_v56 = vpop.xlane.xlu2 %855  ;;  %v985_v14 = vand.u32 %v980_v52, %v4022_v54 }
 0x6a7   :  { %v3641_v19 = vpop.eup %3640  ;;  %3642 = vrcp.f32 %v856_v56 }
 0x6a8   :  { %v867_v57 = vmul.f32 %v3641_v19, %v4192_v8  ;;  %994 = vmatpush.bf16.msrb.mxu1 %v985_v14 }
 0x6a9   :  { %v1065_v61 = vpop.permute.xlu0 %1064 }
 0x6aa   :  { %v871_v2 = vpack.c.bf16 %v867_v57, %v867_v57  ;;  %v1070_v3 = vsel %vm186_vm12, %v1065_v61, 0  ;;  %3237 = vmatmul.msk.bf16.vlgmr.msrb.gmra.mxu2 %vm186_vm12, %v4198_v58 }
 0x6ab   :  { %1205 = vmatpush.bf16.msra.mxu2 %v1196_v53  ;;  %1079 = vmatpush.bf16.xpose.msrb.mxu3 %v1070_v3 }
 0x6ac   :  { %3235 = vmatmul.msk.bf16.vlgmr.msrb.gmra.mxu1 %vm555_vm10, %v871_v2 }
 0x6ad   :  { %v3643_v62 = vpop.eup %3642 }
 0x6ae   :  { %v866_v8 = vmul.f32 %v3643_v62, %v4202_v7 }
 0x6b0   :  { %v870_v6 = vpack.c.bf16 %v866_v8, %v866_v8 }
 0x6b1   :  { %v1088_v35 = vpop.permute.xlu0 %1087 }
 0x6b2   :  { %v1093_v10 = vsel %vm186_vm12, %v1088_v35, 0  ;;  %3234 = vmatmul.msk.bf16.vlgmr.msra.gmra.mxu3 %vm555_vm10, %v870_v6 }
 0x6b3   :  { %1226 = vmatpush.bf16.msra.mxu3 %v1217_v31  ;;  %1102 = vmatpush.bf16.xpose.msra.mxu1 %v1093_v10 }
 0x6b9   :  { %v1019_v58 = vpop.permute.xlu0 %1018 }
 0x6ba   :  { %v1024_v12 = vsel %vm186_vm12, %v1019_v58, 0 }
 0x6bb   :  { %1247 = vmatpush.bf16.msrb.mxu1 %v1238_v9  ;;  %1033 = vmatpush.bf16.xpose.msra.mxu0 %v1024_v12 }
 0x6bc   :  { %3239 = vmatmul.msk.bf16.vlgmr.msra.gmra.mxu1 %vm186_vm12, %v4215_v20 }
 0x6c2   :  { %3238 = vmatmul.msk.bf16.vlgmr.msrb.gmra.mxu3 %vm186_vm12, %v4208_v15 }
 0x6cd   :  { %v850_v7 = vpop.xlane.xlu2 %849 }
 0x6ce   :  { %3644 = vrcp.f32 %v850_v7 }
 0x6d4   :  { %v3645_v63 = vpop.eup %3644 }
 0x6d5   :  { %v864_v5 = vmul.f32 %v3645_v63, %v4226_v27 }
 0x6d7   :  { %v868_v21 = vpack.c.bf16 %v864_v5, %v864_v5 }
 0x6d9   :  { %3232 = vmatmul.msk.bf16.vlgmr.msrb.gmra.mxu0 %vm555_vm10, %v868_v21 }
 0x6da   :  { %1184 = vmatpush.bf16.msrb.mxu0 %v1175_v23 }
 0x6e9   :  { %3236 = vmatmul.msk.bf16.vlgmr.msra.gmra.mxu0 %vm186_vm12, %v4221_v22 }
 0x715   :  { %v4260_v20 = vpop.f32.mrf.mxu2 }
 0x71d   :  { %v934_v15 = vpop.f32.mrf.mxu2 }
 0x729   :  { %v4265_v27 = vpop.f32.mrf.mxu1 }
 0x72d   :  { %v1058_v46 = vpop.f32.mrf.mxu2 }
 0x72e   :  { %v1109_v30 = vmul.f32 0.25, %v1058_v46 }
 0x730   :  { %v1118_v33 = vadd.f32 %v1116_v29, %v1109_v30 }
 0x731   :  { %v998_v45 = vpop.f32.mrf.mxu1 }
 0x732   :  { %v1124_v34 = vsel %vm506_vm9, %v1118_v33, -inf }
 0x733   :  { %1125 = vmax.xlane.f32.xlu2 %v1124_v34 }
 0x735   :  { %v964_v22 = vpop.f32.mrf.mxu3  ;;  %v1060_v24 = vpop.f32.mrf.mxu2 }
 0x739   :  { %v1104_v47 = vpop.f32.mrf.mxu1 }
 0x73a   :  { %v1111_v37 = vmul.f32 0.25, %v1104_v47 }
 0x73c   :  { %v1120_v38 = vadd.f32 %v1116_v29, %v1111_v37 }
 0x73d   :  { %v966_v39 = vpop.f32.mrf.mxu3 }
 0x73e   :  { %v1130_v11 = vsel %vm506_vm9, %v1120_v38, -inf }
 0x73f   :  { %1131 = vmax.xlane.f32.xlu0 %v1130_v11 }
 0x741   :  { %v1106_v40 = vpop.f32.mrf.mxu1 }
 0x745   :  { %v1081_v44 = vpop.f32.mrf.mxu3 }
 0x746   :  { %v1110_v53 = vmul.f32 0.25, %v1081_v44 }
 0x748   :  { %v1119_v48 = vadd.f32 %v1116_v29, %v1110_v53 }
 0x74a   :  { %v1127_v60 = vsel %vm506_vm9, %v1119_v48, -inf }
 0x74b   :  { %1128 = vmax.xlane.f32.xlu1 %v1127_v60 }
 0x74d   :  { %v1083_v50 = vpop.f32.mrf.mxu3 }
 0x756   :  { %v4270_v52 = vpop.f32.mrf.mxu0 }
 0x75e   :  { %v902_v56 = vpop.f32.mrf.mxu0 }
 0x766   :  { %v1035_v14 = vpop.f32.mrf.mxu0 }
 0x767   :  { %v1108_v19 = vmul.f32 0.25, %v1035_v14 }
 0x769   :  { %v1117_v57 = vadd.f32 %v1116_v29, %v1108_v19 }
 0x76b   :  { %v1121_v59 = vsel %vm506_vm9, %v1117_v57, -inf }
 0x76c   :  { %1122 = vmax.xlane.f32.xlu2 %v1121_v59 }
 0x76e   :  { %v1037_v61 = vpop.f32.mrf.mxu0 }
 0x76f   :  { %v3520_v61 = vld [vmem:[%s4925_s9 + $0x10] sm:$0xff] }
 0x7a6   :  { %v1126_v1 = vpop.xlane.xlu2 %1125 }
 0x7a7   :  { %v1134_v2 = vsub.f32 %v1118_v33, %v1126_v1  ;;  %v3518_v1 = vld [vmem:[%s4925_s9] sm:$0xff] }
 0x7a9   :  { %v1139_v3 = vmul.f32 1.442695, %v1134_v2 }
 0x7ab   :  { %3646 = vpow2.f32 %v1139_v3 }
 0x7b1   :  { %v3647_v62 = vpop.eup %3646 }
 0x7b2   :  { %v1132_v25 = vpop.xlane.xlu0 %1131  ;;  %v1148_v49 = vsel %vm506_vm9, %v3647_v62, 0.0 }
 0x7b3   :  { %v1136_v8 = vsub.f32 %v1120_v38, %v1132_v25  ;;  %1149 = vadd.xlane.f32.xlu1 %v1148_v49 }
 0x7b5   :  { %v1143_v6 = vmul.f32 1.442695, %v1136_v8 }
 0x7b7   :  { %3648 = vpow2.f32 %v1143_v6 }
 0x7bd   :  { %v3649_v31 = vpop.eup %3648 }
 0x7be   :  { %v1129_v35 = vpop.xlane.xlu1 %1128  ;;  %v1154_v9 = vsel %vm506_vm9, %v3649_v31, 0.0 }
 0x7bf   :  { %v1135_v10 = vsub.f32 %v1119_v48, %v1129_v35  ;;  %1155 = vadd.xlane.f32.xlu1 %v1154_v9 }
 0x7c1   :  { %v1141_v58 = vmul.f32 1.442695, %v1135_v10  ;;  %v3593_v10 = vld [vmem:[%s4924_s10] ss:$0 sm:$0xff] }
 0x7c3   :  { %3650 = vpow2.f32 %v1141_v58 }
 0x7c9   :  { %v3651_v12 = vpop.eup %3650 }
 0x7ca   :  { %v1151_v7 = vsel %vm506_vm9, %v3651_v12, 0.0 }
 0x7cb   :  { %1152 = vadd.xlane.f32.xlu2 %v1151_v7 }
 0x7d8   :  { %637 = vrot.lane.b32.xlu1 %v4158_v55, %s4948_s8 }
 0x7df   :  { %v1123_v13 = vpop.xlane.xlu2 %1122 }
 0x7e0   :  { %v1133_v63 = vsub.f32 %v1117_v57, %v1123_v13  ;;  %641 = vrot.lane.b32.xlu1 %v4166_v0, %s4944_s25  ;;  %v3521_v57 = vld [vmem:[%s4925_s9 + $0x18] sm:$0xff] }
 0x7e1   :  { %1315 = vmatpush.bf16.msra.mxu0 %v3521_v57  ;;  %v3595_v57 = vld [vmem:[%s4927_s12] ss:$0 sm:$0xff] }
 0x7e2   :  { %v1137_v18 = vmul.f32 1.442695, %v1133_v63 }
 0x7e4   :  { %3652 = vpow2.f32 %v1137_v18 }
 0x7e5   :  { %1316 = vmatpush.bf16.msra.mxu0 %v3520_v61 }
 0x7ea   :  { %v3653_v5 = vpop.eup %3652 }
 0x7eb   :  { %v1145_v21 = vsel %vm506_vm9, %v3653_v5, 0.0 }
 0x7ec   :  { %1146 = vadd.xlane.f32.xlu2 %v1145_v21 }
 0x804   :  { %1001 = vrot.lane.b32.xlu2 %v4260_v20, %s4948_s8 }
 0x80c   :  { %1005 = vrot.lane.b32.xlu2 %v964_v22, %s4944_s25 }
 0x814   :  { %645 = vrot.lane.b32.xlu2 %v4163_v51, %s4946_s26 }
 0x826   :  { %v1150_v55 = vpop.xlane.xlu1 %1149 }
 0x827   :  { %3654 = vrcp.f32 %v1150_v55 }
 0x82d   :  { %v3655_v23 = vpop.eup %3654 }
 0x82e   :  { %v1162_v15 = vmul.f32 %v3655_v23, %v3647_v62 }
 0x830   :  { %v1166_v0 = vpack.c.bf16 %v1162_v15, %v1162_v15 }
 0x832   :  { %3241 = vmatmul.msk.bf16.vlgmr.msra.gmra.mxu2 %vm555_vm10, %v1166_v0  ;;  %v1156_v32 = vpop.xlane.xlu1 %1155 }
 0x833   :  { %3656 = vrcp.f32 %v1156_v32 }
 0x839   :  { %v3657_v26 = vpop.eup %3656 }
 0x83a   :  { %v1164_v36 = vmul.f32 %v3657_v26, %v3649_v31 }
 0x83c   :  { %v1168_v28 = vpack.c.bf16 %v1164_v36, %v1164_v36 }
 0x83e   :  { %v1153_v29 = vpop.xlane.xlu2 %1152  ;;  %3243 = vmatmul.msk.bf16.vlgmr.msrb.gmra.mxu1 %vm555_vm10, %v1168_v28 }
 0x83f   :  { %3658 = vrcp.f32 %v1153_v29 }
 0x845   :  { %v3659_v20 = vpop.eup %3658 }
 0x846   :  { %v1163_v46 = vmul.f32 %v3659_v20, %v3651_v12  ;;  %v3524_v20 = vld [vmem:[%s4929_s13 + $0x10] sm:$0xff] }
 0x848   :  { %v1167_v30 = vpack.c.bf16 %v1163_v46, %v1163_v46  ;;  %v3523_v46 = vld [vmem:[%s4929_s13 + $0x8] sm:$0xff] }
 0x84a   :  { %3242 = vmatmul.msk.bf16.vlgmr.msra.gmra.mxu3 %vm555_vm10, %v1167_v30  ;;  %v638_v24 = vpop.permute.xlu1 %637 }
 0x84b   :  { %v648_v11 = vsel %vm186_vm12, %v4172_v4, %v638_v24 }
 0x852   :  { %v642_v39 = vpop.permute.xlu1 %641 }
 0x853   :  { %v650_v40 = vsel %vm649_vm11, %v648_v11, %v642_v39 }
 0x85f   :  { %v1147_v51 = vpop.xlane.xlu2 %1146 }
 0x860   :  { %3660 = vrcp.f32 %v1147_v51 }
 0x866   :  { %v3661_v33 = vpop.eup %3660 }
 0x867   :  { %v1161_v45 = vmul.f32 %v3661_v33, %v3653_v5  ;;  %v1002_v34 = vpop.permute.xlu2 %1001 }
 0x868   :  { %v1012_v47 = vsel %vm186_vm12, %v4270_v52, %v1002_v34 }
 0x869   :  { %v1165_v22 = vpack.c.bf16 %v1161_v45, %v1161_v45  ;;  %v3522_v45 = vld [vmem:[%s4929_s13] sm:$0xff] }
 0x86b   :  { %3240 = vmatmul.msk.bf16.vlgmr.msrb.gmra.mxu0 %vm555_vm10, %v1165_v22 }
 0x86f   :  { %v1006_v37 = vpop.permute.xlu2 %1005 }
 0x870   :  { %v1013_v38 = vsel %vm649_vm11, %v1012_v47, %v1006_v37 }
 0x877   :  { %v646_v44 = vpop.permute.xlu2 %645 }
 0x878   :  { %v652_v53 = vsel %vm651_vm13, %v650_v40, %v646_v44 }
 0x879   :  { %654 = vst.msk [vmem:[#allocation2] sm:$0x1f] %vm653_vm0, %v652_v53 }
 0x8b5   :  { %v1207_v48 = vpop.f32.mrf.mxu2 }
 0x8b6   :  { %1254 = vrot.lane.b32.xlu0 %v1207_v48, %s4948_s8 }
 0x8bb   :  { %v1249_v60 = vpop.f32.mrf.mxu1 }
 0x8bd   :  { %v1209_v50 = vpop.f32.mrf.mxu2 }
 0x8be   :  { %1009 = vrot.lane.b32.xlu0 %v4265_v27, %s4946_s26  ;;  %v3519_v27 = vld [vmem:[%s4925_s9 + $0x8] sm:$0xff] }
 0x8bf   :  { %1317 = vmatpush.bf16.msra.mxu0 %v3519_v27 }
 0x8c3   :  { %v1251_v52 = vpop.f32.mrf.mxu1  ;;  %1318 = vmatpush.bf16.msra.mxu0 %v3518_v1 }
 0x8cd   :  { %v1228_v56 = vpop.f32.mrf.mxu3 }
 0x8ce   :  { %1258 = vrot.lane.b32.xlu1 %v1228_v56, %s4944_s25  ;;  %v3594_v56 = vld [vmem:[%s4926_s11] ss:$0 sm:$0xff]  ;;  %s3753_s25 = smov 55  }
 0x8d5   :  { %v1230_v4 = vpop.f32.mrf.mxu3 }
 0x8d6   :  { %1262 = vrot.lane.b32.xlu1 %v1249_v60, %s4946_s26  ;;  %s3754_s26 = smov 70  }
 0x8e8   :  { %v1186_v14 = vpop.f32.mrf.mxu0 }
 0x8f0   :  { %v1188_v19 = vpop.f32.mrf.mxu0 }
 0x928   :  { %v1255_v59 = vpop.permute.xlu0 %1254 }
 0x929   :  { %v1265_v25 = vsel %vm186_vm12, %v1186_v14, %v1255_v59 }
 0x930   :  { %v1010_v2 = vpop.permute.xlu0 %1009 }
 0x931   :  { %v1014_v3 = vsel %vm651_vm13, %v1013_v38, %v1010_v2 }
 0x932   :  { %1015 = vst.msk [vmem:[#allocation2 + $0x5] sm:$0x1f] %vm653_vm0, %v1014_v3 }
 0x939   :  { %v1269_v31 = vld [vmem:[#allocation2] sm:$0xff] }
 0x940   :  { %v1259_v62 = vpop.permute.xlu1 %1258 }
 0x941   :  { %v1266_v49 = vsel %vm649_vm11, %v1265_v25, %v1259_v62  ;;  %v3533_v62 = vld [vmem:[%s4930_s15 + $0x38] sm:$0xff]  ;;  %v3532_v25 = vld [vmem:[%s4930_s15 + $0x30] sm:$0xff] }
 0x942   :  { %1520 = vmatpush.bf16.msrb.mxu3 %v3533_v62 }
 0x946   :  { %1521 = vmatpush.bf16.msrb.mxu3 %v3532_v25  ;;  %v3339_v25 = vld [vmem:[%s4962_s28 + $0x68] sm:$0xf0] }
 0x948   :  { %v1263_v8 = vpop.permute.xlu1 %1262 }
 0x949   :  { %v1267_v6 = vsel %vm651_vm13, %v1266_v49, %v1263_v8  ;;  %v3531_v49 = vld [vmem:[%s4930_s15 + $0x28] sm:$0xff]  ;;  %v3530_v8 = vld [vmem:[%s4930_s15 + $0x20] sm:$0xff] }
 0x94a   :  { %1268 = vst.msk [vmem:[#allocation2 + $0xa] sm:$0x1f] %vm653_vm0, %v1267_v6  ;;  %1522 = vmatpush.bf16.msrb.mxu3 %v3531_v49  ;;  %v3529_v6 = vld [vmem:[%s4930_s15 + $0x18] sm:$0xff] }
 0x94e   :  { %1523 = vmatpush.bf16.msrb.mxu3 %v3530_v8  ;;  %v3329_v8 = vld [vmem:[%s4962_s28 + $0x50] sm:$0xf] }
 0x951   :  { %v1270_v35 = vld [vmem:[#allocation2 + $0x8] sm:$0x7f] }
 0x952   :  { %v1271_v9 = vpack.c.bf16 %v1270_v35, %v1269_v31  ;;  %1524 = vmatpush.bf16.msrb.mxu3 %v3529_v6  ;;  %v3528_v31 = vld [vmem:[%s4930_s15 + $0x10] sm:$0xff]  ;;  %v3527_v35 = vld [vmem:[%s4930_s15 + $0x8] sm:$0xff]  ;;  %v3537_v6 = vld [vmem:[%s4962_s28 + $0x54] sm:$0xf0] }
 0x954   :  { %3260 = vmatmul.msk.bf16.vlgmr.msra.gmra.mxu0 %vm220_vm14, %v1271_v9  ;;  %v3526_v9 = vld [vmem:[%s4930_s15] sm:$0xff] }
 0x956   :  { %1525 = vmatpush.bf16.msrb.mxu3 %v3528_v31  ;;  %v3536_v31 = vld [vmem:[%s4962_s28 + $0x54] sm:$0xf] }
 0x95a   :  { %1526 = vmatpush.bf16.msrb.mxu3 %v3527_v35  ;;  %v3330_v35 = vor.u32 %v3537_v6, %v3329_v8 }
 0x95e   :  { %1527 = vmatpush.bf16.msrb.mxu3 %v3526_v9  ;;  %v3331_v9 = vld [vmem:[%s4962_s28 + $0x58] sm:$0xf0] }
 0x9d1   :  { %v1320_v58 = vpop.f32.mrf.mxu0 }
 0x9d2   :  { %v1321_v12 = vadd.f32 %v3593_v10, %v1320_v58 }
 0x9d4   :  { %v1325_v7 = vadd.f32 %v1321_v12, %v4002_v41 }
 0x9d6   :  { %v1329_v13 = vsel %vm220_vm14, %v1325_v7, 0.0 }
 0x9d7   :  { %1330 = vadd.xlane.f32.xlu2 %v1329_v13 }
 0x9d9   :  { %v1322_v63 = vpop.f32.mrf.mxu0 }
 0x9da   :  { %v1323_v18 = vadd.f32 %v3593_v10, %v1322_v63  ;;  %v3596_v10 = vld [vmem:[%s4928_s14] ss:$0 sm:$0xff] }
 0x9dc   :  { %v1326_v5 = vadd.f32 %v1323_v18, %v4004_v43  ;;  %v3525_v43 = vld [vmem:[%s4929_s13 + $0x18] sm:$0xff] }
 0x9dd   :  { %1427 = vmatpush.bf16.msrb.mxu2 %v3525_v43 }
 0x9de   :  { %v1332_v21 = vsel %vm224_vm15, %v1326_v5, 0.0 }
 0x9df   :  { %1333 = vadd.xlane.f32.xlu0 %v1332_v21 }
 0x9e1   :  { %1428 = vmatpush.bf16.msrb.mxu2 %v3524_v20 }
 0x9e5   :  { %1429 = vmatpush.bf16.msrb.mxu2 %v3523_v46 }
 0x9e9   :  { %1430 = vmatpush.bf16.msrb.mxu2 %v3522_v45 }
 0xa4a   :  { %v1331_v55 = vpop.xlane.xlu2 %1330 }
 0xa4b   :  { %v1335_v23 = vmul.f32 %v1331_v55, %v3930_v42 }
 0xa4d   :  { %v1337_v15 = vsub.f32 %v1325_v7, %v1335_v23 }
 0xa4f   :  { %v1339_v0 = vmul.f32 %v1337_v15, %v1337_v15 }
 0xa51   :  { %v1341_v32 = vsel %vm220_vm14, %v1339_v0, 0.0 }
 0xa52   :  { %v1334_v26 = vpop.xlane.xlu0 %1333  ;;  %1342 = vadd.xlane.f32.xlu1 %v1341_v32 }
 0xa53   :  { %v1336_v41 = vmul.f32 %v1334_v26, %v3930_v42 }
 0xa55   :  { %v1338_v36 = vsub.f32 %v1326_v5, %v1336_v41 }
 0xa57   :  { %v1340_v28 = vmul.f32 %v1338_v36, %v1338_v36 }
 0xa59   :  { %v1344_v29 = vsel %vm224_vm15, %v1340_v28, 0.0 }
 0xa5a   :  { %1345 = vadd.xlane.f32.xlu2 %v1344_v29 }
 0xac5   :  { %v1343_v30 = vpop.xlane.xlu1 %1342 }
 0xac6   :  { %v1347_v51 = vmul.f32 %v1343_v30, %v3930_v42 }
 0xac8   :  { %v1349_v33 = vadd.f32 1e-12, %v1347_v51 }
 0xaca   :  { %3662 = vrsqrt.f32 %v1349_v33  ;;  %vm1357_vm2 = vweird.f32 %v1349_v33 }
 0xacd   :  { %v1346_v34 = vpop.xlane.xlu2 %1345 }
 0xace   :  { %v1348_v22 = vmul.f32 %v1346_v34, %v3930_v42 }
 0xad0   :  { %v3663_v24 = vpop.eup %3662  ;;  %v1350_v47 = vadd.f32 1e-12, %v1348_v22 }
 0xad1   :  { %v1352_v37 = vmul.f32 %v3663_v24, %v1349_v33  ;;  %vm1358_vm1 = vweird.f32 %v3663_v24  ;;  %v3597_v33 = vld [vmem:[%s4931_s16] ss:$0 sm:$0xff] }
 0xad2   :  { %3664 = vrsqrt.f32 %v1350_v47  ;;  %vm1359_vm3 = vmor %vm1357_vm2, %vm1358_vm1  ;;  %vm1367_vm5 = vweird.f32 %v1350_v47 }
 0xad3   :  { %v1353_v38 = vmul.f32 %v3663_v24, %v1352_v37 }
 0xad5   :  { %v1354_v39 = vmul.f32 0.5, %v1353_v38 }
 0xad7   :  { %v1355_v11 = vsub.f32 1.5, %v1354_v39 }
 0xad8   :  { %v3665_v40 = vpop.eup %3664 }
 0xad9   :  { %v1356_v44 = vmul.f32 %v3663_v24, %v1355_v11  ;;  %v1362_v53 = vmul.f32 %v3665_v40, %v1350_v47  ;;  %vm1368_vm4 = vweird.f32 %v3665_v40 }
 0xada   :  { %vm1369_vm6 = vmor %vm1367_vm5, %vm1368_vm4 }
 0xadb   :  { %v1363_v48 = vmul.f32 %v3665_v40, %v1362_v53  ;;  %v1360_v60 = vsel %vm1359_vm3, %v3663_v24, %v1356_v44 }
 0xadc   :  { %v1371_v4 = vmul.f32 %v1360_v60, %v1337_v15 }
 0xadd   :  { %v1364_v50 = vmul.f32 0.5, %v1363_v48 }
 0xade   :  { %v1376_v59 = vmul.f32 %v3594_v56, %v1371_v4 }
 0xadf   :  { %v1365_v52 = vsub.f32 1.5, %v1364_v50 }
 0xae0   :  { %v1381_v1 = vadd.f32 %v3595_v57, %v1376_v59 }
 0xae1   :  { %v1366_v14 = vmul.f32 %v3665_v40, %v1365_v52 }
 0xae3   :  { %v1370_v19 = vsel %vm1369_vm6, %v3665_v40, %v1366_v14  ;;  %v3345_v14 = vld [vmem:[%s4962_s28 + $0x70] sm:$0xf] }
 0xae4   :  { %v1372_v61 = vmul.f32 %v1370_v19, %v1338_v36  ;;  %v3541_v19 = vld [vmem:[%s4962_s28 + $0x74] sm:$0xf0] }
 0xae5   :  { %v3346_v59 = vor.u32 %v3541_v19, %v3345_v14 }
 0xae6   :  { %v1377_v27 = vmul.f32 %v3594_v56, %v1372_v61  ;;  %v3347_v61 = vld [vmem:[%s4962_s28 + $0x78] sm:$0xf0] }
 0xae7   :  { %1662 = vmatpush.bf16.msra.mxu1 %v3346_v59 }
 0xae8   :  { %v1382_v2 = vadd.f32 %v3595_v57, %v1377_v27  ;;  %v3540_v57 = vld [vmem:[%s4962_s28 + $0x74] sm:$0xf] }
 0xae9   :  { %v3350_v27 = vor.u32 %v3540_v57, %v3347_v61 }
 0xaea   :  { %v1383_v3 = vpack.c.bf16 %v1382_v2, %v1381_v1 }
 0xaeb   :  { %1676 = vmatpush.bf16.msrb.mxu0 %v3350_v27 }
 0xaec   :  { %3277 = vmatmul.msk.bf16.vlgmr.msrb.gmra.mxu2 %vm220_vm14, %v1383_v3  ;;  %v3538_v3 = vld [vmem:[%s4962_s28 + $0x64] sm:$0xf] }
 0xaed   :  { %v3342_v49 = vor.u32 %v3538_v3, %v3339_v25 }
 0xaef   :  { %1677 = vmatpush.bf16.msrb.mxu0 %v3342_v49 }
 0xb6f   :  { %v1432_v58 = vpop.f32.mrf.mxu2 }
 0xb70   :  { %v1433_v12 = vadd.f32 %v3596_v10, %v1432_v58  ;;  %v3334_v58 = vor.u32 %v3536_v31, %v3331_v9 }
 0xb72   :  { %v1439_v7 = vmul.f32 0.044715, %v1433_v12  ;;  %v1437_v29 = vmul.f32 0.5, %v1433_v12  ;;  %1678 = vmatpush.bf16.msrb.mxu0 %v3334_v58 }
 0xb74   :  { %v1441_v13 = vmul.f32 %v1439_v7, %v1433_v12  ;;  %v3321_v7 = vld [vmem:[%s4962_s28 + $0x40] sm:$0xf] }
 0xb76   :  { %v1443_v63 = vmul.f32 %v1441_v13, %v1433_v12  ;;  %v3535_v13 = vld [vmem:[%s4962_s28 + $0x44] sm:$0xf0] }
 0xb77   :  { %v1434_v18 = vpop.f32.mrf.mxu2 }
 0xb78   :  { %v1445_v5 = vadd.f32 %v1443_v63, %v1433_v12  ;;  %v1435_v21 = vadd.f32 %v3596_v10, %v1434_v18  ;;  %v3534_v63 = vld [vmem:[%s4962_s28 + $0x44] sm:$0xf] }
 0xb7a   :  { %v1440_v55 = vmul.f32 0.044715, %v1435_v21  ;;  %v1447_v23 = vmul.f32 0.7978846, %v1445_v5  ;;  %v1438_v43 = vmul.f32 0.5, %v1435_v21  ;;  %v3322_v5 = vor.u32 %v3535_v13, %v3321_v7 }
 0xb7c   :  { %v1442_v15 = vmul.f32 %v1440_v55, %v1435_v21  ;;  %3666 = vtanh.f32 %v1447_v23 }
 0xb7e   :  { %v1444_v0 = vmul.f32 %v1442_v15, %v1435_v21 }
 0xb80   :  { %v1446_v32 = vadd.f32 %v1444_v0, %v1435_v21  ;;  %v3323_v21 = vld [vmem:[%s4962_s28 + $0x48] sm:$0xf0] }
 0xb81   :  { %v3326_v55 = vor.u32 %v3534_v63, %v3323_v21 }
 0xb82   :  { %v1448_v26 = vmul.f32 0.7978846, %v1446_v32  ;;  %v3667_v41 = vpop.eup %3666 }
 0xb83   :  { %v1451_v36 = vadd.f32 1.0, %v3667_v41  ;;  %1679 = vmatpush.bf16.msrb.mxu0 %v3326_v55 }
 0xb84   :  { %3668 = vtanh.f32 %v1448_v26 }
 0xb85   :  { %v1453_v46 = vmul.f32 %v1451_v36, %v1437_v29 }
 0xb8a   :  { %v3669_v28 = vpop.eup %3668 }
 0xb8b   :  { %v1452_v20 = vadd.f32 1.0, %v3669_v28 }
 0xb8d   :  { %v1454_v30 = vmul.f32 %v1452_v20, %v1438_v43 }
 0xb8f   :  { %v1455_v51 = vpack.c.bf16 %v1454_v30, %v1453_v46 }
 0xb91   :  { %1528 = vmatmul.bf16.vlgmr.msrb.gmra.mxu3 %v1455_v51 }
 0xc14   :  { %v1529_v45 = vpop.f32.mrf.mxu3 }
 0xc15   :  { %v1534_v34 = vadd.f32 %v1529_v45, %v1381_v1  ;;  %v3337_v1 = vld [vmem:[%s4962_s28 + $0x60] sm:$0xf] }
 0xc16   :  { %v3598_v45 = vld [vmem:[%s4932_s17] ss:$0 sm:$0xff] }
 0xc17   :  { %v1540_v22 = vadd.f32 %v3597_v33, %v1534_v34 }
 0xc19   :  { %v1544_v24 = vsel %vm220_vm14, %v1540_v22, 0.0 }
 0xc1a   :  { %1545 = vadd.xlane.f32.xlu0 %v1544_v24 }
 0xc1c   :  { %v1531_v47 = vpop.f32.mrf.mxu3 }
 0xc1d   :  { %v1535_v37 = vadd.f32 %v1531_v47, %v1382_v2  ;;  %v3539_v2 = vld [vmem:[%s4962_s28 + $0x64] sm:$0xf0]  ;;  %v3599_v47 = vld [vmem:[%s4933_s18] ss:$0 sm:$0xff] }
 0xc1e   :  { %v3338_v62 = vor.u32 %v3539_v2, %v3337_v1 }
 0xc1f   :  { %v1541_v38 = vadd.f32 %v3597_v33, %v1535_v37 }
 0xc20   :  { %1663 = vmatpush.bf16.msra.mxu1 %v3338_v62 }
 0xc21   :  { %v1547_v39 = vsel %vm224_vm15, %v1541_v38, 0.0 }
 0xc22   :  { %1548 = vadd.xlane.f32.xlu1 %v1547_v39 }
 0xc24   :  { %1664 = vmatpush.bf16.msra.mxu1 %v3330_v35 }
 0xc28   :  { %1665 = vmatpush.bf16.msra.mxu1 %v3322_v5 }
 0xc8d   :  { %v1546_v11 = vpop.xlane.xlu0 %1545 }
 0xc8e   :  { %v1550_v40 = vmul.f32 %v1546_v11, %v3930_v42 }
 0xc90   :  { %v4387_v44 = vsub.f32 %v1540_v22, %v1550_v40 }
 0xc92   :  { %v1554_v53 = vmul.f32 %v4387_v44, %v4387_v44 }
 0xc94   :  { %v1556_v48 = vsel %vm220_vm14, %v1554_v53, 0.0 }
 0xc95   :  { %1557 = vadd.xlane.f32.xlu2 %v1556_v48  ;;  %v1549_v60 = vpop.xlane.xlu1 %1548 }
 0xc96   :  { %v1551_v50 = vmul.f32 %v1549_v60, %v3930_v42 }
 0xc98   :  { %v4393_v52 = vsub.f32 %v1541_v38, %v1551_v50 }
 0xc9a   :  { %v1555_v56 = vmul.f32 %v4393_v52, %v4393_v52 }
 0xc9c   :  { %v1559_v4 = vsel %vm224_vm15, %v1555_v56, 0.0 }
 0xc9d   :  { %1560 = vadd.xlane.f32.xlu0 %v1559_v4 }
 0xd08   :  { %v1558_v10 = vpop.xlane.xlu2 %1557 }
 0xd09   :  { %v1562_v12 = vmul.f32 %v1558_v10, %v3930_v42 }
 0xd0b   :  { %v1564_v18 = vadd.f32 1e-12, %v1562_v12 }
 0xd0d   :  { %3670 = vrsqrt.f32 %v1564_v18  ;;  %vm1572_vm1 = vweird.f32 %v1564_v18 }
 0xd10   :  { %v1561_v23 = vpop.xlane.xlu0 %1560 }
 0xd11   :  { %v1563_v15 = vmul.f32 %v1561_v23, %v3930_v42  ;;  %v1814_v23 = vld [vmem:[%s4923_s3] sm:$0x1] }
 0xd13   :  { %v3671_v0 = vpop.eup %3670  ;;  %v1565_v32 = vadd.f32 1e-12, %v1563_v15  ;;  %v1815_v15 = vcvt.s32.f32 %v1814_v23 }
 0xd14   :  { %v1567_v26 = vmul.f32 %v3671_v0, %v1564_v18  ;;  %vm1573_vm8 = vweird.f32 %v3671_v0 }
 0xd15   :  { %3672 = vrsqrt.f32 %v1565_v32  ;;  %vm1574_vm2 = vmor %vm1572_vm1, %vm1573_vm8  ;;  %vm1582_vm4 = vweird.f32 %v1565_v32 }
 0xd16   :  { %v1568_v41 = vmul.f32 %v3671_v0, %v1567_v26 }
 0xd18   :  { %v1569_v36 = vmul.f32 0.5, %v1568_v41 }
 0xd1a   :  { %v1570_v28 = vsub.f32 1.5, %v1569_v36 }
 0xd1b   :  { %v3673_v29 = vpop.eup %3672 }
 0xd1c   :  { %v1571_v43 = vmul.f32 %v3671_v0, %v1570_v28  ;;  %v1577_v20 = vmul.f32 %v3673_v29, %v1565_v32  ;;  %vm1583_vm3 = vweird.f32 %v3673_v29 }
 0xd1d   :  { %vm1584_vm5 = vmor %vm1582_vm4, %vm1583_vm3 }
 0xd1e   :  { %v1578_v46 = vmul.f32 %v3673_v29, %v1577_v20  ;;  %v1575_v30 = vsel %vm1574_vm2, %v3671_v0, %v1571_v43  ;;  %v1816_v0 = vsub.f32 1.0, %v1815_v15 }
 0xd1f   :  { %v1586_v34 = vmul.f32 %v1575_v30, %v4387_v44  ;;  %v4467_v44 = vld [vmem:[%s4965_s4 + $0x2] sm:$0x3]  ;;  %s4966_s4 = smov 64  }
 0xd20   :  { %v1579_v51 = vmul.f32 0.5, %v1578_v46  ;;  %v1611_v48 = vperm.slane %v4467_v44, 0  ;;  %v1612_v60 = vperm.slane %v4467_v44, 1  ;;  %v1817_v32 = vmul.f32 -1e+09, %v1816_v0 }
 0xd21   :  { %v1591_v37 = vmul.f32 %v3598_v45, %v1586_v34 }
 0xd22   :  { %v1580_v33 = vsub.f32 1.5, %v1579_v51  ;;  %v1818_v26 = vperm.slane %v1817_v32, 0 }
 0xd23   :  { %v4456_v11 = vadd.f32 %v3599_v47, %v1591_v37 }
 0xd24   :  { %v1581_v22 = vmul.f32 %v3673_v29, %v1580_v33 }
 0xd26   :  { %v1585_v24 = vsel %vm1584_vm5, %v3673_v29, %v1581_v22 }
 0xd27   :  { %v1587_v38 = vmul.f32 %v1585_v24, %v4393_v52 }
 0xd29   :  { %v1592_v39 = vmul.f32 %v3598_v45, %v1587_v38 }
 0xd2b   :  { %v4458_v40 = vadd.f32 %v3599_v47, %v1592_v39 }
 0xd2d   :  { %v1598_v53 = vpack.c.bf16 %v4458_v40, %v4456_v11 }
 0xd2f   :  { %3351 = vmatmul.msk.bf16.vlgmr.msra.gmra.mxu1 %vm220_vm14, %v1598_v53  ;;  %3352 = vmatmul.msk.bf16.vlgmr.msrb.gmra.mxu0 %vm220_vm14, %v1598_v53 }
 0xdac   :  { %v1667_v50 = vpop.f32.mrf.mxu1  ;;  %v1681_v52 = vpop.f32.mrf.mxu0 }
 0xdad   :  { %v1668_v56 = vadd.f32 %v1667_v50, %v1611_v48  ;;  %v4473_v4 = vadd.f32 %v1681_v52, %v1612_v60 }
 0xdaf   :  { %v4477_v14 = vpack.c.bf16 %v4473_v4, %v4473_v4  ;;  %1690 = vrot.lane.b32.xlu0 %v1668_v56, %s3745_s5  ;;  %1687 = vrot.lane.b32.xlu2 %v1668_v56, %s3743_s27  ;;  %v1696_v19 = vpack.c.bf16 %v1668_v56, %v1668_v56 }
 0xdb0   :  { %1693 = vrot.lane.b32.xlu1 %v1668_v56, %s3746_s30 }
 0xdb1   :  { %v1875_v57 = vand.u32 %v4477_v14, %v4022_v54  ;;  %v4484_v59 = vunpack.c.l.b16 %v1696_v19 }
 0xdb3   :  { %1884 = vmatpush.bf16.msra.mxu3 %v1875_v57  ;;  %v1716_v61 = vpack.c.b16 %v4484_v59, %v4484_v59 }
 0xdb4   :  { %v1669_v62 = vpop.f32.mrf.mxu1  ;;  %v4526_v45 = vpop.f32.mrf.mxu0 }
 0xdb5   :  { %v4494_v25 = vadd.f32 %v1669_v62, %v1611_v48 }
 0xdb8   :  { %1717 = vrot.lane.b32.xlu1 %v1716_v61, %s4966_s4 }
 0xe09   :  { %v1688_v27 = vpop.permute.xlu2 %1687 }
 0xe0a   :  { %v1697_v1 = vpack.c.bf16 %v1688_v27, %v1688_v27 }
 0xe0c   :  { %v4489_v2 = vunpack.c.l.b16 %v1697_v1 }
 0xe0e   :  { %v1740_v3 = vpack.c.b16 %v4489_v2, %v4489_v2 }
 0xe10   :  { %1741 = vrot.lane.b32.xlu2 %v1740_v3, %s4966_s4 }
 0xe18   :  { %1967 = vrot.lane.b32.xlu2 %v4494_v25, %s3745_s5 }
 0xe21   :  { %v1691_v49 = vpop.permute.xlu0 %1690 }
 0xe22   :  { %v1698_v8 = vpack.c.bf16 %v1691_v49, %v1691_v49  ;;  %v1694_v6 = vpop.permute.xlu1 %1693 }
 0xe23   :  { %v1699_v31 = vpack.c.bf16 %v1694_v6, %v1694_v6 }
 0xe24   :  { %v4498_v35 = vunpack.c.l.b16 %v1698_v8 }
 0xe25   :  { %v1787_v9 = vunpack.c.l.b16 %v1699_v31 }
 0xe26   :  { %v1764_v10 = vpack.c.b16 %v4498_v35, %v4498_v35 }
 0xe27   :  { %v1788_v58 = vpack.c.b16 %v1787_v9, %v1787_v9 }
 0xe28   :  { %1765 = vrot.lane.b32.xlu1 %v1764_v10, %s4966_s4 }
 0xe29   :  { %1789 = vrot.lane.b32.xlu0 %v1788_v58, %s4966_s4 }
 0xe2a   :  { %v1718_v12 = vpop.permute.xlu1 %1717 }
 0xe2b   :  { %v1723_v7 = vsel %vm186_vm12, %v1718_v12, 0 }
 0xe2c   :  { %1732 = vmatpush.bf16.xpose.msra.mxu2 %v1723_v7 }
 0xe30   :  { %1964 = vrot.lane.b32.xlu1 %v4494_v25, %s3743_s27 }
 0xe31   :  { %1970 = vrot.lane.b32.xlu0 %v4494_v25, %s3746_s30 }
 0xe33   :  { %3353 = vmatmul.msk.bf16.vlgmr.msra.gmra.mxu2 %vm186_vm12, %v1696_v19 }
 0xe6a   :  { %v1742_v13 = vpop.permute.xlu2 %1741 }
 0xe6b   :  { %v1747_v63 = vsel %vm186_vm12, %v1742_v13, 0 }
 0xe6c   :  { %1756 = vmatpush.bf16.xpose.msrb.mxu1 %v1747_v63 }
 0xe72   :  { %v1968_v49 = vpop.permute.xlu2 %1967 }
 0xe73   :  { %3354 = vmatmul.msk.bf16.vlgmr.msrb.gmra.mxu1 %vm186_vm12, %v1697_v1  ;;  %v1975_v63 = vpack.c.bf16 %v1968_v49, %v1968_v49 }
 0xe9a   :  { %v1766_v18 = vpop.permute.xlu1 %1765 }
 0xe9b   :  { %v1790_v5 = vpop.permute.xlu0 %1789  ;;  %v1771_v21 = vsel %vm186_vm12, %v1766_v18, 0  ;;  %v4549_v18 = vunpack.c.l.b16 %v1975_v63 }
 0xe9c   :  { %v1795_v55 = vsel %vm186_vm12, %v1790_v5, 0  ;;  %1780 = vmatpush.bf16.xpose.msra.mxu0 %v1771_v21  ;;  %v1973_v5 = vpack.c.bf16 %v4494_v25, %v4494_v25 }
 0xe9d   :  { %1804 = vmatpush.bf16.xpose.msrb.mxu2 %v1795_v55  ;;  %v2057_v21 = vpack.c.b16 %v4549_v18, %v4498_v35 }
 0xe9e   :  { %v4555_v55 = vunpack.c.l.b16 %v1973_v5 }
 0xe9f   :  { %v2059_v23 = vshrl.u32 %v2057_v21, 16  ;;  %v2062_v15 = vshll.u32 %v2057_v21, 16 }
 0xea0   :  { %v1993_v0 = vpack.c.b16 %v4555_v55, %v4484_v59 }
 0xea1   :  { %v2061_v32 = vrot.slane %v2059_v23, 2 }
 0xea3   :  { %3355 = vmatmul.msk.bf16.vlgmr.msra.gmra.mxu0 %vm186_vm12, %v1698_v8  ;;  %v1971_v38 = vpop.permute.xlu0 %1970 }
 0xea4   :  { %3356 = vmatmul.msk.bf16.vlgmr.msrb.gmra.mxu2 %vm186_vm12, %v1699_v31  ;;  %v1976_v50 = vpack.c.bf16 %v1971_v38, %v1971_v38 }
 0xea6   :  { %v4530_v56 = vunpack.c.l.b16 %v1976_v50 }
 0xea8   :  { %v2089_v57 = vpack.c.b16 %v4530_v56, %v1787_v9 }
 0xeaa   :  { %v2091_v61 = vshrl.u32 %v2089_v57, 16  ;;  %v2094_v27 = vshll.u32 %v2089_v57, 16 }
 0xeac   :  { %v2093_v1 = vrot.slane %v2091_v61, 2  ;;  %v2096_v3 = vrot.slane %v2094_v27, 3 }
 0xeae   :  { %v4535_v62 = vor.u32 %v2096_v3, %v2093_v1 }
 0xeb6   :  { %v1734_v41 = vpop.f32.mrf.mxu2 }
 0xeb7   :  { %v1810_v36 = vmul.f32 0.25, %v1734_v41 }
 0xeb9   :  { %v4519_v28 = vadd.f32 %v1818_v26, %v1810_v36  ;;  %v1995_v36 = vshrl.u32 %v1993_v0, 16 }
 0xebb   :  { %v1823_v29 = vsel %vm506_vm9, %v4519_v28, -inf  ;;  %v1997_v25 = vrot.slane %v1995_v36, 2 }
 0xebc   :  { %1824 = vmax.xlane.f32.xlu2 %v1823_v29  ;;  %v1998_v29 = vshll.u32 %v1993_v0, 16 }
 0xebe   :  { %v1736_v43 = vpop.f32.mrf.mxu2 }
 0xebf   :  { %v2000_v43 = vrot.slane %v1998_v29, 3 }
 0xec1   :  { %v4563_v35 = vor.u32 %v2000_v43, %v1997_v25 }
 0xef0   :  { %v1758_v20 = vpop.f32.mrf.mxu1 }
 0xef1   :  { %v1811_v46 = vmul.f32 0.25, %v1758_v20  ;;  %v1965_v20 = vpop.permute.xlu1 %1964 }
 0xef2   :  { %v1974_v38 = vpack.c.bf16 %v1965_v20, %v1965_v20 }
 0xef3   :  { %v1820_v30 = vadd.f32 %v1818_v26, %v1811_v46 }
 0xef5   :  { %v1826_v51 = vsel %vm506_vm9, %v1820_v30, -inf }
 0xef6   :  { %1827 = vmax.xlane.f32.xlu2 %v1826_v51 }
 0xef8   :  { %v1760_v33 = vpop.f32.mrf.mxu1 }
 0xf0e   :  { %1701 = vrot.lane.b32.xlu2 %v4473_v4, %s3743_s27 }
 0xf20   :  { %v1782_v34 = vpop.f32.mrf.mxu0 }
 0xf21   :  { %v1812_v22 = vmul.f32 0.25, %v1782_v34 }
 0xf23   :  { %v1821_v24 = vadd.f32 %v1818_v26, %v1812_v22 }
 0xf25   :  { %v1829_v47 = vsel %vm506_vm9, %v1821_v24, -inf }
 0xf26   :  { %1830 = vmax.xlane.f32.xlu1 %v1829_v47 }
 0xf27   :  { %v1806_v37 = vpop.f32.mrf.mxu2 }
 0xf28   :  { %v1813_v39 = vmul.f32 0.25, %v1806_v37  ;;  %v1784_v53 = vpop.f32.mrf.mxu0 }
 0xf29   :  { %v4569_v53 = vunpack.c.l.b16 %v1974_v38 }
 0xf2a   :  { %v1822_v48 = vadd.f32 %v1818_v26, %v1813_v39  ;;  %v2064_v26 = vrot.slane %v2062_v15, 3 }
 0xf2c   :  { %v1832_v52 = vsel %vm506_vm9, %v1822_v48, -inf  ;;  %v4559_v41 = vor.u32 %v2064_v26, %v2061_v32 }
 0xf2d   :  { %1833 = vmax.xlane.f32.xlu0 %v1832_v52 }
 0xf2f   :  { %v1808_v19 = vpop.f32.mrf.mxu2  ;;  %v4539_v8 = vpop.xlane.xlu2 %1824 }
 0xf3f   :  { %1707 = vrot.lane.b32.xlu1 %v4473_v4, %s3746_s30 }
 0xf41   :  { %2098 = vrot.lane.b32.xlu0 %v4535_v62, %s4966_s4 }
 0xf69   :  { %v1828_v6 = vpop.xlane.xlu2 %1827 }
 0xf6a   :  { %v1836_v31 = vsub.f32 %v1820_v30, %v1828_v6  ;;  %v1835_v6 = vsub.f32 %v4519_v28, %v4539_v8 }
 0xf6c   :  { %v1841_v10 = vmul.f32 1.442695, %v1836_v31  ;;  %v1839_v31 = vmul.f32 1.442695, %v1835_v6 }
 0xf6e   :  { %3674 = vpow2.f32 %v1841_v10 }
 0xf71   :  { %v1702_v9 = vpop.permute.xlu2 %1701 }
 0xf72   :  { %v4541_v58 = vpack.c.bf16 %v1702_v9, %v1702_v9 }
 0xf74   :  { %v4543_v12 = vpop.eup %3674  ;;  %v1894_v7 = vand.u32 %v4541_v58, %v4022_v54 }
 0xf75   :  { %v1850_v13 = vsel %vm506_vm9, %v4543_v12, 0.0 }
 0xf76   :  { %1851 = vadd.xlane.f32.xlu2 %v1850_v13  ;;  %1903 = vmatpush.bf16.msra.mxu1 %v1894_v7 }
 0xf8e   :  { %2066 = vrot.lane.b32.xlu2 %v4559_v41, %s4966_s4 }
 0xf96   :  { %2002 = vrot.lane.b32.xlu2 %v4563_v35, %s4966_s4 }
 0xf99   :  { %v1831_v46 = vpop.xlane.xlu1 %1830 }
 0xf9a   :  { %v1837_v30 = vsub.f32 %v1821_v24, %v1831_v46  ;;  %v2025_v24 = vpack.c.b16 %v4569_v53, %v4489_v2  ;;  %v4584_v2 = vadd.f32 %v4526_v45, %v1612_v60 }
 0xf9c   :  { %v1843_v59 = vmul.f32 1.442695, %v1837_v30  ;;  %v2027_v61 = vshrl.u32 %v2025_v24, 16  ;;  %v2030_v27 = vshll.u32 %v2025_v24, 16 }
 0xf9e   :  { %3676 = vpow2.f32 %v1843_v59  ;;  %v2029_v1 = vrot.slane %v2027_v61, 2  ;;  %v2032_v3 = vrot.slane %v2030_v27, 3 }
 0xfa0   :  { %v1834_v51 = vpop.xlane.xlu0 %1833  ;;  %v2033_v49 = vor.u32 %v2032_v3, %v2029_v1 }
 0xfa1   :  { %v1838_v33 = vsub.f32 %v1822_v48, %v1834_v51 }
 0xfa3   :  { %v1845_v34 = vmul.f32 1.442695, %v1838_v33 }
 0xfa4   :  { %v3677_v22 = vpop.eup %3676 }
 0xfa5   :  { %3678 = vpow2.f32 %v1845_v34  ;;  %v1853_v47 = vsel %vm506_vm9, %v3677_v22, 0.0 }
 0xfa6   :  { %1854 = vadd.xlane.f32.xlu1 %v1853_v47  ;;  %3680 = vpow2.f32 %v1839_v31 }
 0xfab   :  { %v3679_v37 = vpop.eup %3678 }
 0xfac   :  { %v1856_v39 = vsel %vm506_vm9, %v3679_v37, 0.0  ;;  %v3681_v10 = vpop.eup %3680 }
 0xfad   :  { %1857 = vadd.xlane.f32.xlu0 %v1856_v39  ;;  %v1987_v39 = vpack.c.bf16 %v4584_v2, %v4584_v2 }
 0xfb1   :  { %v1708_v50 = vpop.permute.xlu1 %1707 }
 0xfb2   :  { %v4571_v52 = vpack.c.bf16 %v1708_v50, %v1708_v50  ;;  %v4610_v50 = vunpack.c.l.b16 %v1987_v39 }
 0xfb3   :  { %v2099_v48 = vpop.permute.xlu0 %2098 }
 0xfb4   :  { %v1932_v19 = vand.u32 %v4571_v52, %v4022_v54  ;;  %v2104_v57 = vsel %vm186_vm12, %v2099_v48, 0 }
 0xfb6   :  { %1941 = vmatpush.bf16.msra.mxu2 %v1932_v19 }
 0xfba   :  { %2113 = vmatpush.bf16.xpose.msrb.mxu2 %v2104_v57 }
 0xfbf   :  { %1704 = vrot.lane.b32.xlu1 %v4473_v4, %s3745_s5  ;;  %v1847_v4 = vsel %vm506_vm9, %v3681_v10, 0.0 }
 0xfc1   :  { %2034 = vrot.lane.b32.xlu0 %v2033_v49, %s4966_s4 }
 0xfc7   :  { %1981 = vrot.lane.b32.xlu1 %v4584_v2, %s3745_s5  ;;  %s3762_s5 = smov 50  }
 0xfe9   :  { %v1852_v9 = vpop.xlane.xlu2 %1851 }
 0xfea   :  { %3682 = vrcp.f32 %v1852_v9  ;;  %v2123_v9 = vld [vmem:[%s4923_s3 + $0x1] sm:$0x1] }
 0xfeb   :  { %1848 = vadd.xlane.f32.xlu0 %v1847_v4  ;;  %v2124_v4 = vcvt.s32.f32 %v2123_v9 }
 0xff0   :  { %v3683_v7 = vpop.eup %3682 }
 0xff1   :  { %v1864_v44 = vmul.f32 %v3683_v7, %v4543_v12  ;;  %v2067_v13 = vpop.permute.xlu2 %2066 }
 0xff2   :  { %v2072_v25 = vsel %vm186_vm12, %v2067_v13, 0 }
 0xff3   :  { %v1868_v60 = vpack.c.bf16 %v1864_v44, %v1864_v44 }
 0xff5   :  { %3358 = vmatmul.msk.bf16.vlgmr.msra.gmra.mxu1 %vm555_vm10, %v1868_v60 }
 0xff9   :  { %v2003_v45 = vpop.permute.xlu2 %2002 }
 0xffa   :  { %v2008_v63 = vsel %vm186_vm12, %v2003_v45, 0 }
 0xffb   :  { %2017 = vmatpush.bf16.xpose.msrb.mxu3 %v2008_v63 }
0x1019   :  { %v1855_v5 = vpop.xlane.xlu1 %1854 }
0x1020   :  { %v1858_v28 = vpop.xlane.xlu0 %1857 }
0x1021   :  { %3684 = vrcp.f32 %v1858_v28 }
0x1022   :  { %3686 = vrcp.f32 %v1855_v5 }
0x1027   :  { %v3685_v8 = vpop.eup %3684 }
0x1028   :  { %v1866_v21 = vmul.f32 %v3685_v8, %v3679_v37  ;;  %v3687_v15 = vpop.eup %3686 }
0x1029   :  { %v1865_v32 = vmul.f32 %v3687_v15, %v3677_v22 }
0x102a   :  { %v1870_v23 = vpack.c.bf16 %v1866_v21, %v1866_v21 }
0x102b   :  { %v1869_v43 = vpack.c.bf16 %v1865_v32, %v1865_v32 }
0x102c   :  { %3360 = vmatmul.msk.bf16.vlgmr.msra.gmra.mxu2 %vm555_vm10, %v1870_v23 }
0x1031   :  { %v1705_v0 = vpop.permute.xlu1 %1704 }
0x1032   :  { %v1712_v12 = vpack.c.bf16 %v1705_v0, %v1705_v0 }
0x1033   :  { %v2035_v26 = vpop.permute.xlu0 %2034 }
0x1034   :  { %v1913_v36 = vand.u32 %v1712_v12, %v4022_v54  ;;  %v2040_v29 = vsel %vm186_vm12, %v2035_v26, 0  ;;  %v2246_v30 = vunpack.c.l.b16 %v1712_v12 }
0x1035   :  { %2049 = vmatpush.bf16.xpose.msrb.mxu1 %v2040_v29  ;;  %v2393_v29 = vpack.c.b16 %v4530_v56, %v4530_v56 }
0x1036   :  { %1922 = vmatpush.bf16.msrb.mxu0 %v1913_v36 }
0x1039   :  { %3359 = vmatmul.msk.bf16.vlgmr.msrb.gmra.mxu0 %vm555_vm10, %v1869_v43  ;;  %v1982_v20 = vpop.permute.xlu1 %1981  ;;  %v2347_v43 = vpack.c.b16 %v4569_v53, %v4569_v53 }
0x103a   :  { %2081 = vmatpush.bf16.xpose.msra.mxu0 %v2072_v25  ;;  %v1989_v46 = vpack.c.bf16 %v1982_v20, %v1982_v20  ;;  %v4633_v25 = vrot.slane %v2393_v29, 1 }
0x103b   :  { %v4639_v20 = vrot.slane %v2347_v43, 1 }
0x103c   :  { %v4599_v59 = vunpack.c.l.b16 %v1989_v46  ;;  %3362 = vmatmul.msk.bf16.vlgmr.msrb.gmra.mxu1 %vm186_vm12, %v2033_v49  ;;  %3364 = vmatmul.msk.bf16.vlgmr.msrb.gmra.mxu2 %vm186_vm12, %v4535_v62  ;;  %v2182_v62 = vunpack.c.l.b16 %v4477_v14 }
0x103e   :  { %v2248_v51 = vpack.c.b16 %v4599_v59, %v2246_v30  ;;  %v2184_v24 = vpack.c.b16 %v4610_v50, %v2182_v62 }
0x1040   :  { %v2250_v33 = vshrl.u32 %v2248_v51, 16  ;;  %v2253_v34 = vshll.u32 %v2248_v51, 16  ;;  %v2186_v48 = vshrl.u32 %v2184_v24, 16  ;;  %v2189_v19 = vshll.u32 %v2184_v24, 16 }
0x1042   :  { %v2252_v22 = vrot.slane %v2250_v33, 2  ;;  %v2255_v47 = vrot.slane %v2253_v34, 3  ;;  %v2188_v61 = vrot.slane %v2186_v48, 2  ;;  %v2191_v27 = vrot.slane %v2189_v19, 3 }
0x1044   :  { %v2256_v37 = vor.u32 %v2255_v47, %v2252_v22  ;;  %v2192_v3 = vor.u32 %v2191_v27, %v2188_v61  ;;  %v2214_v27 = vunpack.c.l.b16 %v4541_v58 }
0x1046   :  { %v2261_v38 = vand.u32 %v2256_v37, %v4022_v54 }
0x1048   :  { %2270 = vmatpush.bf16.msrb.mxu0 %v2261_v38 }
0x1049   :  { %3363 = vmatmul.msk.bf16.vlgmr.msra.gmra.mxu0 %vm186_vm12, %v4559_v41  ;;  %v2197_v41 = vand.u32 %v2192_v3, %v4022_v54 }
0x105e   :  { %v1849_v57 = vpop.xlane.xlu0 %1848 }
0x105f   :  { %3688 = vrcp.f32 %v1849_v57 }
0x1065   :  { %v3689_v1 = vpop.eup %3688 }
0x1066   :  { %v1863_v49 = vmul.f32 %v3689_v1, %v3681_v10  ;;  %v2125_v10 = vsub.f32 1.0, %v2124_v4 }
0x1068   :  { %v1867_v6 = vpack.c.bf16 %v1863_v49, %v1863_v49  ;;  %v2126_v44 = vmul.f32 -1e+09, %v2125_v10 }
0x106a   :  { %3357 = vmatmul.msk.bf16.vlgmr.msra.gmra.mxu3 %vm555_vm10, %v1867_v6  ;;  %v2127_v45 = vperm.slane %v2126_v44, 0 }
0x106b   :  { %2206 = vmatpush.bf16.msra.mxu3 %v2197_v41 }
0x1072   :  { %v4616_v31 = vpop.f32.mrf.mxu1 }
0x107a   :  { %3361 = vmatmul.msk.bf16.vlgmr.msrb.gmra.mxu3 %vm186_vm12, %v4563_v35  ;;  %v1907_v14 = vpop.f32.mrf.mxu1 }
0x10af   :  { %v4623_v7 = vpop.f32.mrf.mxu2 }
0x10b6   :  { %v4625_v13 = vpop.f32.mrf.mxu0 }
0x10b7   :  { %v1945_v60 = vpop.f32.mrf.mxu2 }
0x10b9   :  { %v2051_v63 = vpop.f32.mrf.mxu1 }
0x10ba   :  { %v2120_v28 = vmul.f32 0.25, %v2051_v63  ;;  %v2370_v63 = vpack.c.b16 %v4549_v18, %v4549_v18 }
0x10bc   :  { %v2129_v8 = vadd.f32 %v2127_v45, %v2120_v28 }
0x10be   :  { %v2135_v5 = vsel %vm506_vm9, %v2129_v8, -inf  ;;  %v1926_v35 = vpop.f32.mrf.mxu0 }
0x10bf   :  { %2136 = vmax.xlane.f32.xlu2 %v2135_v5  ;;  %v2115_v21 = vpop.f32.mrf.mxu2  ;;  %v4663_v35 = vrot.slane %v2370_v63, 1 }
0x10c0   :  { %v2122_v23 = vmul.f32 0.25, %v2115_v21 }
0x10c1   :  { %v2053_v15 = vpop.f32.mrf.mxu1 }
0x10c2   :  { %v2131_v0 = vadd.f32 %v2127_v45, %v2122_v23 }
0x10c4   :  { %v2141_v12 = vsel %vm506_vm9, %v2131_v0, -inf }
0x10c5   :  { %2142 = vmax.xlane.f32.xlu1 %v2141_v12 }
0x10c6   :  { %v2083_v32 = vpop.f32.mrf.mxu0 }
0x10c7   :  { %v2117_v26 = vpop.f32.mrf.mxu2  ;;  %v2121_v56 = vmul.f32 0.25, %v2083_v32 }
0x10c9   :  { %v2130_v37 = vadd.f32 %v2127_v45, %v2121_v56 }
0x10cb   :  { %v2138_v38 = vsel %vm506_vm9, %v2130_v37, -inf }
0x10ce   :  { %v2085_v36 = vpop.f32.mrf.mxu0 }
0x10d7   :  { %1978 = vrot.lane.b32.xlu2 %v4584_v2, %s3743_s27 }
0x10de   :  { %2395 = vrot.lane.b32.xlu1 %v4633_v25, %s4966_s4 }
0x10e6   :  { %2349 = vrot.lane.b32.xlu1 %v4639_v20, %s4966_s4 }
0x10ed   :  { %v4643_v46 = vpop.f32.mrf.mxu3 }
0x10f5   :  { %v1888_v30 = vpop.f32.mrf.mxu3 }
0x10f6   :  { %v2278_v30 = vunpack.c.l.b16 %v4571_v52 }
0x10fd   :  { %v2019_v51 = vpop.f32.mrf.mxu3 }
0x10fe   :  { %v2119_v33 = vmul.f32 0.25, %v2019_v51 }
0x1100   :  { %v2128_v34 = vadd.f32 %v2127_v45, %v2119_v33  ;;  %v2324_v45 = vpack.c.b16 %v4555_v55, %v4555_v55 }
0x1102   :  { %v2132_v22 = vsel %vm506_vm9, %v2128_v34, -inf  ;;  %v4661_v5 = vrot.slane %v2324_v45, 1 }
0x1103   :  { %2133 = vmax.xlane.f32.xlu0 %v2132_v22 }
0x1105   :  { %v2021_v47 = vpop.f32.mrf.mxu3 }
0x110b   :  { %2139 = vmax.xlane.f32.xlu0 %v2138_v38 }
0x111f   :  { %1984 = vrot.lane.b32.xlu0 %v4584_v2, %s3746_s30 }
0x1132   :  { %v2137_v53 = vpop.xlane.xlu2 %2136 }
0x1133   :  { %v2145_v39 = vsub.f32 %v2129_v8, %v2137_v53 }
0x1135   :  { %v2150_v19 = vmul.f32 1.442695, %v2145_v39 }
0x1138   :  { %v2143_v62 = vpop.xlane.xlu1 %2142 }
0x1139   :  { %v2147_v24 = vsub.f32 %v2131_v0, %v2143_v62 }
0x113a   :  { %v1979_v48 = vpop.permute.xlu2 %1978 }
0x113b   :  { %v2154_v57 = vmul.f32 1.442695, %v2147_v24  ;;  %v1988_v61 = vpack.c.bf16 %v1979_v48, %v1979_v48 }
0x113d   :  { %3690 = vpow2.f32 %v2154_v57  ;;  %v4650_v1 = vunpack.c.l.b16 %v1988_v61 }
0x113e   :  { %3692 = vpow2.f32 %v2150_v19 }
0x113f   :  { %v2216_v3 = vpack.c.b16 %v4650_v1, %v2214_v27  ;;  %v2498_v52 = vpack.c.b16 %v4650_v1, %v4650_v1 }
0x1141   :  { %v2218_v49 = vshrl.u32 %v2216_v3, 16  ;;  %v2221_v6 = vshll.u32 %v2216_v3, 16  ;;  %v2499_v3 = vrot.slane %v2498_v52, 1 }
0x1143   :  { %v3691_v41 = vpop.eup %3690  ;;  %v2220_v2 = vrot.slane %v2218_v49, 2  ;;  %v2223_v14 = vrot.slane %v2221_v6, 3 }
0x1144   :  { %v2165_v9 = vsel %vm506_vm9, %v3691_v41, 0.0  ;;  %v3693_v4 = vpop.eup %3692 }
0x1145   :  { %v2224_v10 = vor.u32 %v2223_v14, %v2220_v2  ;;  %2166 = vadd.xlane.f32.xlu1 %v2165_v9  ;;  %v2159_v58 = vsel %vm506_vm9, %v3693_v4, 0.0  ;;  %v2504_v14 = vand.u32 %v2499_v3, %v4022_v54 }
0x1147   :  { %v2229_v44 = vand.u32 %v2224_v10, %v4022_v54 }
0x1149   :  { %2238 = vmatpush.bf16.msra.mxu1 %v2229_v44  ;;  %2160 = vadd.xlane.f32.xlu0 %v2159_v58  ;;  %v2477_v58 = vpack.c.b16 %v4610_v50, %v4610_v50 }
0x114b   :  { %v2478_v63 = vrot.slane %v2477_v58, 1 }
0x1150   :  { %v2396_v60 = vpop.permute.xlu1 %2395 }
0x1151   :  { %v2401_v53 = vsel %vm186_vm12, %v2396_v60, 0  ;;  %v2519_v60 = vpack.c.b16 %v4599_v59, %v4599_v59 }
0x1158   :  { %v2350_v28 = vpop.permute.xlu1 %2349 }
0x1159   :  { %v2355_v8 = vsel %vm186_vm12, %v2350_v28, 0 }
0x115a   :  { %2364 = vmatpush.bf16.xpose.msrb.mxu1 %v2355_v8 }
0x115d   :  { %2326 = vrot.lane.b32.xlu0 %v4661_v5, %s4966_s4 }
0x115e   :  { %2372 = vrot.lane.b32.xlu1 %v4663_v35, %s4966_s4  ;;  %s3759_s4 = smov 45  }
0x1176   :  { %v2134_v21 = vpop.xlane.xlu0 %2133 }
0x1177   :  { %v2144_v23 = vsub.f32 %v2128_v34, %v2134_v21  ;;  %v2520_v21 = vrot.slane %v2519_v60, 1 }
0x1179   :  { %v2148_v55 = vmul.f32 1.442695, %v2144_v23 }
0x117b   :  { %3694 = vpow2.f32 %v2148_v55  ;;  %v2483_v55 = vand.u32 %v2478_v63, %v4022_v54 }
0x117e   :  { %v2140_v15 = vpop.xlane.xlu0 %2139 }
0x117f   :  { %v2146_v18 = vsub.f32 %v2130_v37, %v2140_v15  ;;  %v2525_v15 = vand.u32 %v2520_v21, %v4022_v54 }
0x1181   :  { %v2152_v0 = vmul.f32 1.442695, %v2146_v18  ;;  %v3695_v12 = vpop.eup %3694  ;;  %v2420_v18 = vld [vmem:[%s4923_s3 + $0x2] sm:$0x1]  ;;  %s4967_s3 = smov 16  }
0x1182   :  { %v2156_v32 = vsel %vm506_vm9, %v3695_v12, 0.0 }
0x1183   :  { %3696 = vpow2.f32 %v2152_v0  ;;  %v2421_v0 = vcvt.s32.f32 %v2420_v18 }
0x1188   :  { %2157 = vadd.xlane.f32.xlu1 %v2156_v32 }
0x1189   :  { %v3697_v26 = vpop.eup %3696 }
0x118a   :  { %v2162_v36 = vsel %vm506_vm9, %v3697_v26, 0.0 }
0x118b   :  { %2163 = vadd.xlane.f32.xlu2 %v2162_v36 }
0x1191   :  { %v1985_v29 = vpop.permute.xlu0 %1984 }
0x1192   :  { %v1990_v43 = vpack.c.bf16 %v1985_v29, %v1985_v29 }
0x1194   :  { %v2279_v51 = vunpack.c.l.b16 %v1990_v43 }
0x1196   :  { %v2280_v33 = vpack.c.b16 %v2279_v51, %v2278_v30  ;;  %v2540_v62 = vpack.c.b16 %v2279_v51, %v2279_v51 }
0x1198   :  { %v2282_v34 = vshrl.u32 %v2280_v33, 16  ;;  %v2285_v56 = vshll.u32 %v2280_v33, 16  ;;  %v2541_v19 = vrot.slane %v2540_v62, 1 }
0x119a   :  { %v2284_v22 = vrot.slane %v2282_v34, 2  ;;  %v2287_v47 = vrot.slane %v2285_v56, 3  ;;  %v2546_v49 = vand.u32 %v2541_v19, %v4022_v54 }
0x119c   :  { %v2288_v37 = vor.u32 %v2287_v47, %v2284_v22 }
0x119e   :  { %v2293_v38 = vand.u32 %v2288_v37, %v4022_v54 }
0x11a0   :  { %2302 = vmatpush.bf16.msra.mxu2 %v2293_v38 }
0x11a4   :  { %2410 = vmatpush.bf16.xpose.msrb.mxu2 %v2401_v53 }
0x11b8   :  { %v2167_v39 = vpop.xlane.xlu1 %2166 }
0x11b9   :  { %3698 = vrcp.f32 %v2167_v39 }
0x11bc   :  { %v2161_v24 = vpop.xlane.xlu0 %2160 }
0x11bd   :  { %3700 = vrcp.f32 %v2161_v24 }
0x11bf   :  { %v3699_v48 = vpop.eup %3698 }
0x11c0   :  { %v2175_v57 = vmul.f32 %v3699_v48, %v3691_v41 }
0x11c2   :  { %v2179_v61 = vpack.c.bf16 %v2175_v57, %v2175_v57 }
0x11c3   :  { %v3701_v27 = vpop.eup %3700 }
0x11c4   :  { %v2173_v6 = vmul.f32 %v3701_v27, %v3693_v4  ;;  %3368 = vmatmul.msk.bf16.vlgmr.msra.gmra.mxu2 %vm555_vm10, %v2179_v61 }
0x11c5   :  { %2555 = vmatpush.bf16.msra.mxu2 %v2546_v49 }
0x11c6   :  { %v2177_v2 = vpack.c.bf16 %v2173_v6, %v2173_v6 }
0x11c8   :  { %3366 = vmatmul.msk.bf16.vlgmr.msra.gmra.mxu1 %vm555_vm10, %v2177_v2 }
0x11c9   :  { %2513 = vmatpush.bf16.msra.mxu1 %v2504_v14 }
0x11cf   :  { %v2327_v9 = vpop.permute.xlu0 %2326 }
0x11d0   :  { %v2332_v1 = vsel %vm186_vm12, %v2327_v9, 0  ;;  %v2373_v10 = vpop.permute.xlu1 %2372 }
0x11d1   :  { %v2378_v41 = vsel %vm186_vm12, %v2373_v10, 0  ;;  %2341 = vmatpush.bf16.xpose.msrb.mxu3 %v2332_v1 }
0x11d2   :  { %2387 = vmatpush.bf16.xpose.msra.mxu0 %v2378_v41 }
0x11d4   :  { %3372 = vmatmul.msk.bf16.vlgmr.msrb.gmra.mxu2 %vm186_vm12, %v4633_v25 }
0x11d8   :  { %3370 = vmatmul.msk.bf16.vlgmr.msrb.gmra.mxu1 %vm186_vm12, %v4639_v20 }
0x11fb   :  { %v2158_v4 = vpop.xlane.xlu1 %2157 }
0x11fc   :  { %3702 = vrcp.f32 %v2158_v4 }
0x11fe   :  { %v2164_v44 = vpop.xlane.xlu2 %2163 }
0x11ff   :  { %3704 = vrcp.f32 %v2164_v44 }
0x1202   :  { %v3703_v45 = vpop.eup %3702 }
0x1203   :  { %v2172_v28 = vmul.f32 %v3703_v45, %v3695_v12 }
0x1205   :  { %v3705_v8 = vpop.eup %3704  ;;  %v2176_v23 = vpack.c.bf16 %v2172_v28, %v2172_v28 }
0x1206   :  { %v2174_v25 = vmul.f32 %v3705_v8, %v3697_v26  ;;  %v2422_v26 = vsub.f32 1.0, %v2421_v0 }
0x1207   :  { %3365 = vmatmul.msk.bf16.vlgmr.msra.gmra.mxu3 %vm555_vm10, %v2176_v23 }
0x1208   :  { %v2178_v20 = vpack.c.bf16 %v2174_v25, %v2174_v25  ;;  %2492 = vmatpush.bf16.msra.mxu3 %v2483_v55  ;;  %v2423_v36 = vmul.f32 -1e+09, %v2422_v26 }
0x120a   :  { %3367 = vmatmul.msk.bf16.vlgmr.msrb.gmra.mxu0 %vm555_vm10, %v2178_v20 }
0x120b   :  { %2534 = vmatpush.bf16.msrb.mxu0 %v2525_v15 }
0x1217   :  { %3369 = vmatmul.msk.bf16.vlgmr.msrb.gmra.mxu3 %vm186_vm12, %v4661_v5  ;;  %v2424_v5 = vperm.slane %v2423_v36, 0 }
0x121a   :  { %3371 = vmatmul.msk.bf16.vlgmr.msra.gmra.mxu0 %vm186_vm12, %v4663_v35 }
0x1245   :  { %v4698_v59 = vpop.f32.mrf.mxu1 }
0x1247   :  { %v4700_v50 = vpop.f32.mrf.mxu2 }
0x124d   :  { %v2242_v12 = vpop.f32.mrf.mxu1 }
0x124f   :  { %v2306_v32 = vpop.f32.mrf.mxu2 }
0x1255   :  { %v2366_v29 = vpop.f32.mrf.mxu1 }
0x1256   :  { %v2417_v33 = vmul.f32 0.25, %v2366_v29 }
0x1257   :  { %v2412_v43 = vpop.f32.mrf.mxu2 }
0x1258   :  { %v2419_v30 = vmul.f32 0.25, %v2412_v43  ;;  %v2426_v22 = vadd.f32 %v2424_v5, %v2417_v33 }
0x125a   :  { %v2428_v51 = vadd.f32 %v2424_v5, %v2419_v30  ;;  %v2432_v47 = vsel %vm506_vm9, %v2426_v22, -inf }
0x125c   :  { %v2438_v35 = vsel %vm506_vm9, %v2428_v51, -inf }
0x125d   :  { %v2368_v34 = vpop.f32.mrf.mxu1  ;;  %2439 = vmax.xlane.f32.xlu2 %v2438_v35 }
0x125f   :  { %v2414_v56 = vpop.f32.mrf.mxu2 }
0x1265   :  { %2433 = vmax.xlane.f32.xlu2 %v2432_v47 }
0x1287   :  { %v2272_v37 = vpop.f32.mrf.mxu0 }
0x128a   :  { %v4707_v38 = vpop.f32.mrf.mxu3 }
0x128f   :  { %v2274_v53 = vpop.f32.mrf.mxu0 }
0x1292   :  { %v2210_v39 = vpop.f32.mrf.mxu3 }
0x1297   :  { %v2389_v62 = vpop.f32.mrf.mxu0 }
0x1298   :  { %v2418_v24 = vmul.f32 0.25, %v2389_v62 }
0x129a   :  { %v2343_v48 = vpop.f32.mrf.mxu3  ;;  %v2427_v52 = vadd.f32 %v2424_v5, %v2418_v24 }
0x129b   :  { %v2416_v19 = vmul.f32 0.25, %v2343_v48 }
0x129c   :  { %v2435_v57 = vsel %vm506_vm9, %v2427_v52, -inf }
0x129d   :  { %2436 = vmax.xlane.f32.xlu0 %v2435_v57  ;;  %v2425_v61 = vadd.f32 %v2424_v5, %v2416_v19 }
0x129f   :  { %v2391_v27 = vpop.f32.mrf.mxu0  ;;  %v2429_v3 = vsel %vm506_vm9, %v2425_v61, -inf }
0x12a0   :  { %2430 = vmax.xlane.f32.xlu2 %v2429_v3 }
0x12a2   :  { %v2345_v49 = vpop.f32.mrf.mxu3 }
0x12d0   :  { %v2440_v6 = vpop.xlane.xlu2 %2439 }
0x12d1   :  { %v2444_v2 = vsub.f32 %v2428_v51, %v2440_v6  ;;  %v3544_v6 = vld [vmem:[%s4925_s9 + $0x30] sm:$0xff] }
0x12d3   :  { %v2451_v14 = vmul.f32 1.442695, %v2444_v2 }
0x12d5   :  { %3706 = vpow2.f32 %v2451_v14  ;;  %v3543_v14 = vld [vmem:[%s4925_s9 + $0x28] sm:$0xff] }
0x12d8   :  { %v2434_v9 = vpop.xlane.xlu2 %2433 }
0x12d9   :  { %v2442_v1 = vsub.f32 %v2426_v22, %v2434_v9  ;;  %v2982_v9 = vld [vmem:[%s4934_s2] sm:$0x7]  ;;  %s3763_s2 = smov 75  }
0x12db   :  { %v3707_v10 = vpop.eup %3706  ;;  %v2447_v41 = vmul.f32 1.442695, %v2442_v1  ;;  %v2983_v1 = vcvt.s32.f32 %v2982_v9 }
0x12dc   :  { %v2462_v4 = vsel %vm506_vm9, %v3707_v10, 0.0 }
0x12dd   :  { %3708 = vpow2.f32 %v2447_v41  ;;  %2463 = vadd.xlane.f32.xlu2 %v2462_v4 }
0x12e3   :  { %v3709_v44 = vpop.eup %3708 }
0x12e4   :  { %v2456_v58 = vsel %vm506_vm9, %v3709_v44, 0.0 }
0x12e5   :  { %2457 = vadd.xlane.f32.xlu1 %v2456_v58 }
0x1310   :  { %v2437_v60 = vpop.xlane.xlu0 %2436 }
0x1311   :  { %v2443_v45 = vsub.f32 %v2427_v52, %v2437_v60 }
0x1313   :  { %v2449_v63 = vmul.f32 1.442695, %v2443_v45  ;;  %v2431_v28 = vpop.xlane.xlu2 %2430 }
0x1314   :  { %v2441_v8 = vsub.f32 %v2425_v61, %v2431_v28  ;;  %v3545_v61 = vld [vmem:[%s4925_s9 + $0x38] sm:$0xff] }
0x1315   :  { %3710 = vpow2.f32 %v2449_v63  ;;  %2625 = vmatpush.bf16.msrb.mxu3 %v3545_v61  ;;  %v3546_v61 = vld [vmem:[%s4929_s13 + $0x20] sm:$0xff] }
0x1316   :  { %v2445_v21 = vmul.f32 1.442695, %v2441_v8 }
0x1318   :  { %3712 = vpow2.f32 %v2445_v21 }
0x1319   :  { %2626 = vmatpush.bf16.msrb.mxu3 %v3544_v6 }
0x131b   :  { %v3711_v23 = vpop.eup %3710 }
0x131c   :  { %v2459_v25 = vsel %vm506_vm9, %v3711_v23, 0.0 }
0x131d   :  { %2460 = vadd.xlane.f32.xlu2 %v2459_v25  ;;  %2627 = vmatpush.bf16.msrb.mxu3 %v3543_v14 }
0x131e   :  { %v3713_v55 = vpop.eup %3712 }
0x131f   :  { %v2453_v20 = vsel %vm506_vm9, %v3713_v55, 0.0 }
0x1320   :  { %2454 = vadd.xlane.f32.xlu1 %v2453_v20 }
0x1335   :  { %1948 = vrot.lane.b32.xlu2 %v4616_v31, %s4967_s3 }
0x1339   :  { %2309 = vrot.lane.b32.xlu1 %v4698_v59, %s4967_s3 }
0x133d   :  { %1952 = vrot.lane.b32.xlu2 %v4625_v13, %s4968_s1 }
0x1341   :  { %2313 = vrot.lane.b32.xlu1 %v2272_v37, %s4968_s1 }
0x1349   :  { %2317 = vrot.lane.b32.xlu1 %v4700_v50, %s4969_s24 }
0x1350   :  { %v2464_v15 = vpop.xlane.xlu2 %2463 }
0x1351   :  { %3714 = vrcp.f32 %v2464_v15  ;;  %v3600_v15 = vld [vmem:[%s4924_s10 + $0x1] ss:$0 sm:$0xff] }
0x1357   :  { %v3715_v18 = vpop.eup %3714 }
0x1358   :  { %v2472_v0 = vmul.f32 %v3715_v18, %v3707_v10  ;;  %v2458_v12 = vpop.xlane.xlu1 %2457  ;;  %v2984_v10 = vpack.c.bf16 %v2983_v1, %v2983_v1 }
0x1359   :  { %3716 = vrcp.f32 %v2458_v12 }
0x135a   :  { %v2476_v32 = vpack.c.bf16 %v2472_v0, %v2472_v0  ;;  %v2989_v41 = vshrl.u32 %v2984_v10, 16 }
0x135c   :  { %3376 = vmatmul.msk.bf16.vlgmr.msra.gmra.mxu2 %vm555_vm10, %v2476_v32  ;;  %v2990_v4 = vpack.i.b16 %v2989_v41, %v2989_v41 }
0x135f   :  { %v3717_v31 = vpop.eup %3716 }
0x1360   :  { %v2470_v26 = vmul.f32 %v3717_v31, %v3709_v44  ;;  %v2992_v44 = vperm.slane %v2990_v4, 0 }
0x1362   :  { %v2474_v59 = vpack.c.bf16 %v2470_v26, %v2470_v26  ;;  %v2998_v58 = vsel %vm555_vm10, %v2992_v44, 0 }
0x1364   :  { %3374 = vmatmul.msk.bf16.vlgmr.msra.gmra.mxu1 %vm555_vm10, %v2474_v59 }
0x1390   :  { %v2461_v13 = vpop.xlane.xlu2 %2460 }
0x1391   :  { %3718 = vrcp.f32 %v2461_v13  ;;  %v3015_v13 = vshrl.u32 %v71_v16, 7 }
0x1393   :  { %v2455_v36 = vpop.xlane.xlu1 %2454 }
0x1394   :  { %3720 = vrcp.f32 %v2455_v36 }
0x1397   :  { %v3719_v29 = vpop.eup %3718 }
0x1398   :  { %v2471_v50 = vmul.f32 %v3719_v29, %v3711_v23  ;;  %v1949_v19 = vpop.permute.xlu2 %1948 }
0x1399   :  { %v1959_v3 = vsel %vm186_vm12, %v4643_v46, %v1949_v19  ;;  %v3542_v46 = vld [vmem:[%s4925_s9 + $0x20] sm:$0xff]  ;;  %s3764_s9 = smov 65  }
0x139a   :  { %v3721_v43 = vpop.eup %3720  ;;  %v2475_v30 = vpack.c.bf16 %v2471_v50, %v2471_v50  ;;  %2628 = vmatpush.bf16.msrb.mxu3 %v3542_v46 }
0x139b   :  { %v2469_v5 = vmul.f32 %v3721_v43, %v3713_v55  ;;  %v2986_v55 = vpack.i.b16 %v2984_v10, %v2984_v10 }
0x139c   :  { %3375 = vmatmul.msk.bf16.vlgmr.msrb.gmra.mxu0 %vm555_vm10, %v2475_v30 }
0x139d   :  { %v2473_v51 = vpack.c.bf16 %v2469_v5, %v2469_v5  ;;  %v2988_v20 = vperm.slane %v2986_v55, 0 }
0x139f   :  { %3373 = vmatmul.msk.bf16.vlgmr.msra.gmra.mxu3 %vm555_vm10, %v2473_v51 }
0x13a0   :  { %v1953_v27 = vpop.permute.xlu2 %1952  ;;  %3007 = vmatpush.bf16.xpose.msra.mxu3 %v2998_v58 }
0x13ab   :  { %v2310_v33 = vpop.permute.xlu1 %2309 }
0x13ac   :  { %v2320_v34 = vsel %vm186_vm12, %v4707_v38, %v2310_v33 }
0x13b3   :  { %v2314_v35 = vpop.permute.xlu1 %2313 }
0x13b4   :  { %v2321_v56 = vsel %vm649_vm11, %v2320_v34, %v2314_v35 }
0x13bb   :  { %v2318_v22 = vpop.permute.xlu1 %2317 }
0x13bc   :  { %v2322_v47 = vsel %vm651_vm13, %v2321_v56, %v2318_v22 }
0x13bd   :  { %2323 = vst.msk [vmem:[#allocation2 + $0x5] sm:$0x1f] %vm653_vm0, %v2322_v47 }
0x13df   :  { %v2557_v37 = vpop.f32.mrf.mxu2 }
0x13e1   :  { %v2515_v53 = vpop.f32.mrf.mxu1 }
0x13e2   :  { %2562 = vrot.lane.b32.xlu0 %v2515_v53, %s4967_s3 }
0x13e7   :  { %v2559_v39 = vpop.f32.mrf.mxu2 }
0x13e9   :  { %v2517_v62 = vpop.f32.mrf.mxu1 }
0x13ea   :  { %1956 = vrot.lane.b32.xlu0 %v4623_v7, %s4969_s24  ;;  %v1960_v7 = vsel %vm649_vm11, %v1959_v3, %v1953_v27  ;;  %v2993_v27 = vperm.slane %v2986_v55, 1 }
0x1419   :  { %v2536_v24 = vpop.f32.mrf.mxu0 }
0x141a   :  { %2566 = vrot.lane.b32.xlu2 %v2536_v24, %s4968_s1  ;;  %v3549_v24 = vld [vmem:[%s4929_s13 + $0x38] sm:$0xff] }
0x141b   :  { %2741 = vmatpush.bf16.msrb.mxu1 %v3549_v24 }
0x1421   :  { %v2538_v38 = vpop.f32.mrf.mxu0 }
0x1422   :  { %2570 = vrot.lane.b32.xlu2 %v2557_v37, %s4969_s24  ;;  %v2494_v48 = vpop.f32.mrf.mxu3  ;;  %v3548_v38 = vld [vmem:[%s4929_s13 + $0x30] sm:$0xff] }
0x1423   :  { %2742 = vmatpush.bf16.msrb.mxu1 %v3548_v38 }
0x142a   :  { %v2496_v52 = vpop.f32.mrf.mxu3 }
0x1454   :  { %v2563_v57 = vpop.permute.xlu0 %2562 }
0x1455   :  { %v2573_v45 = vsel %vm186_vm12, %v2494_v48, %v2563_v57  ;;  %vm3016_vm12 = vcmp.le.s32.totalorder %v3920_v17, %v3015_v13  ;;  %v3547_v48 = vld [vmem:[%s4929_s13 + $0x28] sm:$0xff]  ;;  %s3752_s13 = smov 40  }
0x1456   :  { %2743 = vmatpush.bf16.msrb.mxu1 %v3547_v48  ;;  %v3555_v13 = vld [vmem:[%s4930_s15 + $0x68] sm:$0xff] }
0x145a   :  { %2744 = vmatpush.bf16.msrb.mxu1 %v3546_v61 }
0x145c   :  { %v1957_v49 = vpop.permute.xlu0 %1956 }
0x145d   :  { %v1961_v2 = vsel %vm651_vm13, %v1960_v7, %v1957_v49  ;;  %v3034_v49 = vand.u32 %v2993_v27, %v4022_v54  ;;  %v3601_v54 = vld [vmem:[%s4926_s11 + $0x1] ss:$0 sm:$0xff] }
0x145e   :  { %1962 = vst.msk [vmem:[#allocation2] sm:$0x1f] %vm653_vm0, %v1961_v2 }
0x145f   :  { %3043 = vmatpush.bf16.msra.mxu1 %v3034_v49 }
0x1465   :  { %v2577_v21 = vld [vmem:[#allocation2] sm:$0xff] }
0x1474   :  { %v2567_v60 = vpop.permute.xlu2 %2566 }
0x1475   :  { %v2574_v63 = vsel %vm649_vm11, %v2573_v45, %v2567_v60 }
0x147c   :  { %v2571_v28 = vpop.permute.xlu2 %2570 }
0x147d   :  { %v2575_v8 = vsel %vm651_vm13, %v2574_v63, %v2571_v28 }
0x147e   :  { %2576 = vst.msk [vmem:[#allocation2 + $0xa] sm:$0x1f] %vm653_vm0, %v2575_v8 }
0x1485   :  { %v2578_v23 = vld [vmem:[#allocation2 + $0x8] sm:$0x7f] }
0x1486   :  { %v2579_v25 = vpack.c.bf16 %v2578_v23, %v2577_v21  ;;  %v3602_v21 = vld [vmem:[%s4927_s12 + $0x1] ss:$0 sm:$0xff]  ;;  %s3756_s12 = smov 15  }
0x1488   :  { %3402 = vmatmul.msk.bf16.vlgmr.msrb.gmra.mxu3 %vm220_vm14, %v2579_v25 }
0x1498   :  { %3499 = vmatmul.msk.bf16.vlgmr.msra.gmra.mxu3 %vm555_vm10, %v2988_v20 }
0x150b   :  { %v2630_v18 = vpop.f32.mrf.mxu3 }
0x150c   :  { %v2631_v0 = vadd.f32 %v3600_v15, %v2630_v18 }
0x150e   :  { %v2635_v12 = vadd.f32 %v2631_v0, %v4456_v11 }
0x1510   :  { %v2641_v32 = vsel %vm220_vm14, %v2635_v12, 0.0 }
0x1511   :  { %2642 = vadd.xlane.f32.xlu0 %v2641_v32 }
0x1513   :  { %v2632_v31 = vpop.f32.mrf.mxu3 }
0x1514   :  { %v2633_v26 = vadd.f32 %v3600_v15, %v2632_v31 }
0x1516   :  { %v2636_v59 = vadd.f32 %v2633_v26, %v4458_v40  ;;  %v3557_v26 = vld [vmem:[%s4930_s15 + $0x78] sm:$0xff] }
0x1517   :  { %2835 = vmatpush.bf16.msra.mxu0 %v3557_v26 }
0x1518   :  { %v2644_v36 = vsel %vm224_vm15, %v2636_v59, 0.0 }
0x1519   :  { %2645 = vadd.xlane.f32.xlu1 %v2644_v36  ;;  %v3554_v36 = vld [vmem:[%s4930_s15 + $0x60] sm:$0xff] }
0x151b   :  { %v3009_v29 = vpop.f32.mrf.mxu3 }
0x151c   :  { %v3013_v50 = vmul.f32 0.4472136, %v3009_v29  ;;  %v3553_v29 = vld [vmem:[%s4930_s15 + $0x58] sm:$0xff] }
0x151e   :  { %v3017_v43 = vsel %vm3016_vm12, %v3013_v50, -1e+09  ;;  %v3552_v50 = vld [vmem:[%s4930_s15 + $0x50] sm:$0xff]  ;;  %vm2919_vm12 = vcmask 1040384  }
0x151f   :  { %v3018_v30 = vsel %vm506_vm9, %v3017_v43, -inf }
0x1521   :  { %3019 = vmax.xlane.f32.xlu1 %v3018_v30  ;;  %v3550_v30 = vld [vmem:[%s4930_s15 + $0x40] sm:$0xff] }
0x1523   :  { %v3011_v11 = vpop.f32.mrf.mxu3 }
0x1524   :  { %v3603_v11 = vld [vmem:[%s4928_s14 + $0x1] ss:$0 sm:$0xff]  ;;  %s3750_s14 = smov 5  }
0x1584   :  { %v2643_v5 = vpop.xlane.xlu0 %2642 }
0x1585   :  { %v2647_v51 = vmul.f32 %v2643_v5, %v3930_v42 }
0x1587   :  { %v2649_v33 = vsub.f32 %v2635_v12, %v2647_v51 }
0x1589   :  { %v2651_v35 = vmul.f32 %v2649_v33, %v2649_v33 }
0x158b   :  { %v2653_v40 = vsel %vm220_vm14, %v2651_v35, 0.0 }
0x158c   :  { %v2646_v16 = vpop.xlane.xlu1 %2645  ;;  %2654 = vadd.xlane.f32.xlu2 %v2653_v40 }
0x158d   :  { %v2648_v34 = vmul.f32 %v2646_v16, %v3930_v42 }
0x158f   :  { %v2650_v56 = vsub.f32 %v2636_v59, %v2648_v34  ;;  %v3556_v59 = vld [vmem:[%s4930_s15 + $0x70] sm:$0xff] }
0x1590   :  { %2836 = vmatpush.bf16.msra.mxu0 %v3556_v59 }
0x1591   :  { %v2652_v22 = vmul.f32 %v2650_v56, %v2650_v56 }
0x1593   :  { %v2656_v17 = vsel %vm224_vm15, %v2652_v22, 0.0 }
0x1594   :  { %2657 = vadd.xlane.f32.xlu0 %v2656_v17  ;;  %v3020_v47 = vpop.xlane.xlu1 %3019  ;;  %2837 = vmatpush.bf16.msra.mxu0 %v3555_v13 }
0x1595   :  { %v3021_v37 = vsub.f32 %v3017_v43, %v3020_v47  ;;  %v3551_v43 = vld [vmem:[%s4930_s15 + $0x48] sm:$0xff]  ;;  %s3751_s15 = smov 25  }
0x1597   :  { %v3022_v53 = vmul.f32 1.442695, %v3021_v37 }
0x1598   :  { %2838 = vmatpush.bf16.msra.mxu0 %v3554_v36 }
0x1599   :  { %3722 = vpow2.f32 %v3022_v53 }
0x159c   :  { %2839 = vmatpush.bf16.msra.mxu0 %v3553_v29 }
0x159f   :  { %v3723_v39 = vpop.eup %3722 }
0x15a0   :  { %v3024_v62 = vsel %vm506_vm9, %v3723_v39, 0.0  ;;  %2840 = vmatpush.bf16.msra.mxu0 %v3552_v50 }
0x15a1   :  { %3025 = vadd.xlane.f32.xlu1 %v3024_v62 }
0x15a4   :  { %2841 = vmatpush.bf16.msra.mxu0 %v3551_v43 }
0x15a8   :  { %2842 = vmatpush.bf16.msra.mxu0 %v3550_v30 }
0x15ff   :  { %v2655_v52 = vpop.xlane.xlu2 %2654 }
0x1600   :  { %v2659_v19 = vmul.f32 %v2655_v52, %v3930_v42 }
0x1602   :  { %v2661_v57 = vadd.f32 1e-12, %v2659_v19 }
0x1604   :  { %3724 = vrsqrt.f32 %v2661_v57  ;;  %vm2669_vm11 = vweird.f32 %v2661_v57 }
0x1607   :  { %v2658_v3 = vpop.xlane.xlu0 %2657 }
0x1608   :  { %v2660_v7 = vmul.f32 %v2658_v3, %v3930_v42 }
0x160a   :  { %v3725_v6 = vpop.eup %3724  ;;  %v2662_v2 = vadd.f32 1e-12, %v2660_v7 }
0x160b   :  { %v2664_v14 = vmul.f32 %v3725_v6, %v2661_v57  ;;  %vm2670_vm9 = vweird.f32 %v3725_v6 }
0x160c   :  { %3726 = vrsqrt.f32 %v2662_v2  ;;  %vm2671_vm13 = vmor %vm2669_vm11, %vm2670_vm9  ;;  %vm2679_vm6 = vweird.f32 %v2662_v2  ;;  %vm3086_vm9 = vcmask 80896   ;;  %vm3089_vm11 = vcmask 121856  }
0x160d   :  { %v2665_v46 = vmul.f32 %v3725_v6, %v2664_v14  ;;  %v3604_v14 = vld [vmem:[%s4931_s16 + $0x1] ss:$0 sm:$0xff]  ;;  %s3755_s16 = smov 10  }
0x160f   :  { %v2666_v9 = vmul.f32 0.5, %v2665_v46 }
0x1611   :  { %v2667_v1 = vsub.f32 1.5, %v2666_v9 }
0x1612   :  { %v3727_v10 = vpop.eup %3726 }
0x1613   :  { %v2668_v41 = vmul.f32 %v3725_v6, %v2667_v1  ;;  %v2674_v4 = vmul.f32 %v3727_v10, %v2662_v2  ;;  %vm2680_vm0 = vweird.f32 %v3727_v10 }
0x1614   :  { %vm2681_vm8 = vmor %vm2679_vm6, %vm2680_vm0  ;;  %v3026_v18 = vpop.xlane.xlu1 %3025  ;;  %vm3095_vm0 = vcmask 203776   ;;  %vm3098_vm6 = vcmask 244736  }
0x1615   :  { %v2675_v44 = vmul.f32 %v3727_v10, %v2674_v4  ;;  %v2672_v58 = vsel %vm2671_vm13, %v3725_v6, %v2668_v41  ;;  %3728 = vrcp.f32 %v3026_v18  ;;  %vm3092_vm13 = vcmask 162816  }
0x1616   :  { %v2683_v63 = vmul.f32 %v2672_v58, %v2649_v33 }
0x1617   :  { %v2676_v60 = vmul.f32 0.5, %v2675_v44 }
0x1618   :  { %v2688_v23 = vmul.f32 %v3601_v54, %v2683_v63 }
0x1619   :  { %v2677_v45 = vsub.f32 1.5, %v2676_v60 }
0x161a   :  { %v4801_v20 = vadd.f32 %v3602_v21, %v2688_v23 }
0x161b   :  { %v2678_v28 = vmul.f32 %v3727_v10, %v2677_v45  ;;  %v3729_v12 = vpop.eup %3728 }
0x161c   :  { %v3028_v32 = vmul.f32 %v3729_v12, %v3723_v39 }
0x161d   :  { %v2682_v8 = vsel %vm2681_vm8, %v3727_v10, %v2678_v28  ;;  %vm3101_vm8 = vcmask 285696  }
0x161e   :  { %v2684_v25 = vmul.f32 %v2682_v8, %v2650_v56  ;;  %v3029_v31 = vpack.c.bf16 %v3028_v32, %v3028_v32 }
0x1620   :  { %v2689_v55 = vmul.f32 %v3601_v54, %v2684_v25 }
0x1622   :  { %v4803_v15 = vadd.f32 %v3602_v21, %v2689_v55 }
0x1624   :  { %v2695_v0 = vpack.c.bf16 %v4803_v15, %v4801_v20 }
0x1626   :  { %3430 = vmatmul.msk.bf16.vlgmr.msrb.gmra.mxu1 %vm220_vm14, %v2695_v0  ;;  %v3559_v0 = vld [vmem:[%s4936_s19 + $0x8] sm:$0xff] }
0x1636   :  { %3500 = vmatmul.msk.bf16.vlgmr.msra.gmra.mxu1 %vm555_vm10, %v3029_v31  ;;  %v3558_v31 = vld [vmem:[%s4936_s19] sm:$0xff] }
0x16a3   :  { %v2746_v5 = vpop.f32.mrf.mxu1 }
0x16a4   :  { %v2747_v51 = vadd.f32 %v3603_v11, %v2746_v5 }
0x16a6   :  { %v2753_v33 = vmul.f32 0.044715, %v2747_v51  ;;  %v2751_v27 = vmul.f32 0.5, %v2747_v51 }
0x16a8   :  { %v2755_v35 = vmul.f32 %v2753_v33, %v2747_v51  ;;  %v3605_v33 = vld [vmem:[%s4932_s17 + $0x1] ss:$0 sm:$0xff] }
0x16aa   :  { %v2757_v40 = vmul.f32 %v2755_v35, %v2747_v51 }
0x16ab   :  { %v2748_v16 = vpop.f32.mrf.mxu1 }
0x16ac   :  { %v2759_v34 = vadd.f32 %v2757_v40, %v2747_v51  ;;  %v2749_v56 = vadd.f32 %v3603_v11, %v2748_v16 }
0x16ae   :  { %v2754_v22 = vmul.f32 0.044715, %v2749_v56  ;;  %v2761_v17 = vmul.f32 0.7978846, %v2759_v34  ;;  %v2752_v3 = vmul.f32 0.5, %v2749_v56 }
0x16b0   :  { %v2756_v47 = vmul.f32 %v2754_v22, %v2749_v56  ;;  %3730 = vtanh.f32 %v2761_v17 }
0x16b2   :  { %v2758_v37 = vmul.f32 %v2756_v47, %v2749_v56 }
0x16b3   :  { %v3045_v53 = vpop.f32.mrf.mxu1 }
0x16b4   :  { %v2760_v39 = vadd.f32 %v2758_v37, %v2749_v56  ;;  %v4836_v62 = vpack.c.bf16 %v3045_v53, %v3045_v53  ;;  %v3606_v56 = vld [vmem:[%s4933_s18 + $0x1] ss:$0 sm:$0xff] }
0x16b6   :  { %v2762_v24 = vmul.f32 0.7978846, %v2760_v39  ;;  %v3051_v38 = vunpack.c.l.b16 %v4836_v62  ;;  %v3731_v52 = vpop.eup %3730 }
0x16b7   :  { %v2765_v57 = vadd.f32 1.0, %v3731_v52 }
0x16b8   :  { %3732 = vtanh.f32 %v2762_v24  ;;  %v4839_v48 = vpack.c.b16 %v3051_v38, %v3051_v38 }
0x16b9   :  { %v2767_v49 = vmul.f32 %v2765_v57, %v2751_v27 }
0x16ba   :  { %3053 = vrot.lane.b32.xlu1 %v4839_v48, %s3750_s14 }
0x16bb   :  { %v3047_v19 = vpop.f32.mrf.mxu1 }
0x16be   :  { %v3733_v61 = vpop.eup %3732 }
0x16bf   :  { %v2766_v7 = vadd.f32 1.0, %v3733_v61 }
0x16c1   :  { %v2768_v6 = vmul.f32 %v2766_v7, %v2752_v3 }
0x16c2   :  { %3061 = vrot.lane.b32.xlu1 %v4839_v48, %s3751_s15 }
0x16c3   :  { %v2769_v2 = vpack.c.bf16 %v2768_v6, %v2767_v49 }
0x16c5   :  { %2843 = vmatmul.bf16.vlgmr.msra.gmra.mxu0 %v2769_v2 }
0x16ca   :  { %3067 = vrot.lane.b32.xlu1 %v4839_v48, %s3752_s13 }
0x16d2   :  { %3073 = vrot.lane.b32.xlu1 %v4839_v48, %s3753_s25 }
0x16da   :  { %3079 = vrot.lane.b32.xlu1 %v4839_v48, %s3754_s26 }
0x172c   :  { %v3054_v40 = vpop.permute.xlu1 %3053 }
0x172d   :  { %v3085_v3 = vsel %vm555_vm10, %v4836_v62, %v3054_v40  ;;  %vm3107_vm10 = vcmask 367616  }
0x1734   :  { %v3062_v24 = vpop.permute.xlu1 %3061 }
0x1742   :  { %v2844_v46 = vpop.f32.mrf.mxu0 }
0x1743   :  { %v2849_v9 = vadd.f32 %v2844_v46, %v4801_v20  ;;  %v3561_v20 = vld [vmem:[%s4936_s19 + $0x18] sm:$0xff] }
0x1744   :  { %2966 = vmatpush.bf16.msrb.mxu2 %v3561_v20 }
0x1745   :  { %v2856_v1 = vadd.f32 %v3604_v14, %v2849_v9  ;;  %v3068_v9 = vpop.permute.xlu1 %3067 }
0x1747   :  { %v2862_v10 = vsel %vm220_vm14, %v2856_v1, 0.0 }
0x1748   :  { %2863 = vadd.xlane.f32.xlu2 %v2862_v10 }
0x174a   :  { %v2846_v41 = vpop.f32.mrf.mxu0 }
0x174b   :  { %v2850_v4 = vadd.f32 %v2846_v41, %v4803_v15  ;;  %v3560_v15 = vld [vmem:[%s4936_s19 + $0x10] sm:$0xff] }
0x174c   :  { %2967 = vmatpush.bf16.msrb.mxu2 %v3560_v15 }
0x174d   :  { %v2857_v44 = vadd.f32 %v3604_v14, %v2850_v4 }
0x174f   :  { %v2865_v58 = vsel %vm224_vm15, %v2857_v44, 0.0 }
0x1750   :  { %2866 = vadd.xlane.f32.xlu0 %v2865_v58  ;;  %2968 = vmatpush.bf16.msrb.mxu2 %v3559_v0  ;;  %v3074_v58 = vpop.permute.xlu1 %3073 }
0x1754   :  { %2969 = vmatpush.bf16.msrb.mxu2 %v3558_v31 }
0x17bb   :  { %v2864_v60 = vpop.xlane.xlu2 %2863 }
0x17bc   :  { %v2868_v45 = vmul.f32 %v2864_v60, %v3930_v42 }
0x17be   :  { %v4854_v54 = vsub.f32 %v2856_v1, %v2868_v45 }
0x17c0   :  { %v2872_v63 = vmul.f32 %v4854_v54, %v4854_v54 }
0x17c2   :  { %v2874_v28 = vsel %vm220_vm14, %v2872_v63, 0.0 }
0x17c3   :  { %2875 = vadd.xlane.f32.xlu2 %v2874_v28  ;;  %v2867_v8 = vpop.xlane.xlu0 %2866 }
0x17c4   :  { %v2869_v21 = vmul.f32 %v2867_v8, %v3930_v42 }
0x17c6   :  { %v4860_v23 = vsub.f32 %v2857_v44, %v2869_v21 }
0x17c8   :  { %v2873_v25 = vmul.f32 %v4860_v23, %v4860_v23 }
0x17ca   :  { %v2877_v55 = vsel %vm224_vm15, %v2873_v25, 0.0  ;;  %v3132_v25 = vld [vmem:[%s4937_s22] sm:$0x7] }
0x17cb   :  { %2878 = vadd.xlane.f32.xlu0 %v2877_v55 }
0x17db   :  { %3055 = vrot.lane.b32.xlu2 %v4839_v48, %s3755_s16 }
0x17df   :  { %3057 = vrot.lane.b32.xlu0 %v4839_v48, %s3756_s12 }
0x17e3   :  { %3063 = vrot.lane.b32.xlu2 %v4839_v48, %s3757_s23 }
0x17e7   :  { %3059 = vrot.lane.b32.xlu0 %v4839_v48, %s3758_s0 }
0x17eb   :  { %3069 = vrot.lane.b32.xlu2 %v4839_v48, %s3759_s4 }
0x17ef   :  { %3065 = vrot.lane.b32.xlu0 %v4839_v48, %s3760_s29 }
0x17f3   :  { %3075 = vrot.lane.b32.xlu2 %v4839_v48, %s3761_s7 }
0x17f7   :  { %3071 = vrot.lane.b32.xlu0 %v4839_v48, %s3762_s5 }
0x17fb   :  { %3081 = vrot.lane.b32.xlu2 %v4839_v48, %s3763_s2 }
0x17ff   :  { %3077 = vrot.lane.b32.xlu0 %v4839_v48, %s3764_s9 }
0x1836   :  { %v2876_v18 = vpop.xlane.xlu2 %2875 }
0x1837   :  { %v2880_v12 = vmul.f32 %v2876_v18, %v3930_v42 }
0x1839   :  { %v2882_v32 = vadd.f32 1e-12, %v2880_v12  ;;  %v3607_v12 = vld [vmem:[%s4935_s20] ss:$0 sm:$0xff] }
0x183b   :  { %3734 = vrsqrt.f32 %v2882_v32  ;;  %vm2890_vm1 = vweird.f32 %v2882_v32 }
0x183e   :  { %v2879_v26 = vpop.xlane.xlu0 %2878  ;;  %v3056_v35 = vpop.permute.xlu2 %3055 }
0x183f   :  { %v2881_v59 = vmul.f32 %v2879_v26, %v3930_v42  ;;  %v3088_v49 = vsel %vm3086_vm9, %v3085_v3, %v3056_v35  ;;  %v2979_v26 = vld [vmem:[%s4938_s21] sm:$0x3] }
0x1841   :  { %v3735_v13 = vpop.eup %3734  ;;  %v2883_v36 = vadd.f32 1e-12, %v2881_v59 }
0x1842   :  { %v2885_v29 = vmul.f32 %v3735_v13, %v2882_v32  ;;  %vm2891_vm15 = vweird.f32 %v3735_v13 }
0x1843   :  { %3736 = vrsqrt.f32 %v2883_v36  ;;  %vm2892_vm2 = vmor %vm2890_vm1, %vm2891_vm15  ;;  %vm2900_vm4 = vweird.f32 %v2883_v36  ;;  %vm3104_vm15 = vcmask 326656   ;;  %vm3110_vm1 = vcmask 408576  }
0x1844   :  { %v2886_v50 = vmul.f32 %v3735_v13, %v2885_v29 }
0x1846   :  { %v2887_v43 = vmul.f32 0.5, %v2886_v50  ;;  %v3064_v52 = vpop.permute.xlu2 %3063 }
0x1848   :  { %v2888_v30 = vsub.f32 1.5, %v2887_v43 }
0x1849   :  { %v3737_v11 = vpop.eup %3736 }
0x184a   :  { %v2889_v5 = vmul.f32 %v3735_v13, %v2888_v30  ;;  %v2895_v51 = vmul.f32 %v3737_v11, %v2883_v36  ;;  %vm2901_vm3 = vweird.f32 %v3737_v11 }
0x184b   :  { %vm2902_vm5 = vmor %vm2900_vm4, %vm2901_vm3  ;;  %vm3129_vm3 = vcmask 649216   ;;  %vm3130_vm4 = vsmask.f32 2304 }
0x184c   :  { %v2893_v42 = vsel %vm2892_vm2, %v3735_v13, %v2889_v5  ;;  %v2896_v16 = vmul.f32 %v3737_v11, %v2895_v51  ;;  %vm3116_vm2 = vcmask 490496   ;;  %vm3131_vm9 = vmand %vm3129_vm3, %vm3130_vm4 }
0x184d   :  { %v2904_v34 = vmul.f32 %v2893_v42, %v4854_v54 }
0x184e   :  { %v2897_v22 = vmul.f32 0.5, %v2896_v16  ;;  %v3070_v1 = vpop.permute.xlu2 %3069 }
0x184f   :  { %v2909_v17 = vmul.f32 %v3605_v33, %v2904_v34 }
0x1850   :  { %v2898_v47 = vsub.f32 1.5, %v2897_v22 }
0x1851   :  { %v3058_v37 = vpop.permute.xlu0 %3057  ;;  %v2914_v53 = vadd.f32 %v3606_v56, %v2909_v17 }
0x1852   :  { %v2899_v39 = vmul.f32 %v3737_v11, %v2898_v47  ;;  %v3091_v2 = vsel %vm3089_vm11, %v3088_v49, %v3058_v37  ;;  %vm2976_vm11 = vcmask 9216  }
0x1853   :  { %v2917_v19 = vrot.slane %v2914_v53, 4 }
0x1854   :  { %v2903_v38 = vsel %vm2902_vm5, %v3737_v11, %v2899_v39  ;;  %vm3122_vm5 = vcmask 572416  }
0x1855   :  { %v2905_v48 = vmul.f32 %v2903_v38, %v4860_v23  ;;  %v2920_v7 = vsel %vm2919_vm12, %v2914_v53, %v2917_v19  ;;  %vm3125_vm12 = vcmask 613376   ;;  %v3080_v23 = vpop.permute.xlu1 %3079 }
0x1856   :  { %v3076_v60 = vpop.permute.xlu2 %3075 }
0x1857   :  { %v2910_v57 = vmul.f32 %v3605_v33, %v2905_v48 }
0x1859   :  { %v2915_v61 = vadd.f32 %v3606_v56, %v2910_v57  ;;  %v3060_v27 = vpop.permute.xlu0 %3059 }
0x185a   :  { %v3094_v46 = vsel %vm3092_vm13, %v3091_v2, %v3060_v27  ;;  %vm2977_vm13 = vsmask.f32 1280 }
0x185b   :  { %v2921_v6 = vsel %vm559_vm7, %v2920_v7, %v2915_v61  ;;  %v3097_v10 = vsel %vm3095_vm0, %v3094_v46, %v3062_v24  ;;  %vm3113_vm7 = vcmask 449536   ;;  %vm2978_vm0 = vmand %vm2976_vm11, %vm2977_vm13 }
0x185c   :  { %v2922_v14 = vpack.c.bf16 %v2921_v6, %v2921_v6  ;;  %v3100_v4 = vsel %vm3098_vm6, %v3097_v10, %v3064_v52 }
0x185e   :  { %3498 = vmatmul.msk.bf16.vlgmr.msrb.gmra.mxu2 %vm220_vm14, %v2922_v14  ;;  %vm3119_vm14 = vcmask 531456   ;;  %v3082_v20 = vpop.permute.xlu2 %3081 }
0x1861   :  { %v3066_v41 = vpop.permute.xlu0 %3065 }
0x1862   :  { %v3103_v62 = vsel %vm3101_vm8, %v3100_v4, %v3066_v41 }
0x1863   :  { %v3106_v44 = vsel %vm3104_vm15, %v3103_v62, %v3068_v9 }
0x1864   :  { %v3109_v54 = vsel %vm3107_vm10, %v3106_v44, %v3070_v1 }
0x1869   :  { %v3072_v45 = vpop.permute.xlu0 %3071 }
0x186a   :  { %v3112_v63 = vsel %vm3110_vm1, %v3109_v54, %v3072_v45 }
0x186b   :  { %v3115_v28 = vsel %vm3113_vm7, %v3112_v63, %v3074_v58 }
0x186c   :  { %v3118_v8 = vsel %vm3116_vm2, %v3115_v28, %v3076_v60 }
0x1871   :  { %v3078_v21 = vpop.permute.xlu0 %3077 }
0x1872   :  { %v3121_v55 = vsel %vm3119_vm14, %v3118_v8, %v3078_v21 }
0x1873   :  { %v3124_v15 = vsel %vm3122_vm5, %v3121_v55, %v3080_v23 }
0x1874   :  { %v3127_v18 = vsel %vm3125_vm12, %v3124_v15, %v3082_v20 }
0x1875   :  { %v3133_v0 = vsel %vm3131_vm9, %v3127_v18, %v3132_v25 }
0x1876   :  { %3134 = vst [vmem:[%s4937_s22] sm:$0x7] %v3133_v0 }
0x18e1   :  { %v2971_v32 = vpop.f32.mrf.mxu2 }
0x18e2   :  { %v2972_v31 = vadd.f32 %v3607_v12, %v2971_v32 }
0x18e4   :  { %v2975_v59 = vpack.c.bf16 %v2972_v31, %v2972_v31 }
0x18e6   :  { %v2980_v13 = vsel %vm2978_vm0, %v2975_v59, %v2979_v26 }
0x18e7   :  { %2981 = vst [vmem:[%s4938_s21] sm:$0x3] %v2980_v13 }
0x18e9   :  { %v2973_v36 = vpop.f32.mrf.mxu2 }

</bundles_post_ra>
